<compile_context>
chip_gen: v7x
topology: tpu7x:2x2x1
jax: 0.10.0
libtpu: 0.0.40
codegen_flags: <defaults>
</compile_context>

<pallas_src>
import jax
import jax.numpy as jnp
from jax.experimental import pallas as pl
from jax.experimental.pallas import tpu as pltpu  # noqa: F401  (TPU backend)

# ----------------------------- problem sizes -------------------------------
B = 2           # batch
N = 64          # number of input points
T = 16          # number of query points
EMB = 128       # args.emb_dims (c_dim of encoder, z_dim of decoder)
PC_DIMS = 1024  # PointNet_Head output dims
HID = 128       # Occ_Simple_Decoder hidden size
EPS = 1e-5      # BatchNorm eps


# ============================ Pallas kernel =================================

def fused_kernel(x_ref, p_ref,
                 w1t, b1, w2, b2, w3, b3, w4, b4, w5, b5,
                 wp1, bp1, wp2, bp2,
                 wq, wz, bzq,
                 wa, ba, wb, bb,
                 wout, bout,
                 emb_ref, pred_ref):
    """Fused PointNet encoder + Occ_Simple_Decoder, full batch in one step.

    x_ref : (B, 3, N)  f32 point clouds (PyTorch channel-first layout, as-is)
    p_ref : (B, T, 3)  f32 query points
    w1t   : (64, 3) f32 conv1 weight (BN folded, stored transposed), b1 (64,1)
    w2..w5, wp1, wp2, wz, wa, wb : bf16 (Cin, Cout) BN-folded weights
    b*    : f32 bias rows; bzq is the combined fc_p+fc_z bias row
    wq    : (3, HID) f32 fc_p weight (VPU path)
    wout  : (1, 1, HID) f32 fc_out weight row; bout (1, 1) f32
    emb_ref  : (B, EMB) shape embeddings
    pred_ref : (B, T)   occupancy logits (last_sig=False -> no sigmoid)
    """
    f32 = jnp.float32
    bf16 = jnp.bfloat16

    # ---------------- encoder: PointNet head ----------------
    # conv1 (K=3) on the VPU in channel-major layout, then one aligned
    # (64, B*N) -> (B*N, 64) transpose.  This folds the former wrapper-side
    # transpose of data_input into the kernel (no extra HLO / HBM round-trip).
    x = x_ref[...]                                                # (B, 3, N) f32
    w1 = w1t[...]                                                 # (64, 3)  f32
    cols = []
    for b in range(B):
        xb = x[b]                                                 # (3, N)
        cols.append(w1[:, 0:1] * xb[0:1, :] +
                    w1[:, 1:2] * xb[1:2, :] +
                    w1[:, 2:3] * xb[2:3, :])                      # (64, N)
    hcn = jnp.concatenate(cols, axis=1)                           # (64, B*N)
    hcn = jnp.maximum(hcn + b1[...], 0.0)
    h = hcn.T.astype(bf16)                                        # (B*N, 64) bf16

    # conv2..conv4 (+ folded BN): bf16 activations, f32 MXU accumulation.
    for w_ref, b_ref in ((w2, b2), (w3, b3), (w4, b4)):
        z = jnp.dot(h, w_ref[...], preferred_element_type=f32) + b_ref[...]
        h = jnp.maximum(z, 0.0).astype(bf16)                      # (B*N, C)

    # conv5 + adaptive_max_pool1d fused: per-batch 64-row chunk -> running
    # (B, PC_DIMS) max; the (B*N, PC_DIMS) intermediate is never materialized.
    f_rows = []
    for b in range(B):
        hb = h[b * N:(b + 1) * N, :]                              # (N, 128) bf16
        h5 = jnp.dot(hb, w5[...], preferred_element_type=f32) + b5[...]
        h5 = jnp.maximum(h5, 0.0)                                 # (N, PC_DIMS)
        f_rows.append(jnp.max(h5, axis=0, keepdims=True))         # (1, PC_DIMS)
    fmax = jnp.concatenate(f_rows, axis=0)                        # (B, PC_DIMS)

    # projection: Linear -> BN(folded) -> ReLU -> Linear
    g = jnp.dot(fmax.astype(bf16), wp1[...], preferred_element_type=f32) + bp1[...]
    g = jnp.maximum(g, 0.0)                                       # (B, 512)
    e = jnp.dot(g.astype(bf16), wp2[...], preferred_element_type=f32) + bp2[...]
    emb_ref[...] = e                                              # (B, EMB) f32
    # TODO(synk): 'add_noise' feature transform is training-only; eval skips it.
    # TODO(synk): per-generation weight quantization of w5/wp1 (int8 on
    # v5e/v6e, fp8 on v7x) would shrink the dominant weight DMA; kept bf16
    # here so one kernel runs on all generations.

    # ---------------- decoder: Occ_Simple_Decoder ----------------
    p = p_ref[...]                                                # (B, T, 3) f32
    # fc_p (K=3): three VPU multiply-adds instead of a padded MXU matmul.
    net_p = (p[..., 0:1] * wq[0:1, :] +
             p[..., 1:2] * wq[1:2, :] +
             p[..., 2:3] * wq[2:3, :])                            # (B, T, HID)
    # fc_z applied once per batch element (fc_p + fc_z biases pre-folded),
    # broadcast over the T queries.
    net_z = jnp.dot(e.astype(bf16), wz[...], preferred_element_type=f32) + bzq[...]
    net = (net_p + net_z[:, None, :]).reshape(B * T, HID)         # f32 residual

    # 5 x ResnetBlockFC: net <- net + fc1(relu(fc0(relu(net))))
    for i in range(5):
        hb = jnp.maximum(net, 0.0).astype(bf16)
        u = jnp.dot(hb, wa[i], preferred_element_type=f32) + ba[i]
        u = jnp.maximum(u, 0.0).astype(bf16)
        net = net + jnp.dot(u, wb[i], preferred_element_type=f32) + bb[i]

    # fc_out as a lane reduction -> lane-dense (B, T) output (no (B,T,1) store).
    relu_net = jnp.maximum(net, 0.0).reshape(B, T, HID)
    pred_ref[...] = jnp.sum(relu_net * wout[...], axis=-1) + bout[...]


# ============================== glue / wrapper ==============================

@jax.jit
def get_model_forward(data_input, query_points, params):
    """data_input: (B, 3, N) f32; query_points: (B, T, 3) f32.
       Returns (pred (B, T), shape_embs (B, EMB)) — same as the PyTorch module."""
    shape_embs, pred = pl.pallas_call(
        fused_kernel,
        out_shape=(jax.ShapeDtypeStruct((B, EMB), jnp.float32),
                   jax.ShapeDtypeStruct((B, T), jnp.float32)),
    )(data_input, query_points, *params)
    return pred, shape_embs


# ======================= parameters (BN folded, eval) =======================

def fold_bn_linear(w, b, gamma, beta, mean, var, eps=EPS):
    """Fold eval-mode BatchNorm into a preceding (Cin, Cout) linear / 1x1 conv."""
    scale = gamma / jnp.sqrt(var + eps)
    w_f = w * scale[None, :]
    b_f = ((b - mean) * scale + beta) if b is not None else (beta - mean * scale)
    return w_f, b_f


def make_params(key):
    ks = iter(jax.random.split(key, 64))

    def w(shape, s=0.05):
        return s * jax.random.normal(next(ks), shape, jnp.float32)

    def bn(c):
        gamma = 1.0 + 0.01 * jax.random.normal(next(ks), (c,), jnp.float32)
        beta = 0.01 * jax.random.normal(next(ks), (c,), jnp.float32)
        mean = jnp.zeros((c,), jnp.float32)   # running stats at init
        var = jnp.ones((c,), jnp.float32)
        return gamma, beta, mean, var

    bf16 = jnp.bfloat16
    prm = []

    # conv1 (3->64, bias=False) + BN folded; kept f32, stored (Cout, Cin) for
    # the in-kernel VPU contraction, bias as a (64, 1) column.
    W1, b1f = fold_bn_linear(w((3, 64)), None, *bn(64))
    prm += [W1.T, b1f.reshape(64, 1)]

    # conv2..conv5 (bias=False) + BN folded; bf16 weights, f32 bias rows.
    for cin, cout in [(64, 64), (64, 64), (64, 128), (128, PC_DIMS)]:
        Wf, bf_ = fold_bn_linear(w((cin, cout)), None, *bn(cout))
        prm += [Wf.astype(bf16), bf_.reshape(1, cout)]

    # projection: Linear(1024,512)+BN folded -> ReLU -> Linear(512, EMB)
    Wp1, bp1 = fold_bn_linear(w((PC_DIMS, 512)), w((512,)), *bn(512))
    prm += [Wp1.astype(bf16), bp1.reshape(1, 512),
            w((512, EMB)).astype(bf16), w((EMB,)).reshape(1, EMB)]

    # decoder: fc_p (f32, VPU path), fc_z (bf16); biases folded into one row.
    wq_, bq = w((3, HID)), w((HID,))
    wz_, bz = w((EMB, HID)), w((HID,))
    prm += [wq_, wz_.astype(bf16), (bq + bz).reshape(1, HID)]
    # 5 x ResnetBlockFC (fc_0, fc_1), stacked.
    prm += [w((5, HID, HID)).astype(bf16), w((5, HID)).reshape(5, 1, HID),
            w((5, HID, HID)).astype(bf16), w((5, HID)).reshape(5, 1, HID)]
    # fc_out
    prm += [w((HID, 1)).reshape(1, 1, HID), w((1,)).reshape(1, 1)]
    return tuple(prm)


# ===================== pure-JAX f32 reference (validation) ==================

@jax.jit
def reference_forward(data_input, query_points, params):
    (w1t, b1, w2, b2, w3, b3, w4, b4, w5, b5,
     wp1, bp1, wp2, bp2, wq, wz, bzq, wa, ba, wb, bb, wout, bout) = params
    f32 = lambda a: a.astype(jnp.float32)
    x = jnp.transpose(data_input, (0, 2, 1))                         # (B, N, 3)
    h = jax.nn.relu(jnp.einsum('bnc,dc->bnd', x, f32(w1t)) + b1[:, 0])
    for wgt, bias in ((w2, b2), (w3, b3), (w4, b4), (w5, b5)):
        h = jax.nn.relu(jnp.einsum('bnc,cd->bnd', h, f32(wgt)) + bias[0])
    fmax = jnp.max(h, axis=1)                                         # (B, 1024)
    g = jax.nn.relu(fmax @ f32(wp1) + bp1[0])
    e = g @ f32(wp2) + bp2[0]                                         # (B, EMB)
    net = (jnp.einsum('btc,cd->btd', query_points, f32(wq))
           + (e @ f32(wz) + bzq[0])[:, None, :])
    for i in range(5):
        u = jax.nn.relu(jax.nn.relu(net) @ f32(wa[i]) + ba[i, 0])
        net = net + (u @ f32(wb[i]) + bb[i, 0])
    pred = jnp.sum(jax.nn.relu(net) * wout[0], axis=-1) + bout[0, 0]  # (B, T)
    return pred, e


# ================================== main ====================================

if __name__ == "__main__":
    key = jax.random.PRNGKey(0)
    k_param, k_pc, k_q = jax.random.split(key, 3)

    params = make_params(k_param)
    data_input = jax.random.normal(k_pc, (B, 3, N), jnp.float32)      # (B, 3, N)
    query_points = jax.random.uniform(k_q, (B, T, 3), jnp.float32,
                                      minval=-0.5, maxval=0.5)

    pred, shape_embs = get_model_forward(data_input, query_points, params)
    jax.block_until_ready((pred, shape_embs))

    assert pred.shape == (B, T)
    assert shape_embs.shape == (B, EMB)

    # Validate against a pure-JAX f32 reference (bf16 activation drift only).
    pred_ref, emb_ref = reference_forward(data_input, query_points, params)
    jax.block_until_ready((pred_ref, emb_ref))
    assert jnp.allclose(pred, pred_ref, rtol=3e-2, atol=3e-2), \
        f"pred max abs err {float(jnp.max(jnp.abs(pred - pred_ref)))}"
    assert jnp.allclose(shape_embs, emb_ref, rtol=3e-2, atol=3e-2), \
        f"emb max abs err {float(jnp.max(jnp.abs(shape_embs - emb_ref)))}"

    print("KERNEL_OK")
</pallas_src>

<mosaic_0001>
module attributes {stable_mosaic.version = 11 : i64} {
  func.func @fused_kernel(%arg0: memref<2x3x64xf32, #tpu.memory_space<vmem>>, %arg1: memref<2x16x3xf32, #tpu.memory_space<vmem>>, %arg2: memref<64x3xf32, #tpu.memory_space<vmem>>, %arg3: memref<64x1xf32, #tpu.memory_space<vmem>>, %arg4: memref<64x64xbf16, #tpu.memory_space<vmem>>, %arg5: memref<1x64xf32, #tpu.memory_space<vmem>>, %arg6: memref<64x64xbf16, #tpu.memory_space<vmem>>, %arg7: memref<1x64xf32, #tpu.memory_space<vmem>>, %arg8: memref<64x128xbf16, #tpu.memory_space<vmem>>, %arg9: memref<1x128xf32, #tpu.memory_space<vmem>>, %arg10: memref<128x1024xbf16, #tpu.memory_space<vmem>>, %arg11: memref<1x1024xf32, #tpu.memory_space<vmem>>, %arg12: memref<1024x512xbf16, #tpu.memory_space<vmem>>, %arg13: memref<1x512xf32, #tpu.memory_space<vmem>>, %arg14: memref<512x128xbf16, #tpu.memory_space<vmem>>, %arg15: memref<1x128xf32, #tpu.memory_space<vmem>>, %arg16: memref<3x128xf32, #tpu.memory_space<vmem>>, %arg17: memref<128x128xbf16, #tpu.memory_space<vmem>>, %arg18: memref<1x128xf32, #tpu.memory_space<vmem>>, %arg19: memref<5x128x128xbf16, #tpu.memory_space<vmem>>, %arg20: memref<5x1x128xf32, #tpu.memory_space<vmem>>, %arg21: memref<5x128x128xbf16, #tpu.memory_space<vmem>>, %arg22: memref<5x1x128xf32, #tpu.memory_space<vmem>>, %arg23: memref<1x1x128xf32, #tpu.memory_space<vmem>>, %arg24: memref<1x1xf32, #tpu.memory_space<vmem>>, %arg25: memref<2x128xf32, #tpu.memory_space<vmem>>, %arg26: memref<2x16xf32, #tpu.memory_space<vmem>>) attributes {dimension_semantics = [], scalar_prefetch = 0 : i64, scratch_operands = 0 : i64, tpu.core_type = #tpu.core_type<tc>} {
    %c0 = arith.constant 0 : index
    %c0_0 = arith.constant 0 : index
    %c0_1 = arith.constant 0 : index
    %0 = vector.load %arg0[%c0, %c0_0, %c0_1] : memref<2x3x64xf32, #tpu.memory_space<vmem>>, vector<2x3x64xf32>
    %c0_2 = arith.constant 0 : index
    %c0_3 = arith.constant 0 : index
    %1 = vector.load %arg2[%c0_2, %c0_3] : memref<64x3xf32, #tpu.memory_space<vmem>>, vector<64x3xf32>
    %2 = vector.extract_strided_slice %0 {offsets = [0, 0, 0], sizes = [1, 3, 64], strides = [1, 1, 1]} : vector<2x3x64xf32> to vector<1x3x64xf32>
    %3 = vector.shape_cast %2 : vector<1x3x64xf32> to vector<3x64xf32>
    %4 = vector.extract_strided_slice %1 {offsets = [0, 0], sizes = [64, 1], strides = [1, 1]} : vector<64x3xf32> to vector<64x1xf32>
    %5 = vector.extract_strided_slice %3 {offsets = [0, 0], sizes = [1, 64], strides = [1, 1]} : vector<3x64xf32> to vector<1x64xf32>
    %6 = vector.broadcast %4 : vector<64x1xf32> to vector<64x64xf32>
    %7 = vector.broadcast %5 : vector<1x64xf32> to vector<64x64xf32>
    %8 = arith.mulf %6, %7 : vector<64x64xf32>
    %9 = vector.extract_strided_slice %1 {offsets = [0, 1], sizes = [64, 1], strides = [1, 1]} : vector<64x3xf32> to vector<64x1xf32>
    %10 = vector.extract_strided_slice %3 {offsets = [1, 0], sizes = [1, 64], strides = [1, 1]} : vector<3x64xf32> to vector<1x64xf32>
    %11 = vector.broadcast %9 : vector<64x1xf32> to vector<64x64xf32>
    %12 = vector.broadcast %10 : vector<1x64xf32> to vector<64x64xf32>
    %13 = arith.mulf %11, %12 : vector<64x64xf32>
    %14 = arith.addf %8, %13 : vector<64x64xf32>
    %15 = vector.extract_strided_slice %1 {offsets = [0, 2], sizes = [64, 1], strides = [1, 1]} : vector<64x3xf32> to vector<64x1xf32>
    %16 = vector.extract_strided_slice %3 {offsets = [2, 0], sizes = [1, 64], strides = [1, 1]} : vector<3x64xf32> to vector<1x64xf32>
    %17 = vector.broadcast %15 : vector<64x1xf32> to vector<64x64xf32>
    %18 = vector.broadcast %16 : vector<1x64xf32> to vector<64x64xf32>
    %19 = arith.mulf %17, %18 : vector<64x64xf32>
    %20 = arith.addf %14, %19 : vector<64x64xf32>
    %21 = vector.extract_strided_slice %0 {offsets = [1, 0, 0], sizes = [1, 3, 64], strides = [1, 1, 1]} : vector<2x3x64xf32> to vector<1x3x64xf32>
    %22 = vector.shape_cast %21 : vector<1x3x64xf32> to vector<3x64xf32>
    %23 = vector.extract_strided_slice %1 {offsets = [0, 0], sizes = [64, 1], strides = [1, 1]} : vector<64x3xf32> to vector<64x1xf32>
    %24 = vector.extract_strided_slice %22 {offsets = [0, 0], sizes = [1, 64], strides = [1, 1]} : vector<3x64xf32> to vector<1x64xf32>
    %25 = vector.broadcast %23 : vector<64x1xf32> to vector<64x64xf32>
    %26 = vector.broadcast %24 : vector<1x64xf32> to vector<64x64xf32>
    %27 = arith.mulf %25, %26 : vector<64x64xf32>
    %28 = vector.extract_strided_slice %1 {offsets = [0, 1], sizes = [64, 1], strides = [1, 1]} : vector<64x3xf32> to vector<64x1xf32>
    %29 = vector.extract_strided_slice %22 {offsets = [1, 0], sizes = [1, 64], strides = [1, 1]} : vector<3x64xf32> to vector<1x64xf32>
    %30 = vector.broadcast %28 : vector<64x1xf32> to vector<64x64xf32>
    %31 = vector.broadcast %29 : vector<1x64xf32> to vector<64x64xf32>
    %32 = arith.mulf %30, %31 : vector<64x64xf32>
    %33 = arith.addf %27, %32 : vector<64x64xf32>
    %34 = vector.extract_strided_slice %1 {offsets = [0, 2], sizes = [64, 1], strides = [1, 1]} : vector<64x3xf32> to vector<64x1xf32>
    %35 = vector.extract_strided_slice %22 {offsets = [2, 0], sizes = [1, 64], strides = [1, 1]} : vector<3x64xf32> to vector<1x64xf32>
    %36 = vector.broadcast %34 : vector<64x1xf32> to vector<64x64xf32>
    %37 = vector.broadcast %35 : vector<1x64xf32> to vector<64x64xf32>
    %38 = arith.mulf %36, %37 : vector<64x64xf32>
    %39 = arith.addf %33, %38 : vector<64x64xf32>
    %40 = tpu.concatenate %20, %39 in 1 : vector<64x64xf32>, vector<64x64xf32> -> vector<64x128xf32>
    %c0_4 = arith.constant 0 : index
    %c0_5 = arith.constant 0 : index
    %41 = vector.load %arg3[%c0_4, %c0_5] : memref<64x1xf32, #tpu.memory_space<vmem>>, vector<64x1xf32>
    %42 = vector.broadcast %41 : vector<64x1xf32> to vector<64x128xf32>
    %43 = arith.addf %40, %42 : vector<64x128xf32>
    %cst = arith.constant 0.000000e+00 : f32
    %44 = vector.broadcast %cst : f32 to vector<64x128xf32>
    %45 = arith.maximumf %43, %44 : vector<64x128xf32>
    %46 = tpu.transpose %45, [1, 0] : vector<64x128xf32> -> vector<128x64xf32>
    %47 = arith.truncf %46 : vector<128x64xf32> to vector<128x64xbf16>
    %c0_6 = arith.constant 0 : index
    %c0_7 = arith.constant 0 : index
    %48 = vector.load %arg4[%c0_6, %c0_7] : memref<64x64xbf16, #tpu.memory_space<vmem>>, vector<64x64xbf16>
    %cst_8 = arith.constant dense<0.000000e+00> : vector<128x64xf32>
    %49 = tpu.matmul %47, %48, %cst_8 {dimension_numbers = #tpu.dot_dimension_numbers<[1], [0], [0], [1], [0, 0, 1, 1], [], []>} : vector<128x64xbf16>, vector<64x64xbf16>, vector<128x64xf32> -> vector<128x64xf32>
    %c0_9 = arith.constant 0 : index
    %c0_10 = arith.constant 0 : index
    %50 = vector.load %arg5[%c0_9, %c0_10] : memref<1x64xf32, #tpu.memory_space<vmem>>, vector<1x64xf32>
    %51 = vector.broadcast %50 : vector<1x64xf32> to vector<128x64xf32>
    %52 = arith.addf %49, %51 : vector<128x64xf32>
    %cst_11 = arith.constant 0.000000e+00 : f32
    %53 = vector.broadcast %cst_11 : f32 to vector<128x64xf32>
    %54 = arith.maximumf %52, %53 : vector<128x64xf32>
    %55 = arith.truncf %54 : vector<128x64xf32> to vector<128x64xbf16>
    %c0_12 = arith.constant 0 : index
    %c0_13 = arith.constant 0 : index
    %56 = vector.load %arg6[%c0_12, %c0_13] : memref<64x64xbf16, #tpu.memory_space<vmem>>, vector<64x64xbf16>
    %cst_14 = arith.constant dense<0.000000e+00> : vector<128x64xf32>
    %57 = tpu.matmul %55, %56, %cst_14 {dimension_numbers = #tpu.dot_dimension_numbers<[1], [0], [0], [1], [0, 0, 1, 1], [], []>} : vector<128x64xbf16>, vector<64x64xbf16>, vector<128x64xf32> -> vector<128x64xf32>
    %c0_15 = arith.constant 0 : index
    %c0_16 = arith.constant 0 : index
    %58 = vector.load %arg7[%c0_15, %c0_16] : memref<1x64xf32, #tpu.memory_space<vmem>>, vector<1x64xf32>
    %59 = vector.broadcast %58 : vector<1x64xf32> to vector<128x64xf32>
    %60 = arith.addf %57, %59 : vector<128x64xf32>
    %cst_17 = arith.constant 0.000000e+00 : f32
    %61 = vector.broadcast %cst_17 : f32 to vector<128x64xf32>
    %62 = arith.maximumf %60, %61 : vector<128x64xf32>
    %63 = arith.truncf %62 : vector<128x64xf32> to vector<128x64xbf16>
    %c0_18 = arith.constant 0 : index
    %c0_19 = arith.constant 0 : index
    %64 = vector.load %arg8[%c0_18, %c0_19] : memref<64x128xbf16, #tpu.memory_space<vmem>>, vector<64x128xbf16>
    %cst_20 = arith.constant dense<0.000000e+00> : vector<128x128xf32>
    %65 = tpu.matmul %63, %64, %cst_20 {dimension_numbers = #tpu.dot_dimension_numbers<[1], [0], [0], [1], [0, 0, 1, 1], [], []>} : vector<128x64xbf16>, vector<64x128xbf16>, vector<128x128xf32> -> vector<128x128xf32>
    %c0_21 = arith.constant 0 : index
    %c0_22 = arith.constant 0 : index
    %66 = vector.load %arg9[%c0_21, %c0_22] : memref<1x128xf32, #tpu.memory_space<vmem>>, vector<1x128xf32>
    %67 = vector.broadcast %66 : vector<1x128xf32> to vector<128x128xf32>
    %68 = arith.addf %65, %67 : vector<128x128xf32>
    %cst_23 = arith.constant 0.000000e+00 : f32
    %69 = vector.broadcast %cst_23 : f32 to vector<128x128xf32>
    %70 = arith.maximumf %68, %69 : vector<128x128xf32>
    %71 = arith.truncf %70 : vector<128x128xf32> to vector<128x128xbf16>
    %72 = vector.extract_strided_slice %71 {offsets = [0, 0], sizes = [64, 128], strides = [1, 1]} : vector<128x128xbf16> to vector<64x128xbf16>
    %c0_24 = arith.constant 0 : index
    %c0_25 = arith.constant 0 : index
    %73 = vector.load %arg10[%c0_24, %c0_25] : memref<128x1024xbf16, #tpu.memory_space<vmem>>, vector<128x1024xbf16>
    %cst_26 = arith.constant dense<0.000000e+00> : vector<64x1024xf32>
    %74 = tpu.matmul %72, %73, %cst_26 {dimension_numbers = #tpu.dot_dimension_numbers<[1], [0], [0], [1], [0, 0, 1, 1], [], []>} : vector<64x128xbf16>, vector<128x1024xbf16>, vector<64x1024xf32> -> vector<64x1024xf32>
    %c0_27 = arith.constant 0 : index
    %c0_28 = arith.constant 0 : index
    %75 = vector.load %arg11[%c0_27, %c0_28] : memref<1x1024xf32, #tpu.memory_space<vmem>>, vector<1x1024xf32>
    %76 = vector.broadcast %75 : vector<1x1024xf32> to vector<64x1024xf32>
    %77 = arith.addf %74, %76 : vector<64x1024xf32>
    %cst_29 = arith.constant 0.000000e+00 : f32
    %78 = vector.broadcast %cst_29 : f32 to vector<64x1024xf32>
    %79 = arith.maximumf %77, %78 : vector<64x1024xf32>
    %cst_30 = arith.constant dense<0xFF800000> : vector<1024xf32>
    %80 = vector.multi_reduction <maximumf>, %79, %cst_30 [0] : vector<64x1024xf32> to vector<1024xf32>
    %81 = vector.shape_cast %80 : vector<1024xf32> to vector<1x1024xf32>
    %82 = vector.extract_strided_slice %71 {offsets = [64, 0], sizes = [64, 128], strides = [1, 1]} : vector<128x128xbf16> to vector<64x128xbf16>
    %c0_31 = arith.constant 0 : index
    %c0_32 = arith.constant 0 : index
    %83 = vector.load %arg10[%c0_31, %c0_32] : memref<128x1024xbf16, #tpu.memory_space<vmem>>, vector<128x1024xbf16>
    %cst_33 = arith.constant dense<0.000000e+00> : vector<64x1024xf32>
    %84 = tpu.matmul %82, %83, %cst_33 {dimension_numbers = #tpu.dot_dimension_numbers<[1], [0], [0], [1], [0, 0, 1, 1], [], []>} : vector<64x128xbf16>, vector<128x1024xbf16>, vector<64x1024xf32> -> vector<64x1024xf32>
    %c0_34 = arith.constant 0 : index
    %c0_35 = arith.constant 0 : index
    %85 = vector.load %arg11[%c0_34, %c0_35] : memref<1x1024xf32, #tpu.memory_space<vmem>>, vector<1x1024xf32>
    %86 = vector.broadcast %85 : vector<1x1024xf32> to vector<64x1024xf32>
    %87 = arith.addf %84, %86 : vector<64x1024xf32>
    %cst_36 = arith.constant 0.000000e+00 : f32
    %88 = vector.broadcast %cst_36 : f32 to vector<64x1024xf32>
    %89 = arith.maximumf %87, %88 : vector<64x1024xf32>
    %cst_37 = arith.constant dense<0xFF800000> : vector<1024xf32>
    %90 = vector.multi_reduction <maximumf>, %89, %cst_37 [0] : vector<64x1024xf32> to vector<1024xf32>
    %91 = vector.shape_cast %90 : vector<1024xf32> to vector<1x1024xf32>
    %92 = tpu.concatenate %81, %91 in 0 : vector<1x1024xf32>, vector<1x1024xf32> -> vector<2x1024xf32>
    %93 = arith.truncf %92 : vector<2x1024xf32> to vector<2x1024xbf16>
    %c0_38 = arith.constant 0 : index
    %c0_39 = arith.constant 0 : index
    %94 = vector.load %arg12[%c0_38, %c0_39] : memref<1024x512xbf16, #tpu.memory_space<vmem>>, vector<1024x512xbf16>
    %cst_40 = arith.constant dense<0.000000e+00> : vector<2x512xf32>
    %95 = tpu.matmul %93, %94, %cst_40 {dimension_numbers = #tpu.dot_dimension_numbers<[1], [0], [0], [1], [0, 0, 1, 1], [], []>} : vector<2x1024xbf16>, vector<1024x512xbf16>, vector<2x512xf32> -> vector<2x512xf32>
    %c0_41 = arith.constant 0 : index
    %c0_42 = arith.constant 0 : index
    %96 = vector.load %arg13[%c0_41, %c0_42] : memref<1x512xf32, #tpu.memory_space<vmem>>, vector<1x512xf32>
    %97 = vector.broadcast %96 : vector<1x512xf32> to vector<2x512xf32>
    %98 = arith.addf %95, %97 : vector<2x512xf32>
    %cst_43 = arith.constant 0.000000e+00 : f32
    %99 = vector.broadcast %cst_43 : f32 to vector<2x512xf32>
    %100 = arith.maximumf %98, %99 : vector<2x512xf32>
    %101 = arith.truncf %100 : vector<2x512xf32> to vector<2x512xbf16>
    %c0_44 = arith.constant 0 : index
    %c0_45 = arith.constant 0 : index
    %102 = vector.load %arg14[%c0_44, %c0_45] : memref<512x128xbf16, #tpu.memory_space<vmem>>, vector<512x128xbf16>
    %cst_46 = arith.constant dense<0.000000e+00> : vector<2x128xf32>
    %103 = tpu.matmul %101, %102, %cst_46 {dimension_numbers = #tpu.dot_dimension_numbers<[1], [0], [0], [1], [0, 0, 1, 1], [], []>} : vector<2x512xbf16>, vector<512x128xbf16>, vector<2x128xf32> -> vector<2x128xf32>
    %c0_47 = arith.constant 0 : index
    %c0_48 = arith.constant 0 : index
    %104 = vector.load %arg15[%c0_47, %c0_48] : memref<1x128xf32, #tpu.memory_space<vmem>>, vector<1x128xf32>
    %105 = vector.broadcast %104 : vector<1x128xf32> to vector<2x128xf32>
    %106 = arith.addf %103, %105 : vector<2x128xf32>
    %c0_49 = arith.constant 0 : index
    %c0_50 = arith.constant 0 : index
    %107 = vector.load %arg25[%c0_49, %c0_50] : memref<2x128xf32, #tpu.memory_space<vmem>>, vector<2x128xf32>
    tpu.vector_store %arg25[%c0_49, %c0_50], %106 {strides = array<i32>} : memref<2x128xf32, #tpu.memory_space<vmem>>, vector<2x128xf32>,
    %c0_51 = arith.constant 0 : index
    %c0_52 = arith.constant 0 : index
    %c0_53 = arith.constant 0 : index
    %108 = vector.load %arg1[%c0_51, %c0_52, %c0_53] : memref<2x16x3xf32, #tpu.memory_space<vmem>>, vector<2x16x3xf32>
    %109 = vector.extract_strided_slice %108 {offsets = [0, 0, 0], sizes = [2, 16, 1], strides = [1, 1, 1]} : vector<2x16x3xf32> to vector<2x16x1xf32>
    %c0_54 = arith.constant 0 : index
    %c0_55 = arith.constant 0 : index
    %110 = vector.load %arg16[%c0_54, %c0_55] : memref<3x128xf32, #tpu.memory_space<vmem>>, vector<1x128xf32>
    %111 = vector.shape_cast %110 : vector<1x128xf32> to vector<1x1x128xf32>
    %112 = vector.broadcast %109 : vector<2x16x1xf32> to vector<2x16x128xf32>
    %113 = vector.broadcast %111 : vector<1x1x128xf32> to vector<2x16x128xf32>
    %114 = arith.mulf %112, %113 : vector<2x16x128xf32>
    %115 = vector.extract_strided_slice %108 {offsets = [0, 0, 1], sizes = [2, 16, 1], strides = [1, 1, 1]} : vector<2x16x3xf32> to vector<2x16x1xf32>
    %c1 = arith.constant 1 : index
    %c0_56 = arith.constant 0 : index
    %116 = vector.load %arg16[%c1, %c0_56] : memref<3x128xf32, #tpu.memory_space<vmem>>, vector<1x128xf32>
    %117 = vector.shape_cast %116 : vector<1x128xf32> to vector<1x1x128xf32>
    %118 = vector.broadcast %115 : vector<2x16x1xf32> to vector<2x16x128xf32>
    %119 = vector.broadcast %117 : vector<1x1x128xf32> to vector<2x16x128xf32>
    %120 = arith.mulf %118, %119 : vector<2x16x128xf32>
    %121 = arith.addf %114, %120 : vector<2x16x128xf32>
    %122 = vector.extract_strided_slice %108 {offsets = [0, 0, 2], sizes = [2, 16, 1], strides = [1, 1, 1]} : vector<2x16x3xf32> to vector<2x16x1xf32>
    %c2 = arith.constant 2 : index
    %c0_57 = arith.constant 0 : index
    %123 = vector.load %arg16[%c2, %c0_57] : memref<3x128xf32, #tpu.memory_space<vmem>>, vector<1x128xf32>
    %124 = vector.shape_cast %123 : vector<1x128xf32> to vector<1x1x128xf32>
    %125 = vector.broadcast %122 : vector<2x16x1xf32> to vector<2x16x128xf32>
    %126 = vector.broadcast %124 : vector<1x1x128xf32> to vector<2x16x128xf32>
    %127 = arith.mulf %125, %126 : vector<2x16x128xf32>
    %128 = arith.addf %121, %127 : vector<2x16x128xf32>
    %129 = arith.truncf %106 : vector<2x128xf32> to vector<2x128xbf16>
    %c0_58 = arith.constant 0 : index
    %c0_59 = arith.constant 0 : index
    %130 = vector.load %arg17[%c0_58, %c0_59] : memref<128x128xbf16, #tpu.memory_space<vmem>>, vector<128x128xbf16>
    %cst_60 = arith.constant dense<0.000000e+00> : vector<2x128xf32>
    %131 = tpu.matmul %129, %130, %cst_60 {dimension_numbers = #tpu.dot_dimension_numbers<[1], [0], [0], [1], [0, 0, 1, 1], [], []>} : vector<2x128xbf16>, vector<128x128xbf16>, vector<2x128xf32> -> vector<2x128xf32>
    %c0_61 = arith.constant 0 : index
    %c0_62 = arith.constant 0 : index
    %132 = vector.load %arg18[%c0_61, %c0_62] : memref<1x128xf32, #tpu.memory_space<vmem>>, vector<1x128xf32>
    %133 = vector.broadcast %132 : vector<1x128xf32> to vector<2x128xf32>
    %134 = arith.addf %131, %133 : vector<2x128xf32>
    %135 = vector.shape_cast %134 : vector<2x128xf32> to vector<2x1x128xf32>
    %136 = vector.broadcast %135 : vector<2x1x128xf32> to vector<2x16x128xf32>
    %137 = arith.addf %128, %136 : vector<2x16x128xf32>
    %138 = vector.shape_cast %137 : vector<2x16x128xf32> to vector<32x128xf32>
    %cst_63 = arith.constant 0.000000e+00 : f32
    %139 = vector.broadcast %cst_63 : f32 to vector<32x128xf32>
    %140 = arith.maximumf %138, %139 : vector<32x128xf32>
    %141 = arith.truncf %140 : vector<32x128xf32> to vector<32x128xbf16>
    %c0_64 = arith.constant 0 : index
    %c0_65 = arith.constant 0 : index
    %c0_66 = arith.constant 0 : index
    %142 = vector.load %arg19[%c0_64, %c0_65, %c0_66] : memref<5x128x128xbf16, #tpu.memory_space<vmem>>, vector<1x128x128xbf16>
    %143 = vector.shape_cast %142 : vector<1x128x128xbf16> to vector<128x128xbf16>
    %cst_67 = arith.constant dense<0.000000e+00> : vector<32x128xf32>
    %144 = tpu.matmul %141, %143, %cst_67 {dimension_numbers = #tpu.dot_dimension_numbers<[1], [0], [0], [1], [0, 0, 1, 1], [], []>} : vector<32x128xbf16>, vector<128x128xbf16>, vector<32x128xf32> -> vector<32x128xf32>
    %c0_68 = arith.constant 0 : index
    %c0_69 = arith.constant 0 : index
    %c0_70 = arith.constant 0 : index
    %145 = vector.load %arg20[%c0_68, %c0_69, %c0_70] : memref<5x1x128xf32, #tpu.memory_space<vmem>>, vector<1x1x128xf32>
    %146 = vector.shape_cast %145 : vector<1x1x128xf32> to vector<1x128xf32>
    %147 = vector.broadcast %146 : vector<1x128xf32> to vector<32x128xf32>
    %148 = arith.addf %144, %147 : vector<32x128xf32>
    %cst_71 = arith.constant 0.000000e+00 : f32
    %149 = vector.broadcast %cst_71 : f32 to vector<32x128xf32>
    %150 = arith.maximumf %148, %149 : vector<32x128xf32>
    %151 = arith.truncf %150 : vector<32x128xf32> to vector<32x128xbf16>
    %c0_72 = arith.constant 0 : index
    %c0_73 = arith.constant 0 : index
    %c0_74 = arith.constant 0 : index
    %152 = vector.load %arg21[%c0_72, %c0_73, %c0_74] : memref<5x128x128xbf16, #tpu.memory_space<vmem>>, vector<1x128x128xbf16>
    %153 = vector.shape_cast %152 : vector<1x128x128xbf16> to vector<128x128xbf16>
    %cst_75 = arith.constant dense<0.000000e+00> : vector<32x128xf32>
    %154 = tpu.matmul %151, %153, %cst_75 {dimension_numbers = #tpu.dot_dimension_numbers<[1], [0], [0], [1], [0, 0, 1, 1], [], []>} : vector<32x128xbf16>, vector<128x128xbf16>, vector<32x128xf32> -> vector<32x128xf32>
    %155 = arith.addf %138, %154 : vector<32x128xf32>
    %c0_76 = arith.constant 0 : index
    %c0_77 = arith.constant 0 : index
    %c0_78 = arith.constant 0 : index
    %156 = vector.load %arg22[%c0_76, %c0_77, %c0_78] : memref<5x1x128xf32, #tpu.memory_space<vmem>>, vector<1x1x128xf32>
    %157 = vector.shape_cast %156 : vector<1x1x128xf32> to vector<1x128xf32>
    %158 = vector.broadcast %157 : vector<1x128xf32> to vector<32x128xf32>
    %159 = arith.addf %155, %158 : vector<32x128xf32>
    %cst_79 = arith.constant 0.000000e+00 : f32
    %160 = vector.broadcast %cst_79 : f32 to vector<32x128xf32>
    %161 = arith.maximumf %159, %160 : vector<32x128xf32>
    %162 = arith.truncf %161 : vector<32x128xf32> to vector<32x128xbf16>
    %c1_80 = arith.constant 1 : index
    %c0_81 = arith.constant 0 : index
    %c0_82 = arith.constant 0 : index
    %163 = vector.load %arg19[%c1_80, %c0_81, %c0_82] : memref<5x128x128xbf16, #tpu.memory_space<vmem>>, vector<1x128x128xbf16>
    %164 = vector.shape_cast %163 : vector<1x128x128xbf16> to vector<128x128xbf16>
    %cst_83 = arith.constant dense<0.000000e+00> : vector<32x128xf32>
    %165 = tpu.matmul %162, %164, %cst_83 {dimension_numbers = #tpu.dot_dimension_numbers<[1], [0], [0], [1], [0, 0, 1, 1], [], []>} : vector<32x128xbf16>, vector<128x128xbf16>, vector<32x128xf32> -> vector<32x128xf32>
    %c1_84 = arith.constant 1 : index
    %c0_85 = arith.constant 0 : index
    %c0_86 = arith.constant 0 : index
    %166 = vector.load %arg20[%c1_84, %c0_85, %c0_86] : memref<5x1x128xf32, #tpu.memory_space<vmem>>, vector<1x1x128xf32>
    %167 = vector.shape_cast %166 : vector<1x1x128xf32> to vector<1x128xf32>
    %168 = vector.broadcast %167 : vector<1x128xf32> to vector<32x128xf32>
    %169 = arith.addf %165, %168 : vector<32x128xf32>
    %cst_87 = arith.constant 0.000000e+00 : f32
    %170 = vector.broadcast %cst_87 : f32 to vector<32x128xf32>
    %171 = arith.maximumf %169, %170 : vector<32x128xf32>
    %172 = arith.truncf %171 : vector<32x128xf32> to vector<32x128xbf16>
    %c1_88 = arith.constant 1 : index
    %c0_89 = arith.constant 0 : index
    %c0_90 = arith.constant 0 : index
    %173 = vector.load %arg21[%c1_88, %c0_89, %c0_90] : memref<5x128x128xbf16, #tpu.memory_space<vmem>>, vector<1x128x128xbf16>
    %174 = vector.shape_cast %173 : vector<1x128x128xbf16> to vector<128x128xbf16>
    %cst_91 = arith.constant dense<0.000000e+00> : vector<32x128xf32>
    %175 = tpu.matmul %172, %174, %cst_91 {dimension_numbers = #tpu.dot_dimension_numbers<[1], [0], [0], [1], [0, 0, 1, 1], [], []>} : vector<32x128xbf16>, vector<128x128xbf16>, vector<32x128xf32> -> vector<32x128xf32>
    %176 = arith.addf %159, %175 : vector<32x128xf32>
    %c1_92 = arith.constant 1 : index
    %c0_93 = arith.constant 0 : index
    %c0_94 = arith.constant 0 : index
    %177 = vector.load %arg22[%c1_92, %c0_93, %c0_94] : memref<5x1x128xf32, #tpu.memory_space<vmem>>, vector<1x1x128xf32>
    %178 = vector.shape_cast %177 : vector<1x1x128xf32> to vector<1x128xf32>
    %179 = vector.broadcast %178 : vector<1x128xf32> to vector<32x128xf32>
    %180 = arith.addf %176, %179 : vector<32x128xf32>
    %cst_95 = arith.constant 0.000000e+00 : f32
    %181 = vector.broadcast %cst_95 : f32 to vector<32x128xf32>
    %182 = arith.maximumf %180, %181 : vector<32x128xf32>
    %183 = arith.truncf %182 : vector<32x128xf32> to vector<32x128xbf16>
    %c2_96 = arith.constant 2 : index
    %c0_97 = arith.constant 0 : index
    %c0_98 = arith.constant 0 : index
    %184 = vector.load %arg19[%c2_96, %c0_97, %c0_98] : memref<5x128x128xbf16, #tpu.memory_space<vmem>>, vector<1x128x128xbf16>
    %185 = vector.shape_cast %184 : vector<1x128x128xbf16> to vector<128x128xbf16>
    %cst_99 = arith.constant dense<0.000000e+00> : vector<32x128xf32>
    %186 = tpu.matmul %183, %185, %cst_99 {dimension_numbers = #tpu.dot_dimension_numbers<[1], [0], [0], [1], [0, 0, 1, 1], [], []>} : vector<32x128xbf16>, vector<128x128xbf16>, vector<32x128xf32> -> vector<32x128xf32>
    %c2_100 = arith.constant 2 : index
    %c0_101 = arith.constant 0 : index
    %c0_102 = arith.constant 0 : index
    %187 = vector.load %arg20[%c2_100, %c0_101, %c0_102] : memref<5x1x128xf32, #tpu.memory_space<vmem>>, vector<1x1x128xf32>
    %188 = vector.shape_cast %187 : vector<1x1x128xf32> to vector<1x128xf32>
    %189 = vector.broadcast %188 : vector<1x128xf32> to vector<32x128xf32>
    %190 = arith.addf %186, %189 : vector<32x128xf32>
    %cst_103 = arith.constant 0.000000e+00 : f32
    %191 = vector.broadcast %cst_103 : f32 to vector<32x128xf32>
    %192 = arith.maximumf %190, %191 : vector<32x128xf32>
    %193 = arith.truncf %192 : vector<32x128xf32> to vector<32x128xbf16>
    %c2_104 = arith.constant 2 : index
    %c0_105 = arith.constant 0 : index
    %c0_106 = arith.constant 0 : index
    %194 = vector.load %arg21[%c2_104, %c0_105, %c0_106] : memref<5x128x128xbf16, #tpu.memory_space<vmem>>, vector<1x128x128xbf16>
    %195 = vector.shape_cast %194 : vector<1x128x128xbf16> to vector<128x128xbf16>
    %cst_107 = arith.constant dense<0.000000e+00> : vector<32x128xf32>
    %196 = tpu.matmul %193, %195, %cst_107 {dimension_numbers = #tpu.dot_dimension_numbers<[1], [0], [0], [1], [0, 0, 1, 1], [], []>} : vector<32x128xbf16>, vector<128x128xbf16>, vector<32x128xf32> -> vector<32x128xf32>
    %197 = arith.addf %180, %196 : vector<32x128xf32>
    %c2_108 = arith.constant 2 : index
    %c0_109 = arith.constant 0 : index
    %c0_110 = arith.constant 0 : index
    %198 = vector.load %arg22[%c2_108, %c0_109, %c0_110] : memref<5x1x128xf32, #tpu.memory_space<vmem>>, vector<1x1x128xf32>
    %199 = vector.shape_cast %198 : vector<1x1x128xf32> to vector<1x128xf32>
    %200 = vector.broadcast %199 : vector<1x128xf32> to vector<32x128xf32>
    %201 = arith.addf %197, %200 : vector<32x128xf32>
    %cst_111 = arith.constant 0.000000e+00 : f32
    %202 = vector.broadcast %cst_111 : f32 to vector<32x128xf32>
    %203 = arith.maximumf %201, %202 : vector<32x128xf32>
    %204 = arith.truncf %203 : vector<32x128xf32> to vector<32x128xbf16>
    %c3 = arith.constant 3 : index
    %c0_112 = arith.constant 0 : index
    %c0_113 = arith.constant 0 : index
    %205 = vector.load %arg19[%c3, %c0_112, %c0_113] : memref<5x128x128xbf16, #tpu.memory_space<vmem>>, vector<1x128x128xbf16>
    %206 = vector.shape_cast %205 : vector<1x128x128xbf16> to vector<128x128xbf16>
    %cst_114 = arith.constant dense<0.000000e+00> : vector<32x128xf32>
    %207 = tpu.matmul %204, %206, %cst_114 {dimension_numbers = #tpu.dot_dimension_numbers<[1], [0], [0], [1], [0, 0, 1, 1], [], []>} : vector<32x128xbf16>, vector<128x128xbf16>, vector<32x128xf32> -> vector<32x128xf32>
    %c3_115 = arith.constant 3 : index
    %c0_116 = arith.constant 0 : index
    %c0_117 = arith.constant 0 : index
    %208 = vector.load %arg20[%c3_115, %c0_116, %c0_117] : memref<5x1x128xf32, #tpu.memory_space<vmem>>, vector<1x1x128xf32>
    %209 = vector.shape_cast %208 : vector<1x1x128xf32> to vector<1x128xf32>
    %210 = vector.broadcast %209 : vector<1x128xf32> to vector<32x128xf32>
    %211 = arith.addf %207, %210 : vector<32x128xf32>
    %cst_118 = arith.constant 0.000000e+00 : f32
    %212 = vector.broadcast %cst_118 : f32 to vector<32x128xf32>
    %213 = arith.maximumf %211, %212 : vector<32x128xf32>
    %214 = arith.truncf %213 : vector<32x128xf32> to vector<32x128xbf16>
    %c3_119 = arith.constant 3 : index
    %c0_120 = arith.constant 0 : index
    %c0_121 = arith.constant 0 : index
    %215 = vector.load %arg21[%c3_119, %c0_120, %c0_121] : memref<5x128x128xbf16, #tpu.memory_space<vmem>>, vector<1x128x128xbf16>
    %216 = vector.shape_cast %215 : vector<1x128x128xbf16> to vector<128x128xbf16>
    %cst_122 = arith.constant dense<0.000000e+00> : vector<32x128xf32>
    %217 = tpu.matmul %214, %216, %cst_122 {dimension_numbers = #tpu.dot_dimension_numbers<[1], [0], [0], [1], [0, 0, 1, 1], [], []>} : vector<32x128xbf16>, vector<128x128xbf16>, vector<32x128xf32> -> vector<32x128xf32>
    %218 = arith.addf %201, %217 : vector<32x128xf32>
    %c3_123 = arith.constant 3 : index
    %c0_124 = arith.constant 0 : index
    %c0_125 = arith.constant 0 : index
    %219 = vector.load %arg22[%c3_123, %c0_124, %c0_125] : memref<5x1x128xf32, #tpu.memory_space<vmem>>, vector<1x1x128xf32>
    %220 = vector.shape_cast %219 : vector<1x1x128xf32> to vector<1x128xf32>
    %221 = vector.broadcast %220 : vector<1x128xf32> to vector<32x128xf32>
    %222 = arith.addf %218, %221 : vector<32x128xf32>
    %cst_126 = arith.constant 0.000000e+00 : f32
    %223 = vector.broadcast %cst_126 : f32 to vector<32x128xf32>
    %224 = arith.maximumf %222, %223 : vector<32x128xf32>
    %225 = arith.truncf %224 : vector<32x128xf32> to vector<32x128xbf16>
    %c4 = arith.constant 4 : index
    %c0_127 = arith.constant 0 : index
    %c0_128 = arith.constant 0 : index
    %226 = vector.load %arg19[%c4, %c0_127, %c0_128] : memref<5x128x128xbf16, #tpu.memory_space<vmem>>, vector<1x128x128xbf16>
    %227 = vector.shape_cast %226 : vector<1x128x128xbf16> to vector<128x128xbf16>
    %cst_129 = arith.constant dense<0.000000e+00> : vector<32x128xf32>
    %228 = tpu.matmul %225, %227, %cst_129 {dimension_numbers = #tpu.dot_dimension_numbers<[1], [0], [0], [1], [0, 0, 1, 1], [], []>} : vector<32x128xbf16>, vector<128x128xbf16>, vector<32x128xf32> -> vector<32x128xf32>
    %c4_130 = arith.constant 4 : index
    %c0_131 = arith.constant 0 : index
    %c0_132 = arith.constant 0 : index
    %229 = vector.load %arg20[%c4_130, %c0_131, %c0_132] : memref<5x1x128xf32, #tpu.memory_space<vmem>>, vector<1x1x128xf32>
    %230 = vector.shape_cast %229 : vector<1x1x128xf32> to vector<1x128xf32>
    %231 = vector.broadcast %230 : vector<1x128xf32> to vector<32x128xf32>
    %232 = arith.addf %228, %231 : vector<32x128xf32>
    %cst_133 = arith.constant 0.000000e+00 : f32
    %233 = vector.broadcast %cst_133 : f32 to vector<32x128xf32>
    %234 = arith.maximumf %232, %233 : vector<32x128xf32>
    %235 = arith.truncf %234 : vector<32x128xf32> to vector<32x128xbf16>
    %c4_134 = arith.constant 4 : index
    %c0_135 = arith.constant 0 : index
    %c0_136 = arith.constant 0 : index
    %236 = vector.load %arg21[%c4_134, %c0_135, %c0_136] : memref<5x128x128xbf16, #tpu.memory_space<vmem>>, vector<1x128x128xbf16>
    %237 = vector.shape_cast %236 : vector<1x128x128xbf16> to vector<128x128xbf16>
    %cst_137 = arith.constant dense<0.000000e+00> : vector<32x128xf32>
    %238 = tpu.matmul %235, %237, %cst_137 {dimension_numbers = #tpu.dot_dimension_numbers<[1], [0], [0], [1], [0, 0, 1, 1], [], []>} : vector<32x128xbf16>, vector<128x128xbf16>, vector<32x128xf32> -> vector<32x128xf32>
    %239 = arith.addf %222, %238 : vector<32x128xf32>
    %c4_138 = arith.constant 4 : index
    %c0_139 = arith.constant 0 : index
    %c0_140 = arith.constant 0 : index
    %240 = vector.load %arg22[%c4_138, %c0_139, %c0_140] : memref<5x1x128xf32, #tpu.memory_space<vmem>>, vector<1x1x128xf32>
    %241 = vector.shape_cast %240 : vector<1x1x128xf32> to vector<1x128xf32>
    %242 = vector.broadcast %241 : vector<1x128xf32> to vector<32x128xf32>
    %243 = arith.addf %239, %242 : vector<32x128xf32>
    %cst_141 = arith.constant 0.000000e+00 : f32
    %244 = vector.broadcast %cst_141 : f32 to vector<32x128xf32>
    %245 = arith.maximumf %243, %244 : vector<32x128xf32>
    %246 = vector.shape_cast %245 : vector<32x128xf32> to vector<2x16x128xf32>
    %c0_142 = arith.constant 0 : index
    %c0_143 = arith.constant 0 : index
    %c0_144 = arith.constant 0 : index
    %247 = vector.load %arg23[%c0_142, %c0_143, %c0_144] : memref<1x1x128xf32, #tpu.memory_space<vmem>>, vector<1x1x128xf32>
    %248 = vector.broadcast %247 : vector<1x1x128xf32> to vector<2x16x128xf32>
    %249 = arith.mulf %246, %248 : vector<2x16x128xf32>
    %cst_145 = arith.constant dense<0.000000e+00> : vector<2x16xf32>
    %250 = vector.multi_reduction <add>, %249, %cst_145 [2] : vector<2x16x128xf32> to vector<2x16xf32>
    %c0_146 = arith.constant 0 : index
    %c0_147 = arith.constant 0 : index
    %251 = vector.load %arg24[%c0_146, %c0_147] : memref<1x1xf32, #tpu.memory_space<vmem>>, vector<1x1xf32>
    %252 = vector.broadcast %251 : vector<1x1xf32> to vector<2x16xf32>
    %253 = arith.addf %250, %252 : vector<2x16xf32>
    %c0_148 = arith.constant 0 : index
    %c0_149 = arith.constant 0 : index
    %254 = vector.load %arg26[%c0_148, %c0_149] : memref<2x16xf32, #tpu.memory_space<vmem>>, vector<2x16xf32>
    tpu.vector_store %arg26[%c0_148, %c0_149], %253 {strides = array<i32>} : memref<2x16xf32, #tpu.memory_space<vmem>>, vector<2x16xf32>,
    return
  }
}

</mosaic_0001>

<bundles_post_ra>
// kernel: get_model_forward.1
= control target key start
LH: loop header
LB: loop body
LE: loop exit
PB: predicated region body
PF: predicated region fallthrough
CT: control target
= control target key end

     0   :  { %s9399_s0 = inlined_call_operand.vmem [shape: f32[2,3,64], index: 0, kind: input, shape index: {}]   ;;  %s9400_s1 = inlined_call_operand.vmem [shape: f32[2,16,3], index: 1, kind: input, shape index: {}]   ;;  %s9401_s2 = inlined_call_operand.vmem [shape: f32[64,3], index: 2, kind: input, shape index: {}]   ;;  %s9402_s3 = inlined_call_operand.vmem [shape: f32[64,1], index: 3, kind: input, shape index: {}]   ;;  %s9403_s4 = inlined_call_operand.vmem [shape: bf16[64,64], index: 4, kind: input, shape index: {}]   ;;  %s9404_s5 = inlined_call_operand.vmem [shape: f32[1,64], index: 5, kind: input, shape index: {}]   ;;  %s9405_s6 = inlined_call_operand.vmem [shape: bf16[64,64], index: 6, kind: input, shape index: {}]   ;;  %s9406_s7 = inlined_call_operand.vmem [shape: f32[1,64], index: 7, kind: input, shape index: {}]   ;;  %s9407_s8 = inlined_call_operand.vmem [shape: bf16[64,128], index: 8, kind: input, shape index: {}]   ;;  %s9408_s9 = inlined_call_operand.vmem [shape: f32[1,128], index: 9, kind: input, shape index: {}]   ;;  %s9409_s10 = inlined_call_operand.hbm [shape: bf16[128,1024], index: 10, kind: input, shape index: {}]   ;;  %s9410_s11 = inlined_call_operand.vmem [shape: f32[1,1024], index: 11, kind: input, shape index: {}]   ;;  %s9411_s12 = inlined_call_operand.hbm [shape: bf16[1024,512], index: 12, kind: input, shape index: {}]   ;;  %s9412_s13 = inlined_call_operand.vmem [shape: f32[1,512], index: 13, kind: input, shape index: {}]   ;;  %s9413_s14 = inlined_call_operand.hbm [shape: bf16[512,128], index: 14, kind: input, shape index: {}]   ;;  %s9414_s15 = inlined_call_operand.vmem [shape: f32[1,128], index: 15, kind: input, shape index: {}]   ;;  %s9415_s16 = inlined_call_operand.vmem [shape: f32[3,128], index: 16, kind: input, shape index: {}]   ;;  %s9416_s17 = inlined_call_operand.vmem [shape: bf16[128,128], index: 17, kind: input, shape index: {}]   ;;  %s9417_s18 = inlined_call_operand.vmem [shape: f32[1,128], index: 18, kind: input, shape index: {}]   ;;  %s9418_s19 = inlined_call_operand.hbm [shape: bf16[5,128,128], index: 19, kind: input, shape index: {}]   ;;  %s9419_s20 = inlined_call_operand.vmem [shape: f32[5,1,128], index: 20, kind: input, shape index: {}]   ;;  %s9420_s21 = inlined_call_operand.hbm [shape: bf16[5,128,128], index: 21, kind: input, shape index: {}]   ;;  %s9421_s22 = inlined_call_operand.vmem [shape: f32[5,1,128], index: 22, kind: input, shape index: {}]   ;;  %s9422_s23 = inlined_call_operand.vmem [shape: f32[1,1,128], index: 23, kind: input, shape index: {}]   ;;  %s9423_s24 = inlined_call_operand.<no memory space> [shape: f32[1,1], index: 24, kind: input, shape index: {}]   ;;  %s9424_s25 = inlined_call_operand.hbm [shape: f32[2,128], index: 25, kind: output, shape index: {0}]   ;;  %s9425_s26 = inlined_call_operand.hbm [shape: f32[2,16], index: 26, kind: output, shape index: {1}]  }
   0x1   :  { %9466 = sst [smem:[#allocation43_spill]] %s9399_s0  ;;  %v32_v0 = vstv %s9423_s24 }
   0x2   :  { %9467 = sst [smem:[#allocation44_spill]] %s9400_s1  ;;  %33 = vst [vmem:[#allocation2] sm:$0x1] %v32_v0 }
   0x3   :  { %9468 = sst [smem:[#allocation45_spill]] %s9401_s2 }
   0x4   :  { %9469 = sst [smem:[#allocation46_spill]] %s9402_s3 }
   0x5   :  { %9470 = sst [smem:[#allocation47_spill]] %s9403_s4 }
   0x6   :  { %9471 = sst [smem:[#allocation48_spill]] %s9404_s5 }
   0x7   :  { %9472 = sst [smem:[#allocation49_spill]] %s9405_s6 }
   0x8   :  { %9473 = sst [smem:[#allocation50_spill]] %s9406_s7 }
   0x9   :  { %9474 = sst [smem:[#allocation51_spill]] %s9407_s8 }
   0xa   :  { %9475 = sst [smem:[#allocation52_spill]] %s9408_s9 }
   0xb   :  { %9476 = sst [smem:[#allocation53_spill]] %s9409_s10 }
   0xc   :  { %34 = vsyncpa [#allocation4], 0 }
   0xd   :  { %35 = vsyncpa [#allocation7], 0 }
   0xe   :  { %36 = vsyncpa [#allocation10], 0 }
   0xf   :  { %37 = vsyncpa [#allocation5], 0 }
  0x10   :  { %38 = vsyncpa [#allocation14], 0  ;;  %s8061_s7 = smov [#allocation6]   ;;  %s7897_s29 = scalar_lea.hbm %s9411_s12, 32768 }
  0x11   :  { %s78_s28 = sshll.u32 %s8061_s7, 4  ;;  %p7898_p0 = scmp.ne.s32.totalorder %s9411_s12, %s7897_s29  ;;  %s79_s28 = int_to_ptr.vmem [resolvable:$true] %s78_s28 }
  0x12   :  { %p7901_p1 = scmp.lt.u32.totalorder %s7897_s29, %s9411_s12 }
  0x14   :  { %p7903_p2 = pnand %p7901_p1, %p7898_p0 }
  0x16   :  { %7906 = shalt.err (!%p7903_p2)
}
  0x17   :  { %s7907_s24 = scalar_lea.vmem %s79_s28, 32768  ;;  %p7912_p4 = scmp.lt.s32.totalorder %s79_s28, %s79_s28 }
  0x18   :  { %p7908_p3 = scmp.ne.s32.totalorder %s79_s28, %s7907_s24  ;;  %p7913_p5 = scmp.lt.s32.totalorder %s7907_s24, %s7907_s24 }
  0x1a   :  { %p7914_p6 = por %p7913_p5, %p7912_p4 }
  0x1c   :  { %p7915_p7 = pnand %p7914_p6, %p7908_p3 }
  0x1e   :  { %7918 = shalt.err (!%p7915_p7)
}
  0x1f   :  { %s8062_s5 = smov 256   ;;  %s8063_s10 = smov 16  }
  0x20   :  { %84 = dma.hbm_to_vmem [thread:$0]  %s9411_s12, 32768, %s79_s28, [#allocation7], %s8062_s5, %s8062_s5, %s8063_s10  }
  0x21   :  { %s8064_s27 = smov [#allocation9]   ;;  %s8065_s7 = smov [#allocation3]  }
  0x22   :  { %s112_s3 = sshll.u32 %s8064_s27, 4  ;;  %s64_s8 = sshll.u32 %s8065_s7, 4  ;;  %s113_s3 = int_to_ptr.vmem [resolvable:$true] %s112_s3  ;;  %s65_s8 = int_to_ptr.vmem [resolvable:$true] %s64_s8 }
  0x23   :  { %s7919_s0 = scalar_lea.hbm %s9418_s19, 5120 }
  0x24   :  { %p7920_p8 = scmp.ne.s32.totalorder %s9418_s19, %s7919_s0  ;;  %p7923_p9 = scmp.lt.u32.totalorder %s7919_s0, %s9418_s19 }
  0x26   :  { %p7925_p10 = pnand %p7923_p9, %p7920_p8 }
  0x28   :  { %7928 = shalt.err (!%p7925_p10)
}
  0x29   :  { %s7929_s12 = scalar_lea.vmem %s113_s3, 5120  ;;  %p7934_p12 = scmp.lt.s32.totalorder %s113_s3, %s113_s3 }
  0x2a   :  { %p7930_p11 = scmp.ne.s32.totalorder %s113_s3, %s7929_s12  ;;  %p7935_p13 = scmp.lt.s32.totalorder %s7929_s12, %s7929_s12 }
  0x2c   :  { %p7936_p0 = por %p7935_p13, %p7934_p12 }
  0x2e   :  { %p7937_p1 = pnand %p7936_p0, %p7930_p11 }
  0x30   :  { %7940 = shalt.err (!%p7937_p1)
}
  0x31   :  { %s9434_s28 = smov 64   ;;  %s8067_s5 = smov 4  }
  0x32   :  { %118 = dma.hbm_to_vmem [thread:$0]  %s9418_s19, 5120, %s113_s3, [#allocation10], %s9434_s28, %s9434_s28, %s8067_s5  }
  0x33   :  { %s9477_s7 = sld [smem:[#allocation53_spill]] }
  0x39   :  { %s7941_s4 = scalar_lea.hbm %s9477_s7, 8192 }
  0x3a   :  { %p7942_p2 = scmp.ne.s32.totalorder %s9477_s7, %s7941_s4  ;;  %p7945_p3 = scmp.lt.u32.totalorder %s7941_s4, %s9477_s7 }
  0x3c   :  { %p7947_p4 = pnand %p7945_p3, %p7942_p2 }
  0x3e   :  { %7950 = shalt.err (!%p7947_p4)
}
  0x3f   :  { %s7951_s2 = scalar_lea.vmem %s65_s8, 8192  ;;  %p7956_p6 = scmp.lt.s32.totalorder %s65_s8, %s65_s8 }
  0x40   :  { %p7952_p5 = scmp.ne.s32.totalorder %s65_s8, %s7951_s2  ;;  %p7957_p7 = scmp.lt.s32.totalorder %s7951_s2, %s7951_s2 }
  0x42   :  { %p7958_p8 = por %p7957_p7, %p7956_p6 }
  0x44   :  { %p7959_p9 = pnand %p7958_p8, %p7952_p5 }
  0x46   :  { %7962 = shalt.err (!%p7959_p9)
}
  0x47   :  { %s8068_s19 = smov 512   ;;  %s8069_s3 = smov 32  }
  0x48   :  { %70 = dma.hbm_to_vmem [thread:$0]  %s9477_s7, 8192, %s65_s8, [#allocation4], %s8068_s19, %s8068_s19, %s8069_s3  }
  0x49   :  { %s8070_s10 = smov [#allocation8]   ;;  %s8071_s1 = smov [#allocation11]  }
  0x4a   :  { %s92_s6 = sshll.u32 %s8070_s10, 4  ;;  %s126_s27 = sshll.u32 %s8071_s1, 4  ;;  %s93_s6 = int_to_ptr.vmem [resolvable:$true] %s92_s6  ;;  %s127_s27 = int_to_ptr.vmem [resolvable:$true] %s126_s27 }
  0x4b   :  { %s7963_s0 = scalar_lea.hbm %s9413_s14, 4096 }
  0x4c   :  { %p7964_p10 = scmp.ne.s32.totalorder %s9413_s14, %s7963_s0  ;;  %p7967_p11 = scmp.lt.u32.totalorder %s7963_s0, %s9413_s14 }
  0x4e   :  { %p7969_p12 = pnand %p7967_p11, %p7964_p10 }
  0x50   :  { %7972 = shalt.err (!%p7969_p12)
}
  0x51   :  { %s7973_s8 = scalar_lea.vmem %s93_s6, 4096  ;;  %p7978_p0 = scmp.lt.s32.totalorder %s93_s6, %s93_s6 }
  0x52   :  { %p7974_p13 = scmp.ne.s32.totalorder %s93_s6, %s7973_s8  ;;  %p7979_p1 = scmp.lt.s32.totalorder %s7973_s8, %s7973_s8 }
  0x54   :  { %p7980_p2 = por %p7979_p1, %p7978_p0 }
  0x56   :  { %p7981_p3 = pnand %p7980_p2, %p7974_p13 }
  0x58   :  { %7984 = shalt.err (!%p7981_p3)
}
  0x59   :  { %s9478_s7 = smov 64   ;;  %s7985_s12 = scalar_lea.hbm %s9420_s21, 5120 }
  0x5a   :  { %98 = dma.hbm_to_vmem [thread:$0]  %s9413_s14, 4096, %s93_s6, [#allocation7], %s9478_s7, %s9478_s7, %s8067_s5  }
  0x5b   :  { %p7986_p4 = scmp.ne.s32.totalorder %s9420_s21, %s7985_s12  ;;  %p7989_p5 = scmp.lt.u32.totalorder %s7985_s12, %s9420_s21 }
  0x5d   :  { %p7991_p6 = pnand %p7989_p5, %p7986_p4 }
  0x5f   :  { %7994 = shalt.err (!%p7991_p6)
}
  0x60   :  { %s7995_s0 = scalar_lea.vmem %s127_s27, 5120  ;;  %p8000_p8 = scmp.lt.s32.totalorder %s127_s27, %s127_s27 }
  0x61   :  { %p7996_p7 = scmp.ne.s32.totalorder %s127_s27, %s7995_s0  ;;  %p8001_p9 = scmp.lt.s32.totalorder %s7995_s0, %s7995_s0 }
  0x63   :  { %p8002_p10 = por %p8001_p9, %p8000_p8 }
  0x65   :  { %p8003_p11 = pnand %p8002_p10, %p7996_p7 }
  0x67   :  { %8006 = shalt.err (!%p8003_p11)
}
  0x68   :  { %132 = dma.hbm_to_vmem [thread:$0]  %s9420_s21, 5120, %s127_s27, [#allocation10], %s9478_s7, %s9478_s7, %s8067_s5  }
  0x69   :  { %8051 = dma.done.wait [#allocation4], 8192  }
  0x6a   :  { %8052 = vsyncadd [#allocation4], 4294959104 }
  0x6b   :  { %8053 = dma.done.wait [#allocation7], 36864  }
  0x6c   :  { %8054 = vsyncadd [#allocation7], 4294930432 }
  0x6d   :  { %8055 = dma.done.wait [#allocation10], 10240  }
  0x6e   :  { %8056 = vsyncadd [#allocation10], 4294957056  ;;  %v8072_v1 = vmov 2   ;;  %v9437_v2 = vmov 0   ;;  %s9479_s2 = sld [smem:[#allocation45_spill]]  ;;  %v8074_v6 = vmov 1   ;;  %v9436_v19 = vlaneseq }
  0x6f   :  { %7364 = vset.pattern.permute.xlu0 %v8072_v1  ;;  %7358 = vset.pattern.permute.xlu1 %v9437_v2  ;;  %s9480_s9 = sld [smem:[#allocation46_spill]]  ;;  %s9485_s29 = sld [smem:[#allocation43_spill]]  ;;  %vm405_vm0 = vcmask 523264   ;;  %vm2416_vm1 = vcmask 1040384   ;;  %vm8076_vm2 = vmmov 0  }
  0x70   :  { %v8353_v20 = vshrl.u32 %v9436_v19, 7  ;;  %s9486_s8 = sld [smem:[#allocation44_spill]]  ;;  %s9487_s12 = sld [smem:[#allocation47_spill]]  ;;  %v1104_v19 = vld [vmem:[#allocation3 + $0x110] sm:$0xff] }
  0x71   :  { %s9490_s0 = sld [smem:[#allocation48_spill]]  ;;  %s9492_s21 = sld [smem:[#allocation52_spill]] }
  0x72   :  { %9481 = vst [vmem:[#allocation20_spill] sm:$0xff] %v8353_v20  ;;  %v8356_v21 = vsub.s32 0, %v8353_v20  ;;  %v8359_v22 = vsub.s32 2, %v8353_v20  ;;  %v8362_v23 = vsub.s32 1, %v8353_v20  ;;  %v1109_v20 = vld [vmem:[#allocation3 + $0x138] sm:$0xff] }
  0x74   :  { %v159_v3 = vld [vmem:[%s9479_s2 + $0x10] sm:$0xff]  ;;  %v158_v4 = vld [vmem:[%s9479_s2 + $0x8] sm:$0xff]  ;;  %v160_v5 = vld [vmem:[%s9479_s2 + $0x18] sm:$0xff]  ;;  %9482 = vst [vmem:[#allocation21_spill] sm:$0xff] %v8356_v21 }
  0x75   :  { %278 = vperm.xlu0 %7364, %v159_v3   ;;  %172 = vperm.xlu1 %7358, %v158_v4   ;;  %v157_v7 = vld [vmem:[%s9479_s2] sm:$0xff]  ;;  %v162_v8 = vld [vmem:[%s9479_s2 + $0x28] sm:$0xff]  ;;  %v163_v9 = vld [vmem:[%s9479_s2 + $0x30] sm:$0xff]  ;;  %9483 = vst [vmem:[#allocation22_spill] sm:$0xff] %v8359_v22 }
  0x76   :  { %v161_v10 = vld [vmem:[%s9479_s2 + $0x20] sm:$0xff]  ;;  %v164_v11 = vld [vmem:[%s9479_s2 + $0x38] sm:$0xff]  ;;  %v416_v12 = vld [vmem:[%s9480_s9 + $0x10] sm:$0xff]  ;;  %9484 = vst [vmem:[#allocation23_spill] sm:$0xff] %v8362_v23  ;;  %s9491_s2 = sld [smem:[#allocation50_spill]] }
  0x77   :  { %v414_v13 = vld [vmem:[%s9480_s9] sm:$0xff]  ;;  %v415_v14 = vld [vmem:[%s9480_s9 + $0x8] sm:$0xff]  ;;  %v417_v15 = vld [vmem:[%s9480_s9 + $0x18] sm:$0xff] }
  0x78   :  { %v418_v16 = vld [vmem:[%s9480_s9 + $0x20] sm:$0xff]  ;;  %v419_v17 = vld [vmem:[%s9480_s9 + $0x28] sm:$0xff]  ;;  %v420_v18 = vld [vmem:[%s9480_s9 + $0x30] sm:$0xff] }
  0x79   :  { %282 = vperm.xlu0 %7364, %v160_v5   ;;  %7359 = vset.pattern.permute.xlu1 %v8074_v6  ;;  %v155_v24 = vld [vmem:[%s9485_s29] sm:$0x7]  ;;  %v156_v34 = vld [vmem:[%s9485_s29 + $0x4] sm:$0x7] }
  0x7a   :  { %222 = vperm.xlu1 %7359, %v158_v4   ;;  %v8368_v27 = vrot.slane %v155_v24, %v8356_v21  ;;  %v8371_v28 = vrot.slane %v155_v24, %v8362_v23  ;;  %v8379_v37 = vrot.slane %v156_v34, %v8362_v23  ;;  %v8384_v39 = vrot.slane %v156_v34, %v8356_v21  ;;  %v1108_v21 = vld [vmem:[#allocation3 + $0x130] sm:$0xff] }
  0x7b   :  { %v8391_v44 = vrot.slane %v155_v24, %v8359_v22  ;;  %v8394_v45 = vrot.slane %v156_v34, %v8359_v22  ;;  %v1105_v22 = vld [vmem:[#allocation3 + $0x118] sm:$0xff] }
  0x7d   :  { %7367 = vset.pattern.permute.xlu0 %v8074_v6 }
  0x7e   :  { %7360 = vset.pattern.permute.xlu1 %v8072_v1  ;;  %218 = vperm.xlu0 %7367, %v157_v7  }
  0x7f   :  { %270 = vperm.xlu1 %7360, %v157_v7  }
  0x82   :  { %238 = vperm.xlu0 %7367, %v162_v8  }
  0x83   :  { %7361 = vset.pattern.permute.xlu1 %v8074_v6 }
  0x84   :  { %226 = vperm.xlu1 %7361, %v159_v3  }
  0x86   :  { %242 = vperm.xlu0 %7367, %v163_v9  }
  0x88   :  { %7362 = vset.pattern.permute.xlu1 %v8072_v1 }
  0x89   :  { %274 = vperm.xlu1 %7362, %v158_v4  }
  0x8a   :  { %7371 = vset.pattern.permute.xlu0 %v9437_v2 }
  0x8b   :  { %167 = vperm.xlu0 %7371, %v157_v7  }
  0x8d   :  { %7363 = vset.pattern.permute.xlu1 %v8074_v6 }
  0x8e   :  { %230 = vperm.xlu1 %7363, %v160_v5  }
  0x8f   :  { %177 = vperm.xlu0 %7371, %v159_v3  }
  0x92   :  { %7365 = vset.pattern.permute.xlu1 %v9437_v2 }
  0x93   :  { %182 = vperm.xlu0 %7371, %v160_v5   ;;  %187 = vperm.xlu1 %7365, %v161_v10  }
  0x97   :  { %7366 = vset.pattern.permute.xlu1 %v8074_v6  ;;  %202 = vperm.xlu0 %7371, %v164_v11  }
  0x98   :  { %234 = vperm.xlu1 %7366, %v161_v10  }
  0x9b   :  { %7375 = vset.pattern.permute.xlu0 %v8072_v1 }
  0x9c   :  { %7368 = vset.pattern.permute.xlu1 %v9437_v2  ;;  %298 = vperm.xlu0 %7375, %v164_v11  }
  0x9d   :  { %192 = vperm.xlu1 %7368, %v162_v8  }
  0xa0   :  { %7377 = vset.pattern.permute.xlu0 %v9437_v2 }
  0xa1   :  { %7369 = vset.pattern.permute.xlu1 %v8072_v1  ;;  %434 = vperm.xlu0 %7377, %v416_v12  }
  0xa2   :  { %286 = vperm.xlu1 %7369, %v161_v10  }
  0xa6   :  { %7370 = vset.pattern.permute.xlu1 %v9437_v2 }
  0xa7   :  { %197 = vperm.xlu1 %7370, %v163_v9  }
  0xab   :  { %7372 = vset.pattern.permute.xlu1 %v8072_v1 }
  0xac   :  { %290 = vperm.xlu1 %7372, %v162_v8   ;;  %v421_v8 = vld [vmem:[%s9480_s9 + $0x38] sm:$0xff]  ;;  %s9488_s9 = sld [smem:[#allocation49_spill]] }
  0xb0   :  { %7373 = vset.pattern.permute.xlu1 %v8074_v6 }
  0xb1   :  { %246 = vperm.xlu1 %7373, %v164_v11  }
  0xb5   :  { %7374 = vset.pattern.permute.xlu1 %v8072_v1 }
  0xb6   :  { %294 = vperm.xlu1 %7374, %v163_v9  }
  0xba   :  { %7376 = vset.pattern.permute.xlu1 %v9437_v2 }
  0xbb   :  { %424 = vperm.xlu1 %7376, %v414_v13  }
  0xbf   :  { %429 = vperm.xlu1 %7376, %v415_v14  }
  0xc3   :  { %439 = vperm.xlu1 %7376, %v417_v15  }
  0xc7   :  { %444 = vperm.xlu1 %7376, %v418_v16  }
  0xcb   :  { %449 = vperm.xlu1 %7376, %v419_v17  }
  0xcf   :  { %454 = vperm.xlu1 %7376, %v420_v18  }
  0xf4   :  { %v173_v25 = vpop.permute.xlu1 %172  ;;  %v279_v26 = vpop.permute.xlu0 %278 }
  0xf5   :  { %v210_v31 = vmul.f32 %v8368_v27, %v173_v25  ;;  %v326_v43 = vmul.f32 %v8384_v39, %v173_v25  ;;  %v307_v9 = vmul.f32 %v8391_v44, %v279_v26  ;;  %v359_v12 = vmul.f32 %v8394_v45, %v279_v26 }
  0xf8   :  { %v283_v29 = vpop.permute.xlu0 %282 }
  0xf9   :  { %v223_v30 = vpop.permute.xlu1 %222 }
  0xfa   :  { %v254_v32 = vmul.f32 %v8371_v28, %v223_v30  ;;  %v338_v41 = vmul.f32 %v8379_v37, %v223_v30  ;;  %v308_v30 = vmul.f32 %v8391_v44, %v283_v29 }
  0xfc   :  { %v262_v33 = vadd.f32 %v254_v32, %v210_v31  ;;  %v346_v47 = vadd.f32 %v338_v41, %v326_v43  ;;  %v360_v31 = vmul.f32 %v8394_v45, %v283_v29 }
  0xfd   :  { %v219_v35 = vpop.permute.xlu0 %218 }
  0xfe   :  { %v271_v36 = vpop.permute.xlu1 %270  ;;  %v253_v48 = vmul.f32 %v8371_v28, %v219_v35  ;;  %v337_v49 = vmul.f32 %v8379_v37, %v219_v35 }
  0xff   :  { %v305_v57 = vmul.f32 %v8391_v44, %v271_v36  ;;  %v357_v58 = vmul.f32 %v8394_v45, %v271_v36 }
 0x101   :  { %v8381_v38 = vpop.permute.xlu0 %238 }
 0x102   :  { %v258_v29 = vmul.f32 %v8371_v28, %v8381_v38 }
 0x103   :  { %v227_v40 = vpop.permute.xlu1 %226 }
 0x104   :  { %v255_v62 = vmul.f32 %v8371_v28, %v227_v40  ;;  %v339_v63 = vmul.f32 %v8379_v37, %v227_v40 }
 0x105   :  { %v8387_v42 = vpop.permute.xlu0 %242 }
 0x108   :  { %v275_v46 = vpop.permute.xlu1 %274 }
 0x109   :  { %v306_v50 = vmul.f32 %v8391_v44, %v275_v46  ;;  %v358_v51 = vmul.f32 %v8394_v45, %v275_v46 }
 0x10a   :  { %v168_v52 = vpop.permute.xlu0 %167 }
 0x10b   :  { %v8400_v53 = vadd.f32 %v306_v50, %v262_v33  ;;  %v209_v54 = vmul.f32 %v8368_v27, %v168_v52  ;;  %v325_v55 = vmul.f32 %v8384_v39, %v168_v52  ;;  %v366_v56 = vadd.f32 %v358_v51, %v346_v47 }
 0x10d   :  { %v261_v59 = vadd.f32 %v253_v48, %v209_v54  ;;  %v231_v60 = vpop.permute.xlu1 %230  ;;  %383 = vrot.lane.b32.xlu0 %v366_v56, %s9478_s7  ;;  %v345_v61 = vadd.f32 %v337_v49, %v325_v55 }
 0x10e   :  { %v178_v0 = vpop.permute.xlu0 %177  ;;  %v256_v13 = vmul.f32 %v8371_v28, %v231_v60  ;;  %v340_v16 = vmul.f32 %v8379_v37, %v231_v60 }
 0x10f   :  { %v8409_v3 = vadd.f32 %v305_v57, %v261_v59  ;;  %v211_v4 = vmul.f32 %v8368_v27, %v178_v0  ;;  %v327_v5 = vmul.f32 %v8384_v39, %v178_v0  ;;  %v365_v7 = vadd.f32 %v357_v58, %v345_v61 }
 0x110   :  { %v259_v58 = vmul.f32 %v8371_v28, %v8387_v42 }
 0x111   :  { %v263_v10 = vadd.f32 %v255_v62, %v211_v4  ;;  %381 = vrot.lane.b32.xlu1 %v365_v7, %s9478_s7  ;;  %v347_v11 = vadd.f32 %v339_v63, %v327_v5  ;;  %v342_v62 = vmul.f32 %v8379_v37, %v8381_v38 }
 0x112   :  { %v183_v14 = vpop.permute.xlu0 %182  ;;  %v188_v15 = vpop.permute.xlu1 %187 }
 0x113   :  { %v8421_v17 = vadd.f32 %v307_v9, %v263_v10  ;;  %v212_v18 = vmul.f32 %v8368_v27, %v183_v14  ;;  %v328_v24 = vmul.f32 %v8384_v39, %v183_v14  ;;  %v367_v25 = vadd.f32 %v359_v12, %v347_v11 }
 0x114   :  { %v213_v36 = vmul.f32 %v8368_v27, %v188_v15  ;;  %v329_v49 = vmul.f32 %v8384_v39, %v188_v15 }
 0x115   :  { %v264_v32 = vadd.f32 %v256_v13, %v212_v18  ;;  %459 = vperm.xlu1 %7376, %v421_v8   ;;  %v348_v26 = vadd.f32 %v340_v16, %v328_v24  ;;  %385 = vrot.lane.b32.xlu0 %v367_v25, %s9478_s7 }
 0x116   :  { %v203_v63 = vpop.permute.xlu0 %202 }
 0x117   :  { %v8428_v33 = vadd.f32 %v308_v30, %v264_v32  ;;  %v235_v34 = vpop.permute.xlu1 %234  ;;  %v368_v35 = vadd.f32 %v360_v31, %v348_v26  ;;  %v216_v11 = vmul.f32 %v8368_v27, %v203_v63  ;;  %v332_v12 = vmul.f32 %v8384_v39, %v203_v63 }
 0x118   :  { %v257_v40 = vmul.f32 %v8371_v28, %v235_v34  ;;  %v341_v47 = vmul.f32 %v8379_v37, %v235_v34 }
 0x119   :  { %387 = vrot.lane.b32.xlu0 %v368_v35, %s9478_s7 }
 0x11a   :  { %v265_v41 = vadd.f32 %v257_v40, %v213_v36  ;;  %v349_v54 = vadd.f32 %v341_v47, %v329_v49 }
 0x11b   :  { %v299_v10 = vpop.permute.xlu0 %298 }
 0x11c   :  { %v193_v43 = vpop.permute.xlu1 %192  ;;  %v312_v15 = vmul.f32 %v8391_v44, %v299_v10  ;;  %v364_v16 = vmul.f32 %v8394_v45, %v299_v10 }
 0x11d   :  { %v214_v46 = vmul.f32 %v8368_v27, %v193_v43  ;;  %v330_v60 = vmul.f32 %v8384_v39, %v193_v43 }
 0x11f   :  { %v266_v48 = vadd.f32 %v258_v29, %v214_v46  ;;  %v350_v7 = vadd.f32 %v342_v62, %v330_v60 }
 0x120   :  { %v435_v46 = vpop.permute.xlu0 %434 }
 0x121   :  { %v287_v50 = vpop.permute.xlu1 %286 }
 0x122   :  { %v309_v51 = vmul.f32 %v8391_v44, %v287_v50  ;;  %v361_v52 = vmul.f32 %v8394_v45, %v287_v50 }
 0x124   :  { %v8440_v55 = vadd.f32 %v309_v51, %v265_v41  ;;  %v369_v56 = vadd.f32 %v361_v52, %v349_v54  ;;  %v7381_v41 = vld [vmem:[%s9487_s12] sm:$0xff]  }
 0x125   :  { %7019 = vmatprep.subr.bf16.mxu0 %v7381_v41 }
 0x126   :  { %v198_v57 = vpop.permute.xlu1 %197  ;;  %389 = vrot.lane.b32.xlu0 %v369_v56, %s9478_s7  ;;  %7020 = vmatpush3.bf16.msra.mxu0 %v7381_v41 }
 0x127   :  { %v215_v59 = vmul.f32 %v8368_v27, %v198_v57  ;;  %v331_v18 = vmul.f32 %v8384_v39, %v198_v57  ;;  %v343_v27 = vmul.f32 %v8379_v37, %v8387_v42  ;;  %v4671_v39 = vld [vmem:[%s9486_s8] sm:$0xff]  ;;  %v4673_v42 = vld [vmem:[%s9486_s8 + $0x10] sm:$0xff] }
 0x129   :  { %v267_v61 = vadd.f32 %v259_v58, %v215_v59  ;;  %v351_v34 = vadd.f32 %v343_v27, %v331_v18  ;;  %v7386_v27 = vld [vmem:[%s9488_s9 + $0x8] sm:$0xff]  }
 0x12b   :  { %v291_v0 = vpop.permute.xlu1 %290 }
 0x12c   :  { %v310_v4 = vmul.f32 %v8391_v44, %v291_v0  ;;  %v362_v5 = vmul.f32 %v8394_v45, %v291_v0 }
 0x12e   :  { %v8451_v8 = vadd.f32 %v310_v4, %v266_v48  ;;  %v370_v9 = vadd.f32 %v362_v5, %v350_v7 }
 0x130   :  { %v247_v13 = vpop.permute.xlu1 %246  ;;  %391 = vrot.lane.b32.xlu0 %v370_v9, %s9478_s7 }
 0x131   :  { %v260_v38 = vmul.f32 %v8371_v28, %v247_v13  ;;  %v344_v14 = vmul.f32 %v8379_v37, %v247_v13  ;;  %v4672_v37 = vld [vmem:[%s9486_s8 + $0x8] sm:$0xff] }
 0x133   :  { %v268_v24 = vadd.f32 %v260_v38, %v216_v11  ;;  %v352_v25 = vadd.f32 %v344_v14, %v332_v12 }
 0x135   :  { %v8463_v30 = vadd.f32 %v312_v15, %v268_v24  ;;  %v295_v31 = vpop.permute.xlu1 %294  ;;  %v372_v32 = vadd.f32 %v364_v16, %v352_v25 }
 0x136   :  { %v311_v26 = vmul.f32 %v8391_v44, %v295_v31  ;;  %v363_v28 = vmul.f32 %v8394_v45, %v295_v31  ;;  %v4674_v44 = vld [vmem:[%s9486_s8 + $0x18] sm:$0xff] }
 0x137   :  { %395 = vrot.lane.b32.xlu0 %v372_v32, %s9478_s7 }
 0x138   :  { %v8468_v35 = vadd.f32 %v311_v26, %v267_v61  ;;  %v371_v36 = vadd.f32 %v363_v28, %v351_v34 }
 0x13a   :  { %393 = vrot.lane.b32.xlu1 %v371_v36, %s9478_s7  ;;  %v425_v45 = vpop.permute.xlu1 %424  ;;  %s9489_s7 = sld [smem:[#allocation51_spill]] }
 0x13b   :  { %4678 = vperm.xlu0 %7377, %v4671_v39  }
 0x13e   :  { %v430_v40 = vpop.permute.xlu1 %429 }
 0x13f   :  { %4683 = vperm.xlu0 %7377, %v4672_v37  }
 0x142   :  { %v440_v43 = vpop.permute.xlu1 %439 }
 0x143   :  { %4688 = vperm.xlu0 %7377, %v4673_v42  }
 0x147   :  { %4693 = vperm.xlu0 %7377, %v4674_v44  }
 0x14b   :  { %7378 = vset.pattern.permute.xlu0 %v8074_v6  ;;  %v445_v6 = vpop.permute.xlu1 %444 }
 0x14c   :  { %4706 = vperm.xlu0 %7378, %v4671_v39  }
 0x14f   :  { %v450_v29 = vpop.permute.xlu1 %449 }
 0x150   :  { %4710 = vperm.xlu0 %7378, %v4672_v37  }
 0x153   :  { %v455_v47 = vpop.permute.xlu1 %454 }
 0x154   :  { %4714 = vperm.xlu0 %7378, %v4673_v42  }
 0x158   :  { %4718 = vperm.xlu0 %7378, %v4674_v44  }
 0x15c   :  { %7379 = vset.pattern.permute.xlu0 %v8072_v1 }
 0x15d   :  { %4735 = vperm.xlu0 %7379, %v4671_v39  }
 0x161   :  { %4739 = vperm.xlu0 %7379, %v4672_v37  }
 0x165   :  { %4743 = vperm.xlu0 %7379, %v4673_v42  }
 0x169   :  { %4747 = vperm.xlu0 %7379, %v4674_v44  }
 0x16d   :  { %7380 = vset.pattern.permute.xlu0 %v9437_v2 }
 0x17f   :  { %v384_v1 = vpop.permute.xlu0 %383 }
 0x180   :  { %v407_v49 = vsel %vm405_vm0, %v8400_v53, %v384_v1 }
 0x181   :  { %v463_v52 = vadd.f32 %v430_v40, %v407_v49 }
 0x183   :  { %v382_v48 = vpop.permute.xlu1 %381  ;;  %v471_v58 = vmax.f32 %v463_v52, 0.0  ;;  %v7388_v52 = vld [vmem:[%s9488_s9 + $0x18] sm:$0xff]  }
 0x184   :  { %v406_v50 = vsel %vm405_vm0, %v8409_v3, %v382_v48 }
 0x185   :  { %v462_v51 = vadd.f32 %v425_v45, %v406_v50 }
 0x187   :  { %v470_v54 = vmax.f32 %v462_v51, 0.0  ;;  %v386_v56 = vpop.permute.xlu0 %385  ;;  %v7387_v51 = vld [vmem:[%s9488_s9 + $0x10] sm:$0xff]  }
 0x188   :  { %v408_v57 = vsel %vm405_vm0, %v8421_v17, %v386_v56  ;;  %v7382_v17 = vld [vmem:[%s9487_s12 + $0x8] sm:$0xff]  }
 0x189   :  { %478 = vxpose.xlu1.b32.start [1/8] (short) %v470_v54, 128  ;;  %v464_v59 = vadd.f32 %v435_v46, %v408_v57  ;;  %7021 = vmatprep.subr.bf16.mxu0 %v7382_v17  ;;  %v7389_v54 = vld [vmem:[%s9489_s7] sm:$0xff]   ;;  %v7390_v56 = vld [vmem:[%s9489_s7 + $0x8] sm:$0xff]   ;;  %v7391_v57 = vld [vmem:[%s9489_s7 + $0x10] sm:$0xff]  }
 0x18a   :  { %7022 = vmatpush3.bf16.msra.mxu0 %v7382_v17 }
 0x18b   :  { %v388_v60 = vpop.permute.xlu0 %387  ;;  %v472_v62 = vmax.f32 %v464_v59, 0.0 }
 0x18c   :  { %v409_v61 = vsel %vm405_vm0, %v8428_v33, %v388_v60  ;;  %v7383_v33 = vld [vmem:[%s9487_s12 + $0x10] sm:$0xff]  }
 0x18d   :  { %479 = vxpose.xlu1.b32.cont [2/8] (short) %v471_v58, 128  ;;  %v465_v53 = vadd.f32 %v440_v43, %v409_v61  ;;  %7023 = vmatprep.subr.bf16.mxu0 %v7383_v33  ;;  %v6326_v58 = vld [vmem:[%s9490_s0] ss:$0 sm:$0xff] }
 0x18e   :  { %7024 = vmatpush3.bf16.msra.mxu0 %v7383_v33 }
 0x18f   :  { %v473_v63 = vmax.f32 %v465_v53, 0.0 }
 0x191   :  { %480 = vxpose.xlu1.b32.cont [3/8] (short) %v472_v62, 128 }
 0x194   :  { %v460_v12 = vpop.permute.xlu1 %459 }
 0x195   :  { %481 = vxpose.xlu1.b32.cont [4/8] (short) %v473_v63, 128 }
 0x198   :  { %v390_v3 = vpop.permute.xlu0 %389 }
 0x199   :  { %v410_v0 = vsel %vm405_vm0, %v8440_v55, %v390_v3  ;;  %v7384_v55 = vld [vmem:[%s9487_s12 + $0x18] sm:$0xff]  }
 0x19a   :  { %v466_v4 = vadd.f32 %v445_v6, %v410_v0  ;;  %7025 = vmatprep.subr.bf16.mxu0 %v7384_v55 }
 0x19b   :  { %7026 = vmatpush3.bf16.msra.mxu0 %v7384_v55 }
 0x19c   :  { %v474_v5 = vmax.f32 %v466_v4, 0.0  ;;  %7067 = vmatprep.subr.bf16.mxu0 %v7389_v54 }
 0x19e   :  { %482 = vxpose.xlu1.b32.cont [5/8] (short) %v474_v5, 128 }
 0x1a2   :  { %v392_v7 = vpop.permute.xlu0 %391 }
 0x1a3   :  { %v411_v9 = vsel %vm405_vm0, %v8451_v8, %v392_v7  ;;  %v7385_v8 = vld [vmem:[%s9488_s9] sm:$0xff]  }
 0x1a4   :  { %v467_v10 = vadd.f32 %v450_v29, %v411_v9  ;;  %7043 = vmatprep.subr.bf16.mxu1 %v7385_v8 }
 0x1a5   :  { %7044 = vmatpush3.bf16.msra.mxu1 %v7385_v8 }
 0x1a6   :  { %v475_v11 = vmax.f32 %v467_v10, 0.0  ;;  %7045 = vmatprep.subr.bf16.mxu1 %v7386_v27 }
 0x1a8   :  { %483 = vxpose.xlu1.b32.cont [6/8] (short) %v475_v11, 128 }
 0x1a9   :  { %v396_v13 = vpop.permute.xlu0 %395  ;;  %7046 = vmatpush3.bf16.msra.mxu1 %v7386_v27 }
 0x1aa   :  { %v413_v14 = vsel %vm405_vm0, %v8463_v30, %v396_v13  ;;  %7047 = vmatprep.subr.bf16.mxu1 %v7387_v51 }
 0x1ab   :  { %v469_v18 = vadd.f32 %v460_v12, %v413_v14 }
 0x1ac   :  { %v394_v38 = vpop.permute.xlu1 %393 }
 0x1ad   :  { %v412_v15 = vsel %vm405_vm0, %v8468_v35, %v394_v38  ;;  %v477_v25 = vmax.f32 %v469_v18, 0.0  ;;  %7048 = vmatpush3.bf16.msra.mxu1 %v7387_v51 }
 0x1ae   :  { %v468_v16 = vadd.f32 %v455_v47, %v412_v15  ;;  %7049 = vmatprep.subr.bf16.mxu1 %v7388_v52 }
 0x1b0   :  { %v476_v24 = vmax.f32 %v468_v16, 0.0 }
 0x1b1   :  { %7050 = vmatpush3.bf16.msra.mxu1 %v7388_v52 }
 0x1b2   :  { %484 = vxpose.xlu1.b32.cont [7/8] (short) %v476_v24, 128 }
 0x1b6   :  { %485 = vxpose.xlu1.b32.end [8/8] (short) %v477_v25, 128 }
 0x21a   :  { %v494_v30 = vpop.trf.xlu1 }
 0x21e   :  { %v495_v31 = vpop.trf.xlu1 }
 0x21f   :  { %v510_v32 = vpack.c.bf16 %v495_v31, %v494_v30 }
 0x221   :  { %7027 = vmatprep.mubr.msk.bf16.mxu0 %vm405_vm0, %v510_v32 }
 0x222   :  { %v496_v26 = vpop.trf.xlu1 }
 0x226   :  { %v497_v28 = vpop.trf.xlu1 }
 0x227   :  { %v511_v34 = vpack.c.bf16 %v497_v28, %v496_v26 }
 0x229   :  { %7028 = vmatmul.mubr.msk.bf16.vlgmr.msra.gmra.mrb[0].mxu0 %vm405_vm0, %v511_v34 }
 0x22a   :  { %v498_v35 = vpop.trf.xlu1  ;;  %7068 = vmatpush3.bf16.msra.mxu0 %v7389_v54 }
 0x22b   :  { %7069 = vmatprep.subr.bf16.mxu0 %v7390_v56 }
 0x22e   :  { %v499_v36 = vpop.trf.xlu1  ;;  %7070 = vmatpush3.bf16.msra.mxu0 %v7390_v56 }
 0x22f   :  { %v512_v39 = vpack.c.bf16 %v499_v36, %v498_v35  ;;  %7071 = vmatprep.subr.bf16.mxu0 %v7391_v57 }
 0x231   :  { %7031 = vmatprep.mubr.msk.bf16.mxu0 %vm405_vm0, %v512_v39 }
 0x232   :  { %v500_v37 = vpop.trf.xlu1  ;;  %7072 = vmatpush3.bf16.msra.mxu0 %v7391_v57  ;;  %v7392_v57 = vld [vmem:[%s9489_s7 + $0x18] sm:$0xff]  }
 0x233   :  { %7073 = vmatprep.subr.bf16.mxu0 %v7392_v57 }
 0x236   :  { %v501_v42 = vpop.trf.xlu1  ;;  %7074 = vmatpush3.bf16.msra.mxu0 %v7392_v57 }
 0x237   :  { %v513_v44 = vpack.c.bf16 %v501_v42, %v500_v37 }
 0x239   :  { %7032 = vmatmul.mubr.msk.bf16.gmra.mrb[4].mxu0 %vm405_vm0, %v513_v44 }
 0x23a   :  { %v502_v45 = vpop.trf.xlu1 }
 0x23e   :  { %v503_v40 = vpop.trf.xlu1 }
 0x23f   :  { %v514_v41 = vpack.c.bf16 %v503_v40, %v502_v45 }
 0x241   :  { %7035 = vmatprep.mubr.msk.bf16.mxu0 %vm405_vm0, %v514_v41 }
 0x242   :  { %v504_v43 = vpop.trf.xlu1 }
 0x246   :  { %v505_v6 = vpop.trf.xlu1 }
 0x247   :  { %v515_v29 = vpack.c.bf16 %v505_v6, %v504_v43 }
 0x249   :  { %7036 = vmatmul.mubr.msk.bf16.gmra.mrb[8].mxu0 %vm405_vm0, %v515_v29 }
 0x24a   :  { %v506_v46 = vpop.trf.xlu1 }
 0x24e   :  { %v507_v47 = vpop.trf.xlu1 }
 0x24f   :  { %v516_v1 = vpack.c.bf16 %v507_v47, %v506_v46 }
 0x251   :  { %7039 = vmatprep.mubr.msk.bf16.mxu0 %vm405_vm0, %v516_v1 }
 0x252   :  { %v508_v48 = vpop.trf.xlu1 }
 0x256   :  { %v509_v49 = vpop.trf.xlu1 }
 0x257   :  { %v517_v50 = vpack.c.bf16 %v509_v49, %v508_v48 }
 0x259   :  { %7040 = vmatmul.mubr.msk.bf16.gmra.mrb[12].mxu0 %vm405_vm0, %v517_v50 }
 0x2fc   :  { %v7029_v59 = vpop.f32.mrb[0].mxu0 }
 0x2fd   :  { %v624_v60 = vadd.f32 %v7029_v59, %v6326_v58  ;;  %v615_v61 = vpop.f32.mrb[1].mxu0  ;;  %v1070_v59 = vld [vmem:[#allocation3] sm:$0xff] }
 0x2fe   :  { %v616_v62 = vadd.f32 %v6326_v58, %v615_v61  ;;  %v7030_v53 = vpop.f32.mrb[2].mxu0  ;;  %v1071_v61 = vld [vmem:[#allocation3 + $0x8] sm:$0xff] }
 0x2ff   :  { %v627_v63 = vadd.f32 %v7030_v53, %v6326_v58  ;;  %v618_v3 = vpop.f32.mrb[3].mxu0  ;;  %v680_v4 = vmax.f32 %v624_v60, 0.0  ;;  %v1074_v60 = vld [vmem:[#allocation3 + $0x20] sm:$0xff]  ;;  %v1075_v53 = vld [vmem:[#allocation3 + $0x28] sm:$0xff] }
 0x300   :  { %v619_v0 = vadd.f32 %v6326_v58, %v618_v3  ;;  %v678_v5 = vmax.f32 %v616_v62, 0.0  ;;  %v8560_v62 = vcombine.high %v1070_v59, %v1074_v60  ;;  %v1082_v3 = vld [vmem:[#allocation3 + $0x60] sm:$0xff] }
 0x301   :  { %v681_v17 = vmax.f32 %v627_v63, 0.0  ;;  %v1078_v63 = vld [vmem:[#allocation3 + $0x40] sm:$0xff] }
 0x302   :  { %v679_v33 = vmax.f32 %v619_v0, 0.0  ;;  %v8562_v0 = vcombine.low %v1071_v61, %v1075_v53  ;;  %1496 = vmatprep.subr.bf16.mxu1 %v8560_v62 }
 0x303   :  { %v695_v7 = vpack.c.bf16 %v681_v17, %v680_v4  ;;  %v8564_v4 = vcombine.high %v1071_v61, %v1075_v53  ;;  %v8566_v17 = vcombine.high %v1078_v63, %v1082_v3  ;;  %v1107_v61 = vld [vmem:[#allocation3 + $0x128] sm:$0xff] }
 0x304   :  { %v694_v55 = vpack.c.bf16 %v679_v33, %v678_v5  ;;  %v1086_v5 = vld [vmem:[#allocation3 + $0x80] sm:$0xff] }
 0x305   :  { %v1090_v33 = vld [vmem:[#allocation3 + $0xa0] sm:$0xff]  ;;  %1569 = vmatprep.subr.bf16.mxu0 %v8564_v4 }
 0x306   :  { %7051 = vmatprep.mubr.msk.bf16.mxu1 %vm405_vm0, %v694_v55  ;;  %v8574_v55 = vcombine.high %v1086_v5, %v1090_v33 }
 0x307   :  { %7052 = vmatmul.mubr.msk.bf16.vlgmr.msra.gmra.mrb[0].mxu1 %vm405_vm0, %v695_v7  ;;  %v8571_v7 = vcombine.low %v1078_v63, %v1082_v3 }
 0x30c   :  { %v7033_v9 = vpop.f32.mrb[4].mxu0 }
 0x30d   :  { %v640_v10 = vadd.f32 %v7033_v9, %v6326_v58  ;;  %v631_v11 = vpop.f32.mrb[5].mxu0  ;;  %v1094_v9 = vld [vmem:[#allocation3 + $0xc0] sm:$0xff] }
 0x30e   :  { %v632_v12 = vadd.f32 %v6326_v58, %v631_v11  ;;  %v7034_v13 = vpop.f32.mrb[6].mxu0  ;;  %v8577_v11 = vcombine.low %v1086_v5, %v1090_v33 }
 0x30f   :  { %v643_v38 = vadd.f32 %v7034_v13, %v6326_v58  ;;  %v634_v14 = vpop.f32.mrb[7].mxu0  ;;  %v684_v16 = vmax.f32 %v640_v10, 0.0  ;;  %v1098_v10 = vld [vmem:[#allocation3 + $0xe0] sm:$0xff] }
 0x310   :  { %v635_v15 = vadd.f32 %v6326_v58, %v634_v14  ;;  %v682_v24 = vmax.f32 %v632_v12, 0.0  ;;  %v8580_v12 = vcombine.high %v1094_v9, %v1098_v10  ;;  %v1102_v13 = vld [vmem:[#allocation3 + $0x100] sm:$0xff]  ;;  %v8583_v14 = vcombine.low %v1094_v9, %v1098_v10 }
 0x311   :  { %v685_v18 = vmax.f32 %v643_v38, 0.0  ;;  %v1106_v38 = vld [vmem:[#allocation3 + $0x120] sm:$0xff] }
 0x312   :  { %v683_v25 = vmax.f32 %v635_v15, 0.0  ;;  %v8586_v15 = vcombine.high %v1102_v13, %v1106_v38 }
 0x313   :  { %v697_v8 = vpack.c.bf16 %v685_v18, %v684_v16  ;;  %v1110_v16 = vld [vmem:[#allocation3 + $0x140] sm:$0xff] }
 0x314   :  { %v696_v27 = vpack.c.bf16 %v683_v25, %v682_v24  ;;  %v1114_v18 = vld [vmem:[#allocation3 + $0x160] sm:$0xff]  ;;  %v8589_v24 = vcombine.low %v1102_v13, %v1106_v38 }
 0x315   :  { %v8592_v25 = vcombine.high %v1110_v16, %v1114_v18 }
 0x316   :  { %7055 = vmatprep.mubr.msk.bf16.mxu1 %vm405_vm0, %v696_v27  ;;  %v8602_v27 = vld [vmem:[%s9491_s2] ss:$0 sm:$0xff] }
 0x317   :  { %7056 = vmatmul.mubr.msk.bf16.gmra.mrb[4].mxu1 %vm405_vm0, %v697_v8  ;;  %v8595_v8 = vcombine.low %v1110_v16, %v1114_v18  ;;  %v1111_v16 = vld [vmem:[#allocation3 + $0x148] sm:$0xff] }
 0x318   :  { %v1115_v18 = vld [vmem:[#allocation3 + $0x168] sm:$0xff] }
 0x31c   :  { %v7037_v30 = vpop.f32.mrb[8].mxu0 }
 0x31d   :  { %v656_v31 = vadd.f32 %v7037_v30, %v6326_v58  ;;  %v647_v32 = vpop.f32.mrb[9].mxu0 }
 0x31e   :  { %v648_v26 = vadd.f32 %v6326_v58, %v647_v32  ;;  %v7038_v28 = vpop.f32.mrb[10].mxu0 }
 0x31f   :  { %v688_v34 = vmax.f32 %v656_v31, 0.0  ;;  %v659_v35 = vadd.f32 %v7038_v28, %v6326_v58  ;;  %v650_v36 = vpop.f32.mrb[11].mxu0 }
 0x320   :  { %v686_v39 = vmax.f32 %v648_v26, 0.0  ;;  %v651_v37 = vadd.f32 %v6326_v58, %v650_v36 }
 0x321   :  { %v689_v42 = vmax.f32 %v659_v35, 0.0 }
 0x322   :  { %v687_v44 = vmax.f32 %v651_v37, 0.0 }
 0x323   :  { %v699_v45 = vpack.c.bf16 %v689_v42, %v688_v34 }
 0x324   :  { %v698_v40 = vpack.c.bf16 %v687_v44, %v686_v39 }
 0x326   :  { %7059 = vmatprep.mubr.msk.bf16.mxu1 %vm405_vm0, %v698_v40  ;;  %v1083_v40 = vld [vmem:[#allocation3 + $0x68] sm:$0xff] }
 0x327   :  { %7060 = vmatmul.mubr.msk.bf16.gmra.mrb[8].mxu1 %vm405_vm0, %v699_v45  ;;  %v1079_v45 = vld [vmem:[#allocation3 + $0x48] sm:$0xff] }
 0x32c   :  { %v7041_v41 = vpop.f32.mrb[12].mxu0 }
 0x32d   :  { %v672_v43 = vadd.f32 %v7041_v41, %v6326_v58  ;;  %v663_v6 = vpop.f32.mrb[13].mxu0 }
 0x32e   :  { %v664_v29 = vadd.f32 %v6326_v58, %v663_v6  ;;  %v7042_v46 = vpop.f32.mrb[14].mxu0  ;;  %v8608_v6 = vcombine.high %v1079_v45, %v1083_v40 }
 0x32f   :  { %v692_v47 = vmax.f32 %v672_v43, 0.0  ;;  %v675_v1 = vadd.f32 %v7042_v46, %v6326_v58  ;;  %v666_v48 = vpop.f32.mrb[15].mxu0  ;;  %v1091_v46 = vld [vmem:[#allocation3 + $0xa8] sm:$0xff] }
 0x330   :  { %v690_v49 = vmax.f32 %v664_v29, 0.0  ;;  %v667_v50 = vadd.f32 %v6326_v58, %v666_v48  ;;  %v8558_v58 = vcombine.low %v1070_v59, %v1074_v60  ;;  %v1087_v29 = vld [vmem:[#allocation3 + $0x88] sm:$0xff] }
 0x331   :  { %v693_v51 = vmax.f32 %v675_v1, 0.0  ;;  %v8616_v1 = vcombine.high %v1087_v29, %v1091_v46  ;;  %v1095_v48 = vld [vmem:[#allocation3 + $0xc8] sm:$0xff] }
 0x332   :  { %v691_v52 = vmax.f32 %v667_v50, 0.0  ;;  %1497 = vmatpush1.bf16.msra.mxu1 %v8558_v58  ;;  %v1103_v60 = vld [vmem:[#allocation3 + $0x108] sm:$0xff] }
 0x333   :  { %v701_v54 = vpack.c.bf16 %v693_v51, %v692_v47  ;;  %1498 = vmatprep.subr.bf16.mxu1 %v8566_v17  ;;  %v8613_v47 = vcombine.low %v1079_v45, %v1083_v40  ;;  %v8619_v51 = vcombine.low %v1087_v29, %v1091_v46  ;;  %v8632_v10 = vcombine.high %v1103_v60, %v1107_v61 }
 0x334   :  { %v700_v56 = vpack.c.bf16 %v691_v52, %v690_v49  ;;  %v1099_v49 = vld [vmem:[#allocation3 + $0xe8] sm:$0xff] }
 0x335   :  { %v8629_v5 = vcombine.low %v1095_v48, %v1099_v49 }
 0x336   :  { %7063 = vmatprep.mubr.msk.bf16.mxu1 %vm405_vm0, %v700_v56  ;;  %1499 = vmatpush1.bf16.msra.mxu1 %v8571_v7  ;;  %v8623_v56 = vcombine.high %v1095_v48, %v1099_v49 }
 0x337   :  { %7064 = vmatmul.mubr.msk.bf16.gmra.mrb[12].mxu1 %vm405_vm0, %v701_v54  ;;  %1500 = vmatprep.subr.bf16.mxu1 %v8574_v55 }
 0x338   :  { %1528 = vmatprep.mubr.bf16.mxu1 %v9437_v2 }
 0x33a   :  { %1501 = vmatpush1.bf16.msra.mxu1 %v8577_v11 }
 0x33b   :  { %1502 = vmatprep.subr.bf16.mxu1 %v8580_v12 }
 0x33e   :  { %1503 = vmatpush1.bf16.msra.mxu1 %v8583_v14 }
 0x33f   :  { %1504 = vmatprep.subr.bf16.mxu1 %v8586_v15 }
 0x342   :  { %1505 = vmatpush1.bf16.msra.mxu1 %v8589_v24 }
 0x343   :  { %1506 = vmatprep.subr.bf16.mxu1 %v8592_v25 }
 0x346   :  { %1507 = vmatpush1.bf16.msra.mxu1 %v8595_v8 }
 0x3da   :  { %v7053_v30 = vpop.f32.mrb[0].mxu1 }
 0x3db   :  { %v808_v31 = vadd.f32 %v7053_v30, %v8602_v27  ;;  %v799_v32 = vpop.f32.mrb[1].mxu1 }
 0x3dc   :  { %v800_v26 = vadd.f32 %v8602_v27, %v799_v32  ;;  %v7054_v28 = vpop.f32.mrb[2].mxu1  ;;  %v8635_v32 = vcombine.low %v1103_v60, %v1107_v61 }
 0x3dd   :  { %v811_v34 = vadd.f32 %v7054_v28, %v8602_v27  ;;  %v802_v35 = vpop.f32.mrb[3].mxu1  ;;  %v864_v39 = vmax.f32 %v808_v31, 0.0  ;;  %v8643_v28 = vcombine.low %v1111_v16, %v1115_v18 }
 0x3de   :  { %v803_v36 = vadd.f32 %v8602_v27, %v802_v35  ;;  %v862_v42 = vmax.f32 %v800_v26, 0.0  ;;  %v8638_v26 = vcombine.high %v1111_v16, %v1115_v18  ;;  %v1122_v16 = vld [vmem:[#allocation3 + $0x1a0] sm:$0xff] }
 0x3df   :  { %v865_v37 = vmax.f32 %v811_v34, 0.0 }
 0x3e0   :  { %v863_v44 = vmax.f32 %v803_v36, 0.0 }
 0x3e1   :  { %v879_v41 = vpack.c.bf16 %v865_v37, %v864_v39 }
 0x3e2   :  { %v878_v43 = vpack.c.bf16 %v863_v44, %v862_v42 }
 0x3e4   :  { %7075 = vmatprep.mubr.msk.bf16.mxu0 %vm405_vm0, %v878_v43 }
 0x3e5   :  { %7076 = vmatmul.mubr.msk.bf16.vlgmr.msra.gmra.mrb[16].mxu0 %vm405_vm0, %v879_v41 }
 0x3e6   :  { %1570 = vmatpush1.bf16.msra.mxu0 %v8562_v0 }
 0x3e7   :  { %1571 = vmatprep.subr.bf16.mxu0 %v8608_v6 }
 0x3ea   :  { %v7057_v50 = vpop.f32.mrb[4].mxu1  ;;  %1572 = vmatpush1.bf16.msra.mxu0 %v8613_v47 }
 0x3eb   :  { %v824_v52 = vadd.f32 %v7057_v50, %v8602_v27  ;;  %v815_v54 = vpop.f32.mrb[5].mxu1  ;;  %1573 = vmatprep.subr.bf16.mxu0 %v8616_v1 }
 0x3ec   :  { %v816_v57 = vadd.f32 %v8602_v27, %v815_v54  ;;  %v7058_v59 = vpop.f32.mrb[6].mxu1 }
 0x3ed   :  { %v827_v53 = vadd.f32 %v7058_v59, %v8602_v27  ;;  %v818_v63 = vpop.f32.mrb[7].mxu1  ;;  %v868_v33 = vmax.f32 %v824_v52, 0.0 }
 0x3ee   :  { %v819_v3 = vadd.f32 %v8602_v27, %v818_v63  ;;  %1574 = vmatpush1.bf16.msra.mxu0 %v8619_v51  ;;  %v866_v13 = vmax.f32 %v816_v57, 0.0 }
 0x3ef   :  { %v869_v9 = vmax.f32 %v827_v53, 0.0  ;;  %1575 = vmatprep.subr.bf16.mxu0 %v8623_v56 }
 0x3f0   :  { %v867_v38 = vmax.f32 %v819_v3, 0.0 }
 0x3f1   :  { %v881_v30 = vpack.c.bf16 %v869_v9, %v868_v33 }
 0x3f2   :  { %v880_v31 = vpack.c.bf16 %v867_v38, %v866_v13  ;;  %1576 = vmatpush1.bf16.msra.mxu0 %v8629_v5  ;;  %v1118_v38 = vld [vmem:[#allocation3 + $0x180] sm:$0xff] }
 0x3f3   :  { %1577 = vmatprep.subr.bf16.mxu0 %v8632_v10  ;;  %v8660_v18 = vcombine.high %v1118_v38, %v1122_v16 }
 0x3f4   :  { %7079 = vmatprep.mubr.msk.bf16.mxu0 %vm405_vm0, %v880_v31  ;;  %v1123_v31 = vld [vmem:[#allocation3 + $0x1a8] sm:$0xff] }
 0x3f5   :  { %7080 = vmatmul.mubr.msk.bf16.gmra.mrb[20].mxu0 %vm405_vm0, %v881_v30  ;;  %v1119_v30 = vld [vmem:[#allocation3 + $0x188] sm:$0xff]  ;;  %1508 = vmatprep.subr.bf16.mxu1 %v8660_v18 }
 0x3f6   :  { %1578 = vmatpush1.bf16.msra.mxu0 %v8635_v32 }
 0x3f7   :  { %1579 = vmatprep.subr.bf16.mxu0 %v8638_v26 }
 0x3fa   :  { %v7061_v34 = vpop.f32.mrb[8].mxu1  ;;  %1580 = vmatpush1.bf16.msra.mxu0 %v8643_v28 }
 0x3fb   :  { %v840_v35 = vadd.f32 %v7061_v34, %v8602_v27  ;;  %v831_v36 = vpop.f32.mrb[9].mxu1  ;;  %v8662_v34 = vcombine.low %v1118_v38, %v1122_v16 }
 0x3fc   :  { %v832_v39 = vadd.f32 %v8602_v27, %v831_v36  ;;  %v7062_v37 = vpop.f32.mrb[10].mxu1  ;;  %v1126_v36 = vld [vmem:[#allocation3 + $0x1c0] sm:$0xff] }
 0x3fd   :  { %v872_v42 = vmax.f32 %v840_v35, 0.0  ;;  %v843_v44 = vadd.f32 %v7062_v37, %v8602_v27  ;;  %v834_v45 = vpop.f32.mrb[11].mxu1  ;;  %v8664_v35 = vcombine.low %v1119_v30, %v1123_v31  ;;  %1509 = vmatpush1.bf16.msra.mxu1 %v8662_v34  ;;  %v1127_v37 = vld [vmem:[#allocation3 + $0x1c8] sm:$0xff] }
 0x3fe   :  { %v870_v40 = vmax.f32 %v832_v39, 0.0  ;;  %v835_v41 = vadd.f32 %v8602_v27, %v834_v45  ;;  %v1130_v39 = vld [vmem:[#allocation3 + $0x1e0] sm:$0xff] }
 0x3ff   :  { %v873_v43 = vmax.f32 %v843_v44, 0.0  ;;  %v1131_v44 = vld [vmem:[#allocation3 + $0x1e8] sm:$0xff]  ;;  %v8674_v45 = vcombine.low %v1126_v36, %v1130_v39 }
 0x400   :  { %v871_v29 = vmax.f32 %v835_v41, 0.0  ;;  %v8678_v41 = vcombine.high %v1127_v37, %v1131_v44 }
 0x401   :  { %v883_v46 = vpack.c.bf16 %v873_v43, %v872_v42  ;;  %v8672_v42 = vcombine.high %v1126_v36, %v1130_v39  ;;  %v1072_v43 = vld [vmem:[#allocation3 + $0x10] sm:$0xff]  ;;  %v1085_v36 = vld [vmem:[#allocation3 + $0x78] sm:$0xff] }
 0x402   :  { %v882_v48 = vpack.c.bf16 %v871_v29, %v870_v40  ;;  %v8676_v40 = vcombine.low %v1127_v37, %v1131_v44  ;;  %v1076_v29 = vld [vmem:[#allocation3 + $0x30] sm:$0xff] }
 0x403   :  { %1510 = vmatprep.subr.bf16.mxu1 %v8672_v42 }
 0x404   :  { %7083 = vmatprep.mubr.msk.bf16.mxu0 %vm405_vm0, %v882_v48  ;;  %1511 = vmatpush1.bf16.msra.mxu1 %v8674_v45  ;;  %v8684_v48 = vcombine.low %v1072_v43, %v1076_v29 }
 0x405   :  { %7084 = vmatmul.mubr.msk.bf16.gmra.mrb[24].mxu0 %vm405_vm0, %v883_v46  ;;  %v1073_v46 = vld [vmem:[#allocation3 + $0x18] sm:$0xff] }
 0x40a   :  { %v7065_v49 = vpop.f32.mrb[12].mxu1 }
 0x40b   :  { %v856_v50 = vadd.f32 %v7065_v49, %v8602_v27  ;;  %v847_v52 = vpop.f32.mrb[13].mxu1  ;;  %v8686_v49 = vcombine.high %v1072_v43, %v1076_v29 }
 0x40c   :  { %v848_v54 = vadd.f32 %v8602_v27, %v847_v52  ;;  %v7066_v57 = vpop.f32.mrb[14].mxu1 }
 0x40d   :  { %v876_v59 = vmax.f32 %v856_v50, 0.0  ;;  %v859_v60 = vadd.f32 %v7066_v57, %v8602_v27  ;;  %v850_v61 = vpop.f32.mrb[15].mxu1  ;;  %v1077_v50 = vld [vmem:[#allocation3 + $0x38] sm:$0xff]  ;;  %1642 = vmatprep.subr.bf16.mxu1 %v8686_v49 }
 0x40e   :  { %v874_v53 = vmax.f32 %v848_v54, 0.0  ;;  %v851_v63 = vadd.f32 %v8602_v27, %v850_v61  ;;  %v8666_v27 = vcombine.high %v1119_v30, %v1123_v31  ;;  %v8688_v52 = vcombine.low %v1073_v46, %v1077_v50  ;;  %v8697_v57 = vld [vmem:[%s9492_s21] ss:$0 sm:$0xff]  ;;  %v1084_v30 = vld [vmem:[#allocation3 + $0x70] sm:$0xff] }
 0x40f   :  { %v877_v3 = vmax.f32 %v859_v60, 0.0  ;;  %v8690_v54 = vcombine.high %v1073_v46, %v1077_v50  ;;  %v1081_v31 = vld [vmem:[#allocation3 + $0x58] sm:$0xff]  ;;  %v1088_v50 = vld [vmem:[#allocation3 + $0x90] sm:$0xff] }
 0x410   :  { %v875_v33 = vmax.f32 %v851_v63, 0.0  ;;  %1581 = vmatprep.subr.bf16.mxu0 %v8666_v27  ;;  %v8709_v46 = vcombine.high %v1081_v31, %v1085_v36 }
 0x411   :  { %v885_v9 = vpack.c.bf16 %v877_v3, %v876_v59  ;;  %1582 = vmatpush1.bf16.msra.mxu0 %v8664_v35 }
 0x412   :  { %v884_v13 = vpack.c.bf16 %v875_v33, %v874_v53  ;;  %1583 = vmatprep.subr.bf16.mxu0 %v8678_v41  ;;  %9493 = vst [vmem:[#allocation24_spill] sm:$0xff] %v8709_v46 }
 0x414   :  { %7087 = vmatprep.mubr.msk.bf16.mxu0 %vm405_vm0, %v884_v13  ;;  %v1080_v13 = vld [vmem:[#allocation3 + $0x50] sm:$0xff] }
 0x415   :  { %7088 = vmatmul.mubr.msk.bf16.gmra.mrb[28].mxu0 %vm405_vm0, %v885_v9  ;;  %v8707_v29 = vcombine.high %v1080_v13, %v1084_v30 }
 0x416   :  { %1601 = vmatprep.mubr.bf16.mxu0 %v9437_v2  ;;  %1584 = vmatpush1.bf16.msra.mxu0 %v8676_v40 }
 0x417   :  { %1715 = vmatprep.subr.bf16.mxu0 %v8690_v54 }
 0x4b8   :  { %v7077_v59 = vpop.f32.mrb[16].mxu0 }
 0x4b9   :  { %v992_v60 = vadd.f32 %v7077_v59, %v8697_v57  ;;  %v983_v61 = vpop.f32.mrb[17].mxu0  ;;  %v1092_v59 = vld [vmem:[#allocation3 + $0xb0] sm:$0xff] }
 0x4ba   :  { %v984_v53 = vadd.f32 %v8697_v57, %v983_v61  ;;  %v7078_v63 = vpop.f32.mrb[18].mxu0  ;;  %v1089_v61 = vld [vmem:[#allocation3 + $0x98] sm:$0xff] }
 0x4bb   :  { %v995_v3 = vadd.f32 %v7078_v63, %v8697_v57  ;;  %v986_v33 = vpop.f32.mrb[19].mxu0  ;;  %v1048_v38 = vmax.f32 %v992_v60, 0.0  ;;  %v1093_v63 = vld [vmem:[#allocation3 + $0xb8] sm:$0xff]  ;;  %v8715_v60 = vcombine.low %v1080_v13, %v1084_v30  ;;  %v8729_v13 = vcombine.low %v1088_v50, %v1092_v59 }
 0x4bc   :  { %v987_v9 = vadd.f32 %v8697_v57, %v986_v33  ;;  %v1046_v39 = vmax.f32 %v984_v53, 0.0  ;;  %v8717_v53 = vcombine.low %v1081_v31, %v1085_v36  ;;  %v8723_v33 = vcombine.high %v1089_v61, %v1093_v63 }
 0x4bd   :  { %v1049_v16 = vmax.f32 %v995_v3, 0.0  ;;  %9494 = vst [vmem:[#allocation25_spill] sm:$0xff] %v8715_v60  ;;  %v8721_v3 = vcombine.high %v1088_v50, %v1092_v59  ;;  %9498 = vst [vmem:[#allocation29_spill] sm:$0xff] %v8729_v13  ;;  %v8731_v30 = vcombine.low %v1089_v61, %v1093_v63 }
 0x4be   :  { %v1047_v37 = vmax.f32 %v987_v9, 0.0  ;;  %9495 = vst [vmem:[#allocation26_spill] sm:$0xff] %v8717_v53  ;;  %9497 = vst [vmem:[#allocation28_spill] sm:$0xff] %v8723_v33  ;;  %v1096_v9 = vld [vmem:[#allocation3 + $0xd0] sm:$0xff] }
 0x4bf   :  { %v8703_v44 = vpack.c.bf16 %v1049_v16, %v1048_v38  ;;  %9496 = vst [vmem:[#allocation27_spill] sm:$0xff] %v8721_v3  ;;  %v1100_v38 = vld [vmem:[#allocation3 + $0xf0] sm:$0xff]  ;;  %v1097_v16 = vld [vmem:[#allocation3 + $0xd8] sm:$0xff]  ;;  %9499 = vst [vmem:[#allocation30_spill] sm:$0xff] %v8731_v30 }
 0x4c0   :  { %v8705_v43 = vpack.c.bf16 %v1047_v37, %v1046_v39  ;;  %v1101_v39 = vld [vmem:[#allocation3 + $0xf8] sm:$0xff]  ;;  %v8735_v36 = vcombine.high %v1096_v9, %v1100_v38 }
 0x4c1   :  { %v8737_v37 = vcombine.high %v1097_v16, %v1101_v39 }
 0x4c2   :  { %1529 = vmatmul.mubr.bf16.vlgmr.msra.gmra.mrb[16].mxu1 %v8705_v43  ;;  %1602 = vmatmul.mubr.bf16.vlgmr.msra.gmra.mrb[32].mxu0 %v8705_v43  ;;  %9500 = vst [vmem:[#allocation31_spill] sm:$0xff] %v8735_v36 }
 0x4c3   :  { %1643 = vmatpush1.bf16.msra.mxu1 %v8684_v48  ;;  %1716 = vmatpush1.bf16.msra.mxu0 %v8688_v52  ;;  %9501 = vst [vmem:[#allocation32_spill] sm:$0xff] %v8737_v37 }
 0x4c4   :  { %1644 = vmatprep.subr.bf16.mxu1 %v8707_v29  ;;  %1717 = vmatprep.subr.bf16.mxu0 %v8709_v46  ;;  %v9504_v46 = vmov 0  }
 0x4c5   :  { %1538 = vmatprep.mubr.bf16.mxu1 %v9437_v2  ;;  %1611 = vmatprep.mubr.bf16.mxu0 %v9437_v2 }
 0x4c7   :  { %1645 = vmatpush1.bf16.msra.mxu1 %v8715_v60  ;;  %1718 = vmatpush1.bf16.msra.mxu0 %v8717_v53  ;;  %v8755_v53 = vcombine.high %v1105_v22, %v1109_v20 }
 0x4c8   :  { %v7081_v31 = vpop.f32.mrb[20].mxu0  ;;  %1646 = vmatprep.subr.bf16.mxu1 %v8721_v3  ;;  %1719 = vmatprep.subr.bf16.mxu0 %v8723_v33  ;;  %v8746_v33 = vcombine.low %v1096_v9, %v1100_v38  ;;  %v1116_v9 = vld [vmem:[#allocation3 + $0x170] sm:$0xff]  ;;  %v1113_v38 = vld [vmem:[#allocation3 + $0x158] sm:$0xff] }
 0x4c9   :  { %v1008_v2 = vadd.f32 %v7081_v31, %v8697_v57  ;;  %v999_v23 = vpop.f32.mrb[21].mxu0  ;;  %v8748_v31 = vcombine.low %v1097_v16, %v1101_v39  ;;  %9503 = vst [vmem:[#allocation34_spill] sm:$0xff] %v8755_v53  ;;  %v1117_v16 = vld [vmem:[#allocation3 + $0x178] sm:$0xff] }
 0x4ca   :  { %v1000_v50 = vadd.f32 %v8697_v57, %v999_v23  ;;  %v7082_v59 = vpop.f32.mrb[22].mxu0  ;;  %1539 = vmatmul.mubr.bf16.gmra.mrb[20].mxu1 %v8703_v44  ;;  %1612 = vmatmul.mubr.bf16.gmra.mrb[36].mxu0 %v8703_v44  ;;  %9502 = vst [vmem:[#allocation33_spill] sm:$0xff] %v8746_v33  ;;  %v8753_v23 = vcombine.high %v1104_v19, %v1108_v21 }
 0x4cb   :  { %v1011_v61 = vadd.f32 %v7082_v59, %v8697_v57  ;;  %1647 = vmatpush1.bf16.msra.mxu1 %v8729_v13  ;;  %v1002_v63 = vpop.f32.mrb[23].mxu0  ;;  %1720 = vmatpush1.bf16.msra.mxu0 %v8731_v30  ;;  %v1112_v59 = vld [vmem:[#allocation3 + $0x150] sm:$0xff]  ;;  %v1052_v60 = vmax.f32 %v1008_v2, 0.0 }
 0x4cc   :  { %v1003_v3 = vadd.f32 %v8697_v57, %v1002_v63  ;;  %1648 = vmatprep.subr.bf16.mxu1 %v8735_v36  ;;  %1721 = vmatprep.subr.bf16.mxu0 %v8737_v37  ;;  %v1050_v39 = vmax.f32 %v1000_v50, 0.0  ;;  %v8763_v37 = vcombine.low %v1104_v19, %v1108_v21  ;;  %v8765_v36 = vcombine.low %v1105_v22, %v1109_v20 }
 0x4cd   :  { %v1053_v13 = vmax.f32 %v1011_v61, 0.0  ;;  %1548 = vmatprep.mubr.bf16.mxu1 %v9504_v46  ;;  %1621 = vmatprep.mubr.bf16.mxu0 %v9504_v46  ;;  %v8771_v61 = vcombine.high %v1112_v59, %v1116_v9  ;;  %v8773_v50 = vcombine.high %v1113_v38, %v1117_v16  ;;  %v8779_v19 = vcombine.low %v1112_v59, %v1116_v9 }
 0x4ce   :  { %v1051_v63 = vmax.f32 %v1003_v3, 0.0  ;;  %9505 = vst [vmem:[#allocation35_spill] sm:$0xff] %v8763_v37  ;;  %9506 = vst [vmem:[#allocation36_spill] sm:$0xff] %v8765_v36  ;;  %v1124_v3 = vld [vmem:[#allocation3 + $0x1b0] sm:$0xff]  ;;  %v8781_v20 = vcombine.low %v1113_v38, %v1117_v16 }
 0x4cf   :  { %v8759_v30 = vpack.c.bf16 %v1053_v13, %v1052_v60  ;;  %1649 = vmatpush1.bf16.msra.mxu1 %v8746_v33  ;;  %1722 = vmatpush1.bf16.msra.mxu0 %v8748_v31  ;;  %9507 = vst [vmem:[#allocation37_spill] sm:$0xff] %v8771_v61  ;;  %9508 = vst [vmem:[#allocation38_spill] sm:$0xff] %v8773_v50  ;;  %v1120_v60 = vld [vmem:[#allocation3 + $0x190] sm:$0xff]  ;;  %v1121_v13 = vld [vmem:[#allocation3 + $0x198] sm:$0xff] }
 0x4d0   :  { %v8767_v2 = vpack.c.bf16 %v1051_v63, %v1050_v39  ;;  %1650 = vmatprep.subr.bf16.mxu1 %v8753_v23  ;;  %1723 = vmatprep.subr.bf16.mxu0 %v8755_v53  ;;  %v1125_v33 = vld [vmem:[#allocation3 + $0x1b8] sm:$0xff]  ;;  %9509 = vst [vmem:[#allocation39_spill] sm:$0xff] %v8781_v20  ;;  %v8785_v21 = vcombine.high %v1120_v60, %v1124_v3  ;;  %v1128_v39 = vld [vmem:[#allocation3 + $0x1d0] sm:$0xff] }
 0x4d1   :  { %v8787_v22 = vcombine.high %v1121_v13, %v1125_v33  ;;  %v1132_v63 = vld [vmem:[#allocation3 + $0x1f0] sm:$0xff]  ;;  %v8793_v59 = vcombine.low %v1120_v60, %v1124_v3  ;;  %v8795_v9 = vcombine.low %v1121_v13, %v1125_v33 }
 0x4d2   :  { %1549 = vmatmul.mubr.bf16.gmra.mrb[24].mxu1 %v8767_v2  ;;  %1622 = vmatmul.mubr.bf16.gmra.mrb[40].mxu0 %v8767_v2  ;;  %9510 = vst [vmem:[#allocation40_spill] sm:$0xff] %v8785_v21  ;;  %v8799_v38 = vcombine.high %v1128_v39, %v1132_v63  ;;  %v8809_v3 = vcombine.low %v1128_v39, %v1132_v63  ;;  %v7422_v63 = vld [vmem:[#allocation6 + $0x8c] ss:$16 sps:$4 sm:$0xff]  }
 0x4d3   :  { %1651 = vmatpush1.bf16.msra.mxu1 %v8763_v37  ;;  %1724 = vmatpush1.bf16.msra.mxu0 %v8765_v36  ;;  %9511 = vst [vmem:[#allocation41_spill] sm:$0xff] %v8787_v22  ;;  %v1129_v37 = vld [vmem:[#allocation3 + $0x1d8] sm:$0xff]  ;;  %9512 = vst [vmem:[#allocation42_spill] sm:$0xff] %v8795_v9 }
 0x4d4   :  { %1652 = vmatprep.subr.bf16.mxu1 %v8771_v61  ;;  %1725 = vmatprep.subr.bf16.mxu0 %v8773_v50  ;;  %v1133_v36 = vld [vmem:[#allocation3 + $0x1f8] sm:$0xff] }
 0x4d5   :  { %1558 = vmatprep.mubr.bf16.mxu1 %v9504_v46  ;;  %1631 = vmatprep.mubr.bf16.mxu0 %v9504_v46  ;;  %v8801_v16 = vcombine.high %v1129_v37, %v1133_v36  ;;  %v8811_v13 = vcombine.low %v1129_v37, %v1133_v36 }
 0x4d7   :  { %1653 = vmatpush1.bf16.msra.mxu1 %v8779_v19  ;;  %1726 = vmatpush1.bf16.msra.mxu0 %v8781_v20 }
 0x4d8   :  { %1654 = vmatprep.subr.bf16.mxu1 %v8785_v21  ;;  %1727 = vmatprep.subr.bf16.mxu0 %v8787_v22  ;;  %v7085_v50 = vpop.f32.mrb[24].mxu0 }
 0x4d9   :  { %v1024_v61 = vadd.f32 %v7085_v50, %v8697_v57  ;;  %v1015_v53 = vpop.f32.mrb[25].mxu0 }
 0x4da   :  { %1559 = vmatmul.mubr.bf16.gmra.mrb[28].mxu1 %v8759_v30  ;;  %1632 = vmatmul.mubr.bf16.gmra.mrb[44].mxu0 %v8759_v30  ;;  %v1016_v60 = vadd.f32 %v8697_v57, %v1015_v53  ;;  %v7086_v33 = vpop.f32.mrb[26].mxu0 }
 0x4db   :  { %1655 = vmatpush1.bf16.msra.mxu1 %v8793_v59  ;;  %1728 = vmatpush1.bf16.msra.mxu0 %v8795_v9  ;;  %v1056_v22 = vmax.f32 %v1024_v61, 0.0  ;;  %v1027_v21 = vadd.f32 %v7086_v33, %v8697_v57  ;;  %v1018_v50 = vpop.f32.mrb[27].mxu0  ;;  %v7413_v61 = vld [vmem:[#allocation6 + $0x64] ss:$16 sps:$4 sm:$0xff]   ;;  %v7426_v33 = vld [vmem:[#allocation6 + $0xa8] ss:$16 sps:$4 sm:$0xff]  }
 0x4dc   :  { %1656 = vmatprep.subr.bf16.mxu1 %v8799_v38  ;;  %1729 = vmatprep.subr.bf16.mxu0 %v8801_v16  ;;  %v1054_v20 = vmax.f32 %v1016_v60, 0.0  ;;  %v1019_v53 = vadd.f32 %v8697_v57, %v1018_v50  ;;  %v7423_v60 = vld [vmem:[#allocation6 + $0xa0] ss:$16 sps:$4 sm:$0xff]  }
 0x4dd   :  { %1674 = vmatprep.mubr.bf16.mxu1 %v9504_v46  ;;  %1747 = vmatprep.mubr.bf16.mxu0 %v9504_v46  ;;  %v1057_v9 = vmax.f32 %v1027_v21, 0.0  ;;  %v7414_v21 = vld [vmem:[#allocation6 + $0x68] ss:$16 sps:$4 sm:$0xff]   ;;  %v7429_v50 = vld [vmem:[#allocation6 + $0xc0] ss:$16 sps:$4 sm:$0xff]  }
 0x4de   :  { %v1055_v39 = vmax.f32 %v1019_v53, 0.0  ;;  %v7432_v53 = vld [vmem:[#allocation6 + $0xc8] ss:$16 sps:$4 sm:$0xff]  }
 0x4df   :  { %1657 = vmatpush1.bf16.msra.mxu1 %v8809_v3  ;;  %1730 = vmatpush1.bf16.msra.mxu0 %v8811_v13  ;;  %v8821_v36 = vpack.c.bf16 %v1057_v9, %v1056_v22  ;;  %v7419_v22 = vld [vmem:[#allocation6 + $0x84] ss:$16 sps:$4 sm:$0xff]   ;;  %v7420_v9 = vld [vmem:[#allocation6 + $0x88] ss:$16 sps:$4 sm:$0xff]  }
 0x4e0   :  { %1956 = vmatprep.subr.bf16.mxu1 %v8560_v62  ;;  %2029 = vmatprep.subr.bf16.mxu0 %v8564_v4  ;;  %v8825_v37 = vpack.c.bf16 %v1055_v39, %v1054_v20  ;;  %v7411_v20 = vld [vmem:[#allocation6 + $0x60] ss:$16 sps:$4 sm:$0xff]   ;;  %v7437_v39 = vld [vmem:[#allocation6 + $0xe4] ss:$16 sps:$4 sm:$0xff]  }
 0x4e2   :  { %1675 = vmatmul.mubr.bf16.vlgmr.msra.gmra.mrb[32].mxu1 %v8705_v43  ;;  %1748 = vmatmul.mubr.bf16.vlgmr.msra.gmra.mrb[48].mxu0 %v8705_v43 }
 0x4e3   :  { %1957 = vmatpush1.bf16.msra.mxu1 %v8558_v58  ;;  %2030 = vmatpush1.bf16.msra.mxu0 %v8562_v0 }
 0x4e4   :  { %1958 = vmatprep.subr.bf16.mxu1 %v8566_v17  ;;  %2031 = vmatprep.subr.bf16.mxu0 %v8608_v6 }
 0x4e5   :  { %1684 = vmatprep.mubr.bf16.mxu1 %v9504_v46  ;;  %1757 = vmatprep.mubr.bf16.mxu0 %v9504_v46 }
 0x4e7   :  { %1959 = vmatpush1.bf16.msra.mxu1 %v8571_v7  ;;  %2032 = vmatpush1.bf16.msra.mxu0 %v8613_v47 }
 0x4e8   :  { %1960 = vmatprep.subr.bf16.mxu1 %v8574_v55  ;;  %2033 = vmatprep.subr.bf16.mxu0 %v8616_v1  ;;  %v7089_v62 = vpop.f32.mrb[28].mxu0 }
 0x4e9   :  { %v1040_v58 = vadd.f32 %v7089_v62, %v8697_v57  ;;  %v1031_v0 = vpop.f32.mrb[29].mxu0  ;;  %v7438_v62 = vld [vmem:[#allocation6 + $0xe8] ss:$16 sps:$4 sm:$0xff]  }
 0x4ea   :  { %1685 = vmatmul.mubr.bf16.gmra.mrb[36].mxu1 %v8703_v44  ;;  %1758 = vmatmul.mubr.bf16.gmra.mrb[52].mxu0 %v8703_v44  ;;  %v1032_v4 = vadd.f32 %v8697_v57, %v1031_v0  ;;  %v7090_v17 = vpop.f32.mrb[30].mxu0  ;;  %v7446_v0 = vld [vmem:[#allocation6 + $0x10c] ss:$16 sps:$4 sm:$0xff]  }
 0x4eb   :  { %1961 = vmatpush1.bf16.msra.mxu1 %v8577_v11  ;;  %2034 = vmatpush1.bf16.msra.mxu0 %v8619_v51  ;;  %v1060_v7 = vmax.f32 %v1040_v58, 0.0  ;;  %v1043_v55 = vadd.f32 %v7090_v17, %v8697_v57  ;;  %v1034_v6 = vpop.f32.mrb[31].mxu0  ;;  %v9518_v51 = vld [vmem:[#allocation29_spill] sm:$0xff]  ;;  %v7443_v58 = vld [vmem:[#allocation6 + $0x104] ss:$16 sps:$4 sm:$0xff]  }
 0x4ec   :  { %1962 = vmatprep.subr.bf16.mxu1 %v8580_v12  ;;  %2035 = vmatprep.subr.bf16.mxu0 %v8623_v56  ;;  %v1058_v47 = vmax.f32 %v1032_v4, 0.0  ;;  %v1035_v1 = vadd.f32 %v8697_v57, %v1034_v6  ;;  %v9519_v56 = vld [vmem:[#allocation30_spill] sm:$0xff]  ;;  %v7404_v57 = vld [vmem:[#allocation6 + $0x2c] ss:$16 sps:$4 sm:$0xff]   ;;  %v7441_v4 = vld [vmem:[#allocation6 + $0x100] ss:$16 sps:$4 sm:$0xff]  }
 0x4ed   :  { %1694 = vmatprep.mubr.bf16.mxu1 %v9504_v46  ;;  %1767 = vmatprep.mubr.bf16.mxu0 %v9504_v46  ;;  %v1061_v44 = vmax.f32 %v1043_v55, 0.0  ;;  %v7444_v17 = vld [vmem:[#allocation6 + $0x108] ss:$16 sps:$4 sm:$0xff]   ;;  %v7452_v55 = vld [vmem:[#allocation6 + $0x12c] ss:$16 sps:$4 sm:$0xff]  }
 0x4ee   :  { %v1059_v43 = vmax.f32 %v1035_v1, 0.0  ;;  %v7447_v6 = vld [vmem:[#allocation6 + $0x120] ss:$16 sps:$4 sm:$0xff]   ;;  %v7455_v1 = vld [vmem:[#allocation6 + $0x144] ss:$16 sps:$4 sm:$0xff]  }
 0x4ef   :  { %1963 = vmatpush1.bf16.msra.mxu1 %v8583_v14  ;;  %2036 = vmatpush1.bf16.msra.mxu0 %v8629_v5  ;;  %v8853_v11 = vpack.c.bf16 %v1061_v44, %v1060_v7  ;;  %v9513_v14 = vld [vmem:[#allocation24_spill] sm:$0xff]  ;;  %v9520_v5 = vld [vmem:[#allocation31_spill] sm:$0xff] }
 0x4f0   :  { %1964 = vmatprep.subr.bf16.mxu1 %v8586_v15  ;;  %2037 = vmatprep.subr.bf16.mxu0 %v8632_v10  ;;  %v8857_v12 = vpack.c.bf16 %v1059_v43, %v1058_v47  ;;  %v9514_v15 = vld [vmem:[#allocation25_spill] sm:$0xff]  ;;  %v9521_v10 = vld [vmem:[#allocation32_spill] sm:$0xff] }
 0x4f1   :  { %v7449_v7 = vld [vmem:[#allocation6 + $0x124] ss:$16 sps:$4 sm:$0xff]   ;;  %v7450_v47 = vld [vmem:[#allocation6 + $0x128] ss:$16 sps:$4 sm:$0xff]   ;;  %v7458_v44 = vld [vmem:[#allocation6 + $0x14c] ss:$16 sps:$4 sm:$0xff]  }
 0x4f2   :  { %1695 = vmatmul.mubr.bf16.gmra.mrb[40].mxu1 %v8767_v2  ;;  %1768 = vmatmul.mubr.bf16.gmra.mrb[56].mxu0 %v8767_v2  ;;  %v7408_v2 = vld [vmem:[#allocation6 + $0x48] ss:$16 sps:$4 sm:$0xff]   ;;  %v7453_v43 = vld [vmem:[#allocation6 + $0x140] ss:$16 sps:$4 sm:$0xff]  }
 0x4f3   :  { %1965 = vmatpush1.bf16.msra.mxu1 %v8589_v24  ;;  %2038 = vmatpush1.bf16.msra.mxu0 %v8635_v32  ;;  %v9515_v24 = vld [vmem:[#allocation26_spill] sm:$0xff]  ;;  %v9522_v32 = vld [vmem:[#allocation33_spill] sm:$0xff] }
 0x4f4   :  { %1966 = vmatprep.subr.bf16.mxu1 %v8592_v25  ;;  %2039 = vmatprep.subr.bf16.mxu0 %v8638_v26  ;;  %v9516_v25 = vld [vmem:[#allocation27_spill] sm:$0xff]  ;;  %v9523_v26 = vld [vmem:[#allocation34_spill] sm:$0xff] }
 0x4f5   :  { %1704 = vmatprep.mubr.bf16.mxu1 %v9504_v46  ;;  %1777 = vmatprep.mubr.bf16.mxu0 %v9504_v46 }
 0x4f7   :  { %1967 = vmatpush1.bf16.msra.mxu1 %v8595_v8  ;;  %2040 = vmatpush1.bf16.msra.mxu0 %v8643_v28  ;;  %v9517_v8 = vld [vmem:[#allocation28_spill] sm:$0xff]  ;;  %v9524_v28 = vld [vmem:[#allocation35_spill] sm:$0xff] }
 0x4f8   :  { %1968 = vmatprep.subr.bf16.mxu1 %v8660_v18  ;;  %2041 = vmatprep.subr.bf16.mxu0 %v8666_v27  ;;  %v9525_v18 = vld [vmem:[#allocation36_spill] sm:$0xff]  ;;  %v9528_v27 = vld [vmem:[#allocation39_spill] sm:$0xff] }
 0x4fa   :  { %1705 = vmatmul.mubr.bf16.gmra.mrb[44].mxu1 %v8759_v30  ;;  %1778 = vmatmul.mubr.bf16.gmra.mrb[60].mxu0 %v8759_v30  ;;  %v7402_v30 = vld [vmem:[#allocation6 + $0x28] ss:$16 sps:$4 sm:$0xff]  }
 0x4fb   :  { %1969 = vmatpush1.bf16.msra.mxu1 %v8662_v34  ;;  %2042 = vmatpush1.bf16.msra.mxu0 %v8664_v35  ;;  %v9526_v34 = vld [vmem:[#allocation37_spill] sm:$0xff]  ;;  %v9527_v35 = vld [vmem:[#allocation38_spill] sm:$0xff] }
 0x4fc   :  { %1970 = vmatprep.subr.bf16.mxu1 %v8672_v42  ;;  %2043 = vmatprep.subr.bf16.mxu0 %v8678_v41  ;;  %v9529_v42 = vld [vmem:[#allocation40_spill] sm:$0xff] }
 0x4fd   :  { %1988 = vmatprep.mubr.bf16.mxu1 %v9504_v46  ;;  %2061 = vmatprep.mubr.bf16.mxu0 %v9504_v46  ;;  %v7395_v41 = vld [vmem:[#allocation6 + $0x4] ss:$16 sps:$4 sm:$0xff]  }
 0x4ff   :  { %1971 = vmatpush1.bf16.msra.mxu1 %v8674_v45  ;;  %2044 = vmatpush1.bf16.msra.mxu0 %v8676_v40  ;;  %v9530_v45 = vld [vmem:[#allocation41_spill] sm:$0xff]  ;;  %v9531_v40 = vld [vmem:[#allocation42_spill] sm:$0xff] }
 0x500   :  { %2102 = vmatprep.subr.bf16.mxu1 %v8686_v49  ;;  %2175 = vmatprep.subr.bf16.mxu0 %v8690_v54  ;;  %v7393_v49 = vld [vmem:[#allocation6] ss:$16 sps:$4 sm:$0xff]   ;;  %v7401_v54 = vld [vmem:[#allocation6 + $0x24] ss:$16 sps:$4 sm:$0xff]  }
 0x502   :  { %1989 = vmatmul.mubr.bf16.vlgmr.msra.gmra.mrb[48].mxu1 %v8825_v37  ;;  %2062 = vmatmul.mubr.bf16.vlgmr.msra.gmra.mrb[64].mxu0 %v8825_v37 }
 0x503   :  { %2103 = vmatpush1.bf16.msra.mxu1 %v8684_v48  ;;  %2176 = vmatpush1.bf16.msra.mxu0 %v8688_v52  ;;  %v7398_v48 = vld [vmem:[#allocation6 + $0xc] ss:$16 sps:$4 sm:$0xff]   ;;  %v7396_v52 = vld [vmem:[#allocation6 + $0x8] ss:$16 sps:$4 sm:$0xff]  }
 0x504   :  { %2104 = vmatprep.subr.bf16.mxu1 %v8707_v29  ;;  %2177 = vmatprep.subr.bf16.mxu0 %v9513_v14  ;;  %v7399_v29 = vld [vmem:[#allocation6 + $0x20] ss:$16 sps:$4 sm:$0xff]   ;;  %v7464_v14 = vld [vmem:[#allocation6 + $0x16c] ss:$16 sps:$4 sm:$0xff]  }
 0x505   :  { %1998 = vmatprep.mubr.bf16.mxu1 %v9504_v46  ;;  %2071 = vmatprep.mubr.bf16.mxu0 %v9504_v46 }
 0x507   :  { %2105 = vmatpush1.bf16.msra.mxu1 %v9514_v15  ;;  %2178 = vmatpush1.bf16.msra.mxu0 %v9515_v24  ;;  %v7459_v15 = vld [vmem:[#allocation6 + $0x160] ss:$16 sps:$4 sm:$0xff]   ;;  %v7462_v24 = vld [vmem:[#allocation6 + $0x168] ss:$16 sps:$4 sm:$0xff]  }
 0x508   :  { %2106 = vmatprep.subr.bf16.mxu1 %v9516_v25  ;;  %2179 = vmatprep.subr.bf16.mxu0 %v9517_v8  ;;  %v7467_v25 = vld [vmem:[#allocation6 + $0x184] ss:$16 sps:$4 sm:$0xff]   ;;  %v7470_v8 = vld [vmem:[#allocation6 + $0x18c] ss:$16 sps:$4 sm:$0xff]  }
 0x50a   :  { %1999 = vmatmul.mubr.bf16.gmra.mrb[52].mxu1 %v8821_v36  ;;  %2072 = vmatmul.mubr.bf16.gmra.mrb[68].mxu0 %v8821_v36 }
 0x50b   :  { %2107 = vmatpush1.bf16.msra.mxu1 %v9518_v51  ;;  %2180 = vmatpush1.bf16.msra.mxu0 %v9519_v56  ;;  %v7465_v51 = vld [vmem:[#allocation6 + $0x180] ss:$16 sps:$4 sm:$0xff]   ;;  %v7468_v56 = vld [vmem:[#allocation6 + $0x188] ss:$16 sps:$4 sm:$0xff]  }
 0x50c   :  { %2108 = vmatprep.subr.bf16.mxu1 %v9520_v5  ;;  %2181 = vmatprep.subr.bf16.mxu0 %v9521_v10  ;;  %v7473_v5 = vld [vmem:[#allocation6 + $0x1a4] ss:$16 sps:$4 sm:$0xff]   ;;  %v7476_v10 = vld [vmem:[#allocation6 + $0x1ac] ss:$16 sps:$4 sm:$0xff]  }
 0x50d   :  { %2008 = vmatprep.mubr.bf16.mxu1 %v9504_v46  ;;  %2081 = vmatprep.mubr.bf16.mxu0 %v9504_v46 }
 0x50f   :  { %2109 = vmatpush1.bf16.msra.mxu1 %v9522_v32  ;;  %2182 = vmatpush1.bf16.msra.mxu0 %v8748_v31  ;;  %v7410_v31 = vld [vmem:[#allocation6 + $0x4c] ss:$16 sps:$4 sm:$0xff]   ;;  %v7471_v32 = vld [vmem:[#allocation6 + $0x1a0] ss:$16 sps:$4 sm:$0xff]  }
 0x510   :  { %2110 = vmatprep.subr.bf16.mxu1 %v8753_v23  ;;  %2183 = vmatprep.subr.bf16.mxu0 %v9523_v26  ;;  %v7405_v23 = vld [vmem:[#allocation6 + $0x40] ss:$16 sps:$4 sm:$0xff]   ;;  %v7474_v26 = vld [vmem:[#allocation6 + $0x1a8] ss:$16 sps:$4 sm:$0xff]  }
 0x512   :  { %2009 = vmatmul.mubr.bf16.gmra.mrb[56].mxu1 %v8857_v12  ;;  %2082 = vmatmul.mubr.bf16.gmra.mrb[72].mxu0 %v8857_v12 }
 0x513   :  { %2111 = vmatpush1.bf16.msra.mxu1 %v9524_v28  ;;  %2184 = vmatpush1.bf16.msra.mxu0 %v9525_v18  ;;  %v7479_v28 = vld [vmem:[#allocation6 + $0x1c4] ss:$16 sps:$4 sm:$0xff]   ;;  %v7482_v18 = vld [vmem:[#allocation6 + $0x1cc] ss:$16 sps:$4 sm:$0xff]  }
 0x514   :  { %2112 = vmatprep.subr.bf16.mxu1 %v9526_v34  ;;  %2185 = vmatprep.subr.bf16.mxu0 %v9527_v35  ;;  %v7477_v34 = vld [vmem:[#allocation6 + $0x1c0] ss:$16 sps:$4 sm:$0xff]   ;;  %v7480_v35 = vld [vmem:[#allocation6 + $0x1c8] ss:$16 sps:$4 sm:$0xff]  }
 0x515   :  { %2018 = vmatprep.mubr.bf16.mxu1 %v9504_v46  ;;  %2091 = vmatprep.mubr.bf16.mxu0 %v9504_v46 }
 0x517   :  { %2113 = vmatpush1.bf16.msra.mxu1 %v8779_v19  ;;  %2186 = vmatpush1.bf16.msra.mxu0 %v9528_v27  ;;  %v7416_v19 = vld [vmem:[#allocation6 + $0x6c] ss:$16 sps:$4 sm:$0xff]   ;;  %v7485_v27 = vld [vmem:[#allocation6 + $0x1e4] ss:$16 sps:$4 sm:$0xff]  }
 0x518   :  { %2114 = vmatprep.subr.bf16.mxu1 %v9529_v42  ;;  %2187 = vmatprep.subr.bf16.mxu0 %v9530_v45  ;;  %v7488_v42 = vld [vmem:[#allocation6 + $0x1ec] ss:$16 sps:$4 sm:$0xff]   ;;  %v7483_v45 = vld [vmem:[#allocation6 + $0x1e0] ss:$16 sps:$4 sm:$0xff]  }
 0x51a   :  { %2019 = vmatmul.mubr.bf16.gmra.mrb[60].mxu1 %v8853_v11  ;;  %2092 = vmatmul.mubr.bf16.gmra.mrb[76].mxu0 %v8853_v11 }
 0x51b   :  { %2115 = vmatpush1.bf16.msra.mxu1 %v8793_v59  ;;  %2188 = vmatpush1.bf16.msra.mxu0 %v9531_v40  ;;  %v7417_v59 = vld [vmem:[#allocation6 + $0x80] ss:$16 sps:$4 sm:$0xff]   ;;  %v7486_v40 = vld [vmem:[#allocation6 + $0x1e8] ss:$16 sps:$4 sm:$0xff]  }
 0x51c   :  { %2116 = vmatprep.subr.bf16.mxu1 %v8799_v38  ;;  %2189 = vmatprep.subr.bf16.mxu0 %v8801_v16  ;;  %v7425_v38 = vld [vmem:[#allocation6 + $0xa4] ss:$16 sps:$4 sm:$0xff]   ;;  %v7428_v16 = vld [vmem:[#allocation6 + $0xac] ss:$16 sps:$4 sm:$0xff]  }
 0x51d   :  { %2134 = vmatprep.mubr.bf16.mxu1 %v9504_v46  ;;  %2207 = vmatprep.mubr.bf16.mxu0 %v9504_v46 }
 0x51f   :  { %2117 = vmatpush1.bf16.msra.mxu1 %v8809_v3  ;;  %2190 = vmatpush1.bf16.msra.mxu0 %v8811_v13  ;;  %v7431_v3 = vld [vmem:[#allocation6 + $0xc4] ss:$16 sps:$4 sm:$0xff]   ;;  %v7434_v13 = vld [vmem:[#allocation6 + $0xcc] ss:$16 sps:$4 sm:$0xff]  }
 0x520   :  { %3991 = vmatprep.subr.bf16.mxu1 %v7395_v41  ;;  %4155 = vmatprep.subr.bf16.mxu0 %v7398_v48  ;;  %v7491_v41 = vld [vmem:[#allocation6 + $0x204] ss:$16 sps:$4 sm:$0xff]   ;;  %v7494_v48 = vld [vmem:[#allocation6 + $0x20c] ss:$16 sps:$4 sm:$0xff]  }
 0x522   :  { %2135 = vmatmul.mubr.bf16.vlgmr.msra.gmra.mrb[64].mxu1 %v8825_v37  ;;  %2208 = vmatmul.mubr.bf16.vlgmr.msra.gmra.mrb[80].mxu0 %v8825_v37  ;;  %v7435_v37 = vld [vmem:[#allocation6 + $0xe0] ss:$16 sps:$4 sm:$0xff]  }
 0x523   :  { %2144 = vmatprep.mubr.bf16.mxu1 %v9504_v46  ;;  %2217 = vmatprep.mubr.bf16.mxu0 %v9504_v46 }
 0x524   :  { %3992 = vmatpush1.bf16.msra.mxu1 %v7393_v49  ;;  %4156 = vmatpush1.bf16.msra.mxu0 %v7396_v52  ;;  %v8946_v49 = vld [vmem:[%s9410_s11] sm:$0xff] }
 0x525   :  { %3993 = vmatprep.subr.bf16.mxu1 %v7401_v54  ;;  %4157 = vmatprep.subr.bf16.mxu0 %v7404_v57  ;;  %v9532_v52 = vld [vmem:[#allocation20_spill] sm:$0xff]  ;;  %v9533_v57 = vld [vmem:[#allocation22_spill] sm:$0xff] }
 0x526   :  { %v1150_v54 = vsub.s32 3, %v9532_v52 }
 0x528   :  { %3994 = vmatpush1.bf16.msra.mxu1 %v7399_v29  ;;  %4158 = vmatpush1.bf16.msra.mxu0 %v7402_v30  ;;  %v8951_v29 = vrot.slane %v8946_v49, %v9533_v57  ;;  %v9534_v30 = vld [vmem:[#allocation21_spill] sm:$0xff] }
 0x529   :  { %4159 = vmatprep.subr.bf16.mxu0 %v7410_v31  ;;  %v9535_v31 = vld [vmem:[#allocation23_spill] sm:$0xff] }
 0x52a   :  { %2145 = vmatmul.mubr.bf16.gmra.mrb[68].mxu1 %v8821_v36  ;;  %2218 = vmatmul.mubr.bf16.gmra.mrb[84].mxu0 %v8821_v36  ;;  %v7440_v36 = vld [vmem:[#allocation6 + $0xec] ss:$16 sps:$4 sm:$0xff]  }
 0x52b   :  { %2154 = vmatprep.mubr.bf16.mxu1 %v9504_v46  ;;  %2227 = vmatprep.mubr.bf16.mxu0 %v9504_v46 }
 0x52c   :  { %4160 = vmatpush1.bf16.msra.mxu0 %v7408_v2  ;;  %v8964_v2 = vrot.slane %v8946_v49, %v1150_v54 }
 0x52d   :  { %4161 = vmatprep.subr.bf16.mxu0 %v7416_v19 }
 0x530   :  { %4162 = vmatpush1.bf16.msra.mxu0 %v7414_v21 }
 0x531   :  { %4163 = vmatprep.subr.bf16.mxu0 %v7422_v63 }
 0x532   :  { %2155 = vmatmul.mubr.bf16.gmra.mrb[72].mxu1 %v8857_v12  ;;  %2228 = vmatmul.mubr.bf16.gmra.mrb[88].mxu0 %v8857_v12  ;;  %v7461_v12 = vld [vmem:[#allocation6 + $0x164] ss:$16 sps:$4 sm:$0xff]  }
 0x533   :  { %2164 = vmatprep.mubr.bf16.mxu1 %v9504_v46  ;;  %2237 = vmatprep.mubr.bf16.mxu0 %v9504_v46  ;;  %v7407_v46 = vld [vmem:[#allocation6 + $0x44] ss:$16 sps:$4 sm:$0xff]  }
 0x534   :  { %3995 = vmatprep.subr.bf16.mxu1 %v7407_v46  ;;  %4164 = vmatpush1.bf16.msra.mxu0 %v7420_v9  ;;  %v8955_v46 = vrot.slane %v8946_v49, %v9534_v30 }
 0x535   :  { %3996 = vmatpush1.bf16.msra.mxu1 %v7405_v23  ;;  %4165 = vmatprep.subr.bf16.mxu0 %v7428_v16  ;;  %v8959_v23 = vrot.slane %v8946_v49, %v9535_v31 }
 0x536   :  { %3997 = vmatprep.subr.bf16.mxu1 %v7413_v61 }
 0x538   :  { %4166 = vmatpush1.bf16.msra.mxu0 %v7426_v33 }
 0x539   :  { %3998 = vmatpush1.bf16.msra.mxu1 %v7411_v20  ;;  %4167 = vmatprep.subr.bf16.mxu0 %v7434_v13 }
 0x53a   :  { %2165 = vmatmul.mubr.bf16.gmra.mrb[76].mxu1 %v8853_v11  ;;  %2238 = vmatmul.mubr.bf16.gmra.mrb[92].mxu0 %v8853_v11  ;;  %v7456_v11 = vld [vmem:[#allocation6 + $0x148] ss:$16 sps:$4 sm:$0xff]  }
 0x53b   :  { %3999 = vmatprep.subr.bf16.mxu1 %v7419_v22 }
 0x53c   :  { %4168 = vmatpush1.bf16.msra.mxu0 %v7432_v53 }
 0x53d   :  { %4000 = vmatpush1.bf16.msra.mxu1 %v7417_v59  ;;  %4169 = vmatprep.subr.bf16.mxu0 %v7440_v36 }
 0x53e   :  { %4001 = vmatprep.subr.bf16.mxu1 %v7425_v38 }
 0x540   :  { %4170 = vmatpush1.bf16.msra.mxu0 %v7438_v62 }
 0x541   :  { %4002 = vmatpush1.bf16.msra.mxu1 %v7423_v60  ;;  %4171 = vmatprep.subr.bf16.mxu0 %v7446_v0 }
 0x542   :  { %4003 = vmatprep.subr.bf16.mxu1 %v7431_v3 }
 0x544   :  { %4172 = vmatpush1.bf16.msra.mxu0 %v7444_v17 }
 0x545   :  { %4004 = vmatpush1.bf16.msra.mxu1 %v7429_v50  ;;  %4173 = vmatprep.subr.bf16.mxu0 %v7452_v55 }
 0x546   :  { %4005 = vmatprep.subr.bf16.mxu1 %v7437_v39 }
 0x548   :  { %4174 = vmatpush1.bf16.msra.mxu0 %v7450_v47 }
 0x549   :  { %4006 = vmatpush1.bf16.msra.mxu1 %v7435_v37  ;;  %4175 = vmatprep.subr.bf16.mxu0 %v7458_v44 }
 0x54a   :  { %4007 = vmatprep.subr.bf16.mxu1 %v7443_v58 }
 0x54c   :  { %4176 = vmatpush1.bf16.msra.mxu0 %v7456_v11 }
 0x54d   :  { %4008 = vmatpush1.bf16.msra.mxu1 %v7441_v4  ;;  %4177 = vmatprep.subr.bf16.mxu0 %v7464_v14 }
 0x54e   :  { %4009 = vmatprep.subr.bf16.mxu1 %v7449_v7 }
 0x550   :  { %4178 = vmatpush1.bf16.msra.mxu0 %v7462_v24 }
 0x551   :  { %4010 = vmatpush1.bf16.msra.mxu1 %v7447_v6  ;;  %4179 = vmatprep.subr.bf16.mxu0 %v7470_v8 }
 0x552   :  { %4011 = vmatprep.subr.bf16.mxu1 %v7455_v1 }
 0x554   :  { %4180 = vmatpush1.bf16.msra.mxu0 %v7468_v56 }
 0x555   :  { %4012 = vmatpush1.bf16.msra.mxu1 %v7453_v43  ;;  %4181 = vmatprep.subr.bf16.mxu0 %v7476_v10 }
 0x556   :  { %4013 = vmatprep.subr.bf16.mxu1 %v7461_v12 }
 0x558   :  { %4182 = vmatpush1.bf16.msra.mxu0 %v7474_v26 }
 0x559   :  { %4014 = vmatpush1.bf16.msra.mxu1 %v7459_v15  ;;  %4183 = vmatprep.subr.bf16.mxu0 %v7482_v18 }
 0x55a   :  { %4015 = vmatprep.subr.bf16.mxu1 %v7467_v25 }
 0x55c   :  { %4184 = vmatpush1.bf16.msra.mxu0 %v7480_v35 }
 0x55d   :  { %4016 = vmatpush1.bf16.msra.mxu1 %v7465_v51  ;;  %4185 = vmatprep.subr.bf16.mxu0 %v7488_v42 }
 0x55e   :  { %4017 = vmatprep.subr.bf16.mxu1 %v7473_v5 }
 0x560   :  { %4186 = vmatpush1.bf16.msra.mxu0 %v7486_v40 }
 0x561   :  { %4018 = vmatpush1.bf16.msra.mxu1 %v7471_v32  ;;  %4196 = vmatprep.subr.bf16.mxu0 %v7494_v48 }
 0x562   :  { %4019 = vmatprep.subr.bf16.mxu1 %v7479_v28 }
 0x565   :  { %4020 = vmatpush1.bf16.msra.mxu1 %v7477_v34 }
 0x566   :  { %4021 = vmatprep.subr.bf16.mxu1 %v7485_v27 }
 0x569   :  { %4022 = vmatpush1.bf16.msra.mxu1 %v7483_v45 }
 0x56a   :  { %4032 = vmatprep.subr.bf16.mxu1 %v7491_v41 }
 0x595   :  { %v1530_v61 = vpop.f32.mrb[16].mxu1  ;;  %v1603_v19 = vpop.f32.mrb[32].mxu0 }
 0x596   :  { %v1531_v20 = vadd.f32 %v1530_v61, %v8955_v46  ;;  %v1604_v21 = vadd.f32 %v1603_v19, %v8951_v29  ;;  %v1532_v22 = vpop.f32.mrb[17].mxu1  ;;  %v1605_v63 = vpop.f32.mrb[33].mxu0 }
 0x597   :  { %v1533_v59 = vadd.f32 %v1532_v22, %v8959_v23  ;;  %v1606_v9 = vadd.f32 %v1605_v63, %v8964_v2  ;;  %v1534_v38 = vpop.f32.mrb[18].mxu1  ;;  %v1607_v16 = vpop.f32.mrb[34].mxu0 }
 0x598   :  { %v1535_v60 = vadd.f32 %v1534_v38, %v8955_v46  ;;  %v1608_v33 = vadd.f32 %v1607_v16, %v8951_v29  ;;  %v1536_v3 = vpop.f32.mrb[19].mxu1  ;;  %v1609_v13 = vpop.f32.mrb[35].mxu0  ;;  %v1788_v39 = vmax.f32 %v1531_v20, 0.0  ;;  %v1790_v36 = vmax.f32 %v1604_v21, 0.0 }
 0x599   :  { %v1537_v50 = vadd.f32 %v1536_v3, %v8959_v23  ;;  %v1610_v53 = vadd.f32 %v1609_v13, %v8964_v2  ;;  %v1789_v58 = vmax.f32 %v1533_v59, 0.0  ;;  %v1791_v0 = vmax.f32 %v1606_v9, 0.0 }
 0x59a   :  { %v1796_v37 = vmax.f32 %v1535_v60, 0.0  ;;  %v1798_v62 = vmax.f32 %v1608_v33, 0.0 }
 0x59b   :  { %v1797_v4 = vmax.f32 %v1537_v50, 0.0  ;;  %v1799_v17 = vmax.f32 %v1610_v53, 0.0 }
 0x59c   :  { %v1852_v7 = vmax.f32 %v1788_v39, %v1796_v37  ;;  %v1878_v55 = vmax.f32 %v1790_v36, %v1798_v62 }
 0x59d   :  { %v1865_v6 = vmax.f32 %v1789_v58, %v1797_v4  ;;  %v1891_v47 = vmax.f32 %v1791_v0, %v1799_v17  ;;  %v1540_v1 = vpop.f32.mrb[20].mxu1  ;;  %v1613_v44 = vpop.f32.mrb[36].mxu0 }
 0x59e   :  { %v1541_v43 = vadd.f32 %v1540_v1, %v8955_v46  ;;  %v1614_v11 = vadd.f32 %v1613_v44, %v8951_v29  ;;  %v1542_v12 = vpop.f32.mrb[21].mxu1  ;;  %v1615_v14 = vpop.f32.mrb[37].mxu0 }
 0x59f   :  { %v1543_v15 = vadd.f32 %v1542_v12, %v8959_v23  ;;  %v1616_v24 = vadd.f32 %v1615_v14, %v8964_v2  ;;  %v1544_v25 = vpop.f32.mrb[22].mxu1  ;;  %v1617_v8 = vpop.f32.mrb[38].mxu0 }
 0x5a0   :  { %v1804_v51 = vmax.f32 %v1541_v43, 0.0  ;;  %v1806_v56 = vmax.f32 %v1614_v11, 0.0  ;;  %v1545_v5 = vadd.f32 %v1544_v25, %v8955_v46  ;;  %v1618_v10 = vadd.f32 %v1617_v8, %v8951_v29  ;;  %v1546_v32 = vpop.f32.mrb[23].mxu1  ;;  %v1619_v26 = vpop.f32.mrb[39].mxu0 }
 0x5a1   :  { %v1805_v28 = vmax.f32 %v1543_v15, 0.0  ;;  %v1807_v18 = vmax.f32 %v1616_v24, 0.0  ;;  %v1547_v34 = vadd.f32 %v1546_v32, %v8959_v23  ;;  %v1620_v35 = vadd.f32 %v1619_v26, %v8964_v2 }
 0x5a2   :  { %v1853_v27 = vmax.f32 %v1852_v7, %v1804_v51  ;;  %v1879_v42 = vmax.f32 %v1878_v55, %v1806_v56  ;;  %v1812_v45 = vmax.f32 %v1545_v5, 0.0  ;;  %v1814_v40 = vmax.f32 %v1618_v10, 0.0 }
 0x5a3   :  { %v1866_v41 = vmax.f32 %v1865_v6, %v1805_v28  ;;  %v1892_v48 = vmax.f32 %v1891_v47, %v1807_v18  ;;  %v1813_v61 = vmax.f32 %v1547_v34, 0.0  ;;  %v1815_v19 = vmax.f32 %v1620_v35, 0.0 }
 0x5a4   :  { %v1854_v20 = vmax.f32 %v1853_v27, %v1812_v45  ;;  %v1880_v21 = vmax.f32 %v1879_v42, %v1814_v40  ;;  %v1154_v28 = vsub.s32 4, %v9532_v52  ;;  %v1162_v18 = vsub.s32 6, %v9532_v52 }
 0x5a5   :  { %v1867_v22 = vmax.f32 %v1866_v41, %v1813_v61  ;;  %v1893_v63 = vmax.f32 %v1892_v48, %v1815_v19  ;;  %v1550_v59 = vpop.f32.mrb[24].mxu1  ;;  %v1623_v9 = vpop.f32.mrb[40].mxu0  ;;  %v1158_v45 = vsub.s32 5, %v9532_v52  ;;  %v1166_v40 = vsub.s32 7, %v9532_v52 }
 0x5a6   :  { %v1551_v38 = vadd.f32 %v1550_v59, %v8955_v46  ;;  %v1624_v16 = vadd.f32 %v1623_v9, %v8951_v29  ;;  %v1552_v60 = vpop.f32.mrb[25].mxu1  ;;  %v1625_v33 = vpop.f32.mrb[41].mxu0 }
 0x5a7   :  { %v1553_v3 = vadd.f32 %v1552_v60, %v8959_v23  ;;  %v1626_v13 = vadd.f32 %v1625_v33, %v8964_v2  ;;  %v1554_v50 = vpop.f32.mrb[26].mxu1  ;;  %v1627_v53 = vpop.f32.mrb[42].mxu0 }
 0x5a8   :  { %v1820_v39 = vmax.f32 %v1551_v38, 0.0  ;;  %v1822_v36 = vmax.f32 %v1624_v16, 0.0  ;;  %v1555_v37 = vadd.f32 %v1554_v50, %v8955_v46  ;;  %v1628_v62 = vadd.f32 %v1627_v53, %v8951_v29  ;;  %v1556_v58 = vpop.f32.mrb[27].mxu1  ;;  %v1629_v0 = vpop.f32.mrb[43].mxu0 }
 0x5a9   :  { %v1821_v4 = vmax.f32 %v1553_v3, 0.0  ;;  %v1823_v17 = vmax.f32 %v1626_v13, 0.0  ;;  %v1557_v7 = vadd.f32 %v1556_v58, %v8959_v23  ;;  %v1630_v55 = vadd.f32 %v1629_v0, %v8964_v2 }
 0x5aa   :  { %v1855_v6 = vmax.f32 %v1854_v20, %v1820_v39  ;;  %v1881_v47 = vmax.f32 %v1880_v21, %v1822_v36  ;;  %v1828_v1 = vmax.f32 %v1555_v37, 0.0  ;;  %v1830_v44 = vmax.f32 %v1628_v62, 0.0 }
 0x5ab   :  { %v1868_v43 = vmax.f32 %v1867_v22, %v1821_v4  ;;  %v1894_v11 = vmax.f32 %v1893_v63, %v1823_v17  ;;  %v1829_v12 = vmax.f32 %v1557_v7, 0.0  ;;  %v1831_v14 = vmax.f32 %v1630_v55, 0.0 }
 0x5ac   :  { %v1856_v15 = vmax.f32 %v1855_v6, %v1828_v1  ;;  %v1882_v24 = vmax.f32 %v1881_v47, %v1830_v44  ;;  %v9007_v37 = vrot.slane %v8946_v49, %v1154_v28  ;;  %v9010_v62 = vrot.slane %v8946_v49, %v1162_v18 }
 0x5ad   :  { %v1869_v25 = vmax.f32 %v1868_v43, %v1829_v12  ;;  %v1895_v8 = vmax.f32 %v1894_v11, %v1831_v14  ;;  %v1560_v51 = vpop.f32.mrb[28].mxu1  ;;  %v1633_v56 = vpop.f32.mrb[44].mxu0  ;;  %v9017_v7 = vrot.slane %v8946_v49, %v1158_v45  ;;  %v9020_v55 = vrot.slane %v8946_v49, %v1166_v40 }
 0x5ae   :  { %v1561_v5 = vadd.f32 %v1560_v51, %v8955_v46  ;;  %v1634_v10 = vadd.f32 %v1633_v56, %v8951_v29  ;;  %v1562_v32 = vpop.f32.mrb[29].mxu1  ;;  %v1635_v26 = vpop.f32.mrb[45].mxu0 }
 0x5af   :  { %v1563_v34 = vadd.f32 %v1562_v32, %v8959_v23  ;;  %v1636_v35 = vadd.f32 %v1635_v26, %v8964_v2  ;;  %v1564_v27 = vpop.f32.mrb[30].mxu1  ;;  %v1637_v42 = vpop.f32.mrb[46].mxu0 }
 0x5b0   :  { %v1836_v41 = vmax.f32 %v1561_v5, 0.0  ;;  %v1838_v48 = vmax.f32 %v1634_v10, 0.0  ;;  %v1565_v61 = vadd.f32 %v1564_v27, %v8955_v46  ;;  %v1638_v19 = vadd.f32 %v1637_v42, %v8951_v29  ;;  %v1566_v20 = vpop.f32.mrb[31].mxu1  ;;  %v1639_v21 = vpop.f32.mrb[47].mxu0 }
 0x5b1   :  { %v1837_v22 = vmax.f32 %v1563_v34, 0.0  ;;  %v1839_v63 = vmax.f32 %v1636_v35, 0.0  ;;  %v1567_v59 = vadd.f32 %v1566_v20, %v8959_v23  ;;  %v1640_v9 = vadd.f32 %v1639_v21, %v8964_v2 }
 0x5b2   :  { %v1857_v38 = vmax.f32 %v1856_v15, %v1836_v41  ;;  %v1883_v16 = vmax.f32 %v1882_v24, %v1838_v48  ;;  %v1844_v60 = vmax.f32 %v1565_v61, 0.0  ;;  %v1846_v33 = vmax.f32 %v1638_v19, 0.0 }
 0x5b3   :  { %v1870_v3 = vmax.f32 %v1869_v25, %v1837_v22  ;;  %v1896_v13 = vmax.f32 %v1895_v8, %v1839_v63  ;;  %v1845_v50 = vmax.f32 %v1567_v59, 0.0  ;;  %v1847_v53 = vmax.f32 %v1640_v9, 0.0 }
 0x5b4   :  { %v9002_v39 = vmax.f32 %v1857_v38, %v1844_v60  ;;  %v9004_v36 = vmax.f32 %v1883_v16, %v1846_v33 }
 0x5b5   :  { %v9012_v58 = vmax.f32 %v1870_v3, %v1845_v50  ;;  %v9014_v0 = vmax.f32 %v1896_v13, %v1847_v53  ;;  %v1676_v4 = vpop.f32.mrb[32].mxu1  ;;  %v1749_v17 = vpop.f32.mrb[48].mxu0 }
 0x5b6   :  { %v1678_v6 = vpop.f32.mrb[33].mxu1  ;;  %v1751_v47 = vpop.f32.mrb[49].mxu0  ;;  %v1677_v43 = vadd.f32 %v1676_v4, %v9007_v37  ;;  %v1750_v11 = vadd.f32 %v1749_v17, %v9010_v62 }
 0x5b7   :  { %v1680_v1 = vpop.f32.mrb[34].mxu1  ;;  %v1753_v44 = vpop.f32.mrb[50].mxu0  ;;  %v1679_v15 = vadd.f32 %v1678_v6, %v9017_v7  ;;  %v1752_v24 = vadd.f32 %v1751_v47, %v9020_v55 }
 0x5b8   :  { %v1682_v12 = vpop.f32.mrb[35].mxu1  ;;  %v1755_v14 = vpop.f32.mrb[51].mxu0  ;;  %v1681_v25 = vadd.f32 %v1680_v1, %v9007_v37  ;;  %v1754_v8 = vadd.f32 %v1753_v44, %v9010_v62  ;;  %v1792_v56 = vmax.f32 %v1677_v43, 0.0  ;;  %v1794_v5 = vmax.f32 %v1750_v11, 0.0 }
 0x5b9   :  { %v1683_v49 = vadd.f32 %v1682_v12, %v9017_v7  ;;  %v1756_v51 = vadd.f32 %v1755_v14, %v9020_v55  ;;  %v1793_v26 = vmax.f32 %v1679_v15, 0.0  ;;  %v1795_v28 = vmax.f32 %v1752_v24, 0.0 }
 0x5ba   :  { %v1800_v10 = vmax.f32 %v1681_v25, 0.0  ;;  %v1802_v32 = vmax.f32 %v1754_v8, 0.0  ;;  %v1859_v11 = vrot.slane %v9002_v39, 4  ;;  %v1885_v12 = vrot.slane %v9004_v36, 4 }
 0x5bb   :  { %v1801_v18 = vmax.f32 %v1683_v49, 0.0  ;;  %v1803_v34 = vmax.f32 %v1756_v51, 0.0 }
 0x5bc   :  { %v1904_v42 = vmax.f32 %v1792_v56, %v1800_v10  ;;  %v1930_v45 = vmax.f32 %v1794_v5, %v1802_v32 }
 0x5bd   :  { %v1686_v35 = vpop.f32.mrb[36].mxu1  ;;  %v1759_v27 = vpop.f32.mrb[52].mxu0  ;;  %v1917_v48 = vmax.f32 %v1793_v26, %v1801_v18  ;;  %v1943_v61 = vmax.f32 %v1795_v28, %v1803_v34 }
 0x5be   :  { %v1688_v40 = vpop.f32.mrb[37].mxu1  ;;  %v1761_v41 = vpop.f32.mrb[53].mxu0  ;;  %v1687_v21 = vadd.f32 %v1686_v35, %v9007_v37  ;;  %v1760_v22 = vadd.f32 %v1759_v27, %v9010_v62 }
 0x5bf   :  { %v1690_v19 = vpop.f32.mrb[38].mxu1  ;;  %v1763_v20 = vpop.f32.mrb[54].mxu0  ;;  %v1689_v9 = vadd.f32 %v1688_v40, %v9017_v7  ;;  %v1762_v38 = vadd.f32 %v1761_v41, %v9020_v55 }
 0x5c0   :  { %v1692_v63 = vpop.f32.mrb[39].mxu1  ;;  %v1765_v59 = vpop.f32.mrb[55].mxu0  ;;  %v1691_v16 = vadd.f32 %v1690_v19, %v9007_v37  ;;  %v1764_v60 = vadd.f32 %v1763_v20, %v9010_v62  ;;  %v1808_v33 = vmax.f32 %v1687_v21, 0.0  ;;  %v1810_v3 = vmax.f32 %v1760_v22, 0.0 }
 0x5c1   :  { %v1693_v13 = vadd.f32 %v1692_v63, %v9017_v7  ;;  %v1766_v50 = vadd.f32 %v1765_v59, %v9020_v55  ;;  %v1809_v53 = vmax.f32 %v1689_v9, 0.0  ;;  %v1811_v4 = vmax.f32 %v1762_v38, 0.0 }
 0x5c2   :  { %v1816_v17 = vmax.f32 %v1691_v16, 0.0  ;;  %v1818_v6 = vmax.f32 %v1764_v60, 0.0  ;;  %v1905_v47 = vmax.f32 %v1904_v42, %v1808_v33  ;;  %v1931_v1 = vmax.f32 %v1930_v45, %v1810_v3 }
 0x5c3   :  { %v1817_v44 = vmax.f32 %v1693_v13, 0.0  ;;  %v1819_v43 = vmax.f32 %v1766_v50, 0.0  ;;  %v1918_v14 = vmax.f32 %v1917_v48, %v1809_v53  ;;  %v1944_v15 = vmax.f32 %v1943_v61, %v1811_v4 }
 0x5c4   :  { %v1906_v8 = vmax.f32 %v1905_v47, %v1816_v17  ;;  %v1932_v49 = vmax.f32 %v1931_v1, %v1818_v6  ;;  %v1872_v6 = vrot.slane %v9012_v58, 4  ;;  %v1898_v47 = vrot.slane %v9014_v0, 4 }
 0x5c5   :  { %v1696_v24 = vpop.f32.mrb[40].mxu1  ;;  %v1769_v25 = vpop.f32.mrb[56].mxu0  ;;  %v1919_v32 = vmax.f32 %v1918_v14, %v1817_v44  ;;  %v1945_v26 = vmax.f32 %v1944_v15, %v1819_v43  ;;  %v1860_v15 = vmax.f32 %v9002_v39, %v1859_v11 }
 0x5c6   :  { %v1697_v51 = vadd.f32 %v1696_v24, %v9007_v37  ;;  %v1770_v56 = vadd.f32 %v1769_v25, %v9010_v62  ;;  %v1698_v5 = vpop.f32.mrb[41].mxu1  ;;  %v1771_v10 = vpop.f32.mrb[57].mxu0  ;;  %v1886_v24 = vmax.f32 %v9004_v36, %v1885_v12 }
 0x5c7   :  { %v1699_v28 = vadd.f32 %v1698_v5, %v9017_v7  ;;  %v1772_v18 = vadd.f32 %v1771_v10, %v9020_v55  ;;  %v1700_v34 = vpop.f32.mrb[42].mxu1  ;;  %v1773_v35 = vpop.f32.mrb[58].mxu0 }
 0x5c8   :  { %v1824_v27 = vmax.f32 %v1697_v51, 0.0  ;;  %v1826_v42 = vmax.f32 %v1770_v56, 0.0  ;;  %v1701_v45 = vadd.f32 %v1700_v34, %v9007_v37  ;;  %v1774_v40 = vadd.f32 %v1773_v35, %v9010_v62  ;;  %v1702_v41 = vpop.f32.mrb[43].mxu1  ;;  %v1775_v48 = vpop.f32.mrb[59].mxu0 }
 0x5c9   :  { %v1825_v61 = vmax.f32 %v1699_v28, 0.0  ;;  %v1827_v19 = vmax.f32 %v1772_v18, 0.0  ;;  %v1703_v20 = vadd.f32 %v1702_v41, %v9017_v7  ;;  %v1776_v21 = vadd.f32 %v1775_v48, %v9020_v55 }
 0x5ca   :  { %v1907_v22 = vmax.f32 %v1906_v8, %v1824_v27  ;;  %v1933_v63 = vmax.f32 %v1932_v49, %v1826_v42  ;;  %v1832_v59 = vmax.f32 %v1701_v45, 0.0  ;;  %v1834_v9 = vmax.f32 %v1774_v40, 0.0 }
 0x5cb   :  { %v1920_v38 = vmax.f32 %v1919_v32, %v1825_v61  ;;  %v1946_v16 = vmax.f32 %v1945_v26, %v1827_v19  ;;  %v1833_v60 = vmax.f32 %v1703_v20, 0.0  ;;  %v1835_v33 = vmax.f32 %v1776_v21, 0.0 }
 0x5cc   :  { %v1908_v3 = vmax.f32 %v1907_v22, %v1832_v59  ;;  %v1934_v13 = vmax.f32 %v1933_v63, %v1834_v9  ;;  %v1873_v63 = vmax.f32 %v9012_v58, %v1872_v6  ;;  %v1899_v59 = vmax.f32 %v9014_v0, %v1898_v47 }
 0x5cd   :  { %v1921_v50 = vmax.f32 %v1920_v38, %v1833_v60  ;;  %v1947_v53 = vmax.f32 %v1946_v16, %v1835_v33  ;;  %v1706_v4 = vpop.f32.mrb[44].mxu1  ;;  %v1779_v17 = vpop.f32.mrb[60].mxu0  ;;  %v1861_v16 = vrot.slane %v1860_v15, 2  ;;  %v1887_v60 = vrot.slane %v1886_v24, 2 }
 0x5ce   :  { %v1707_v1 = vadd.f32 %v1706_v4, %v9007_v37  ;;  %v1780_v44 = vadd.f32 %v1779_v17, %v9010_v62  ;;  %v1708_v43 = vpop.f32.mrb[45].mxu1  ;;  %v1781_v14 = vpop.f32.mrb[61].mxu0  ;;  %v1900_v58 = vrot.slane %v1899_v59, 2 }
 0x5cf   :  { %v1709_v25 = vadd.f32 %v1708_v43, %v9017_v7  ;;  %v1782_v8 = vadd.f32 %v1781_v14, %v9020_v55  ;;  %v1710_v49 = vpop.f32.mrb[46].mxu1  ;;  %v1783_v51 = vpop.f32.mrb[62].mxu0  ;;  %v9076_v47 = vmax.f32 %v1860_v15, %v1861_v16  ;;  %v9078_v43 = vmax.f32 %v1886_v24, %v1887_v60 }
 0x5d0   :  { %v1840_v56 = vmax.f32 %v1707_v1, 0.0  ;;  %v1842_v5 = vmax.f32 %v1780_v44, 0.0  ;;  %v1711_v10 = vadd.f32 %v1710_v49, %v9007_v37  ;;  %v1784_v32 = vadd.f32 %v1783_v51, %v9010_v62  ;;  %v1712_v26 = vpop.f32.mrb[47].mxu1  ;;  %v1785_v28 = vpop.f32.mrb[63].mxu0 }
 0x5d1   :  { %v1841_v18 = vmax.f32 %v1709_v25, 0.0  ;;  %v1843_v34 = vmax.f32 %v1782_v8, 0.0  ;;  %v1713_v39 = vadd.f32 %v1712_v26, %v9017_v7  ;;  %v1786_v36 = vadd.f32 %v1785_v28, %v9020_v55 }
 0x5d2   :  { %v1909_v11 = vmax.f32 %v1908_v3, %v1840_v56  ;;  %v1935_v12 = vmax.f32 %v1934_v13, %v1842_v5  ;;  %v1848_v35 = vmax.f32 %v1711_v10, 0.0  ;;  %v1850_v27 = vmax.f32 %v1784_v32, 0.0 }
 0x5d3   :  { %v1922_v42 = vmax.f32 %v1921_v50, %v1841_v18  ;;  %v1948_v45 = vmax.f32 %v1947_v53, %v1843_v34  ;;  %v1849_v40 = vmax.f32 %v1713_v39, 0.0  ;;  %v1851_v41 = vmax.f32 %v1786_v36, 0.0 }
 0x5d4   :  { %v9060_v48 = vmax.f32 %v1909_v11, %v1848_v35  ;;  %v9062_v61 = vmax.f32 %v1935_v12, %v1850_v27  ;;  %v1874_v44 = vrot.slane %v1873_v63, 2  ;;  %v9084_v11 = vmax.f32 %v1899_v59, %v1900_v58 }
 0x5d5   :  { %v9064_v19 = vmax.f32 %v1922_v42, %v1849_v40  ;;  %v9066_v20 = vmax.f32 %v1948_v45, %v1851_v41  ;;  %v1990_v21 = vpop.f32.mrb[48].mxu1  ;;  %v2063_v22 = vpop.f32.mrb[64].mxu0  ;;  %v1863_v45 = vrot.slane %v9076_v47, 1  ;;  %v1889_v40 = vrot.slane %v9078_v43, 1 }
 0x5d6   :  { %v1992_v9 = vpop.f32.mrb[49].mxu1  ;;  %v2065_v38 = vpop.f32.mrb[65].mxu0  ;;  %v1991_v13 = vadd.f32 %v1990_v21, %v8955_v46  ;;  %v2064_v50 = vadd.f32 %v2063_v22, %v8951_v29  ;;  %v9082_v24 = vmax.f32 %v1873_v63, %v1874_v44 }
 0x5d7   :  { %v1994_v33 = vpop.f32.mrb[50].mxu1  ;;  %v2067_v3 = vpop.f32.mrb[66].mxu0  ;;  %v1993_v17 = vadd.f32 %v1992_v9, %v8959_v23  ;;  %v2066_v1 = vadd.f32 %v2065_v38, %v8964_v2 }
 0x5d8   :  { %v1996_v53 = vpop.f32.mrb[51].mxu1  ;;  %v2069_v4 = vpop.f32.mrb[67].mxu0  ;;  %v1995_v0 = vadd.f32 %v1994_v33, %v8955_v46  ;;  %v2068_v6 = vadd.f32 %v2067_v3, %v8951_v29  ;;  %v2248_v8 = vmax.f32 %v1991_v13, 0.0  ;;  %v2250_v49 = vmax.f32 %v2064_v50, 0.0 }
 0x5d9   :  { %v1997_v14 = vadd.f32 %v1996_v53, %v8959_v23  ;;  %v2070_v25 = vadd.f32 %v2069_v4, %v8964_v2  ;;  %v2249_v5 = vmax.f32 %v1993_v17, 0.0  ;;  %v2251_v10 = vmax.f32 %v2066_v1, 0.0 }
 0x5da   :  { %v2256_v51 = vmax.f32 %v1995_v0, 0.0  ;;  %v2258_v56 = vmax.f32 %v2068_v6, 0.0  ;;  %v1876_v6 = vrot.slane %v9082_v24, 1 }
 0x5db   :  { %v2257_v32 = vmax.f32 %v1997_v14, 0.0  ;;  %v2259_v26 = vmax.f32 %v2070_v25, 0.0  ;;  %v1902_v14 = vrot.slane %v9084_v11, 1 }
 0x5dc   :  { %v2312_v34 = vmax.f32 %v2248_v8, %v2256_v51  ;;  %v2338_v39 = vmax.f32 %v2250_v49, %v2258_v56 }
 0x5dd   :  { %v2000_v28 = vpop.f32.mrb[52].mxu1  ;;  %v2073_v18 = vpop.f32.mrb[68].mxu0  ;;  %v2325_v12 = vmax.f32 %v2249_v5, %v2257_v32  ;;  %v2351_v35 = vmax.f32 %v2251_v10, %v2259_v26 }
 0x5de   :  { %v2002_v15 = vpop.f32.mrb[53].mxu1  ;;  %v2075_v36 = vpop.f32.mrb[69].mxu0  ;;  %v2001_v41 = vadd.f32 %v2000_v28, %v8955_v46  ;;  %v2074_v21 = vadd.f32 %v2073_v18, %v8951_v29 }
 0x5df   :  { %v2004_v27 = vpop.f32.mrb[54].mxu1  ;;  %v2077_v42 = vpop.f32.mrb[70].mxu0  ;;  %v2003_v38 = vadd.f32 %v2002_v15, %v8959_v23  ;;  %v2076_v63 = vadd.f32 %v2075_v36, %v8964_v2 }
 0x5e0   :  { %v2006_v22 = vpop.f32.mrb[55].mxu1  ;;  %v2079_v9 = vpop.f32.mrb[71].mxu0  ;;  %v2005_v59 = vadd.f32 %v2004_v27, %v8955_v46  ;;  %v2078_v16 = vadd.f32 %v2077_v42, %v8951_v29  ;;  %v2264_v60 = vmax.f32 %v2001_v41, 0.0  ;;  %v2266_v33 = vmax.f32 %v2074_v21, 0.0 }
 0x5e1   :  { %v2007_v3 = vadd.f32 %v2006_v22, %v8959_v23  ;;  %v2080_v13 = vadd.f32 %v2079_v9, %v8964_v2  ;;  %v2265_v50 = vmax.f32 %v2003_v38, 0.0  ;;  %v2267_v53 = vmax.f32 %v2076_v63, 0.0 }
 0x5e2   :  { %v2272_v4 = vmax.f32 %v2005_v59, 0.0  ;;  %v2274_v17 = vmax.f32 %v2078_v16, 0.0  ;;  %v2313_v1 = vmax.f32 %v2312_v34, %v2264_v60  ;;  %v2339_v44 = vmax.f32 %v2338_v39, %v2266_v33 }
 0x5e3   :  { %v2273_v58 = vmax.f32 %v2007_v3, 0.0  ;;  %v2275_v0 = vmax.f32 %v2080_v13, 0.0  ;;  %v2326_v25 = vmax.f32 %v2325_v12, %v2265_v50  ;;  %v2352_v8 = vmax.f32 %v2351_v35, %v2267_v53 }
 0x5e4   :  { %v2314_v56 = vmax.f32 %v2313_v1, %v2272_v4  ;;  %v2340_v5 = vmax.f32 %v2339_v44, %v2274_v17  ;;  %v9107_v17 = vmax.f32 %v9076_v47, %v1863_v45 }
 0x5e5   :  { %v2010_v49 = vpop.f32.mrb[56].mxu1  ;;  %v2083_v51 = vpop.f32.mrb[72].mxu0  ;;  %v2327_v18 = vmax.f32 %v2326_v25, %v2273_v58  ;;  %v2353_v34 = vmax.f32 %v2352_v8, %v2275_v0  ;;  %v9110_v58 = vmax.f32 %v9078_v43, %v1889_v40  ;;  %v1937_v43 = vrot.slane %v9062_v61, 4 }
 0x5e6   :  { %v2011_v10 = vadd.f32 %v2010_v49, %v8955_v46  ;;  %v2084_v32 = vadd.f32 %v2083_v51, %v8951_v29  ;;  %v2012_v26 = vpop.f32.mrb[57].mxu1  ;;  %v2085_v28 = vpop.f32.mrb[73].mxu0  ;;  %v9113_v51 = vmax.f32 %v9082_v24, %v1876_v6  ;;  %v1924_v40 = vrot.slane %v9064_v19, 4 }
 0x5e7   :  { %v2013_v39 = vadd.f32 %v2012_v26, %v8959_v23  ;;  %v2086_v15 = vadd.f32 %v2085_v28, %v8964_v2  ;;  %v2014_v36 = vpop.f32.mrb[58].mxu1  ;;  %v2087_v27 = vpop.f32.mrb[74].mxu0 }
 0x5e8   :  { %v2280_v12 = vmax.f32 %v2011_v10, 0.0  ;;  %v2282_v35 = vmax.f32 %v2084_v32, 0.0  ;;  %v2015_v42 = vadd.f32 %v2014_v36, %v8955_v46  ;;  %v2088_v41 = vadd.f32 %v2087_v27, %v8951_v29  ;;  %v2016_v21 = vpop.f32.mrb[59].mxu1  ;;  %v2089_v22 = vpop.f32.mrb[75].mxu0 }
 0x5e9   :  { %v2281_v9 = vmax.f32 %v2013_v39, 0.0  ;;  %v2283_v38 = vmax.f32 %v2086_v15, 0.0  ;;  %v2017_v63 = vadd.f32 %v2016_v21, %v8959_v23  ;;  %v2090_v59 = vadd.f32 %v2089_v22, %v8964_v2 }
 0x5ea   :  { %v2315_v16 = vmax.f32 %v2314_v56, %v2280_v12  ;;  %v2341_v60 = vmax.f32 %v2340_v5, %v2282_v35  ;;  %v2288_v33 = vmax.f32 %v2015_v42, 0.0  ;;  %v2290_v3 = vmax.f32 %v2088_v41, 0.0 }
 0x5eb   :  { %v2328_v13 = vmax.f32 %v2327_v18, %v2281_v9  ;;  %v2354_v50 = vmax.f32 %v2353_v34, %v2283_v38  ;;  %v2289_v53 = vmax.f32 %v2017_v63, 0.0  ;;  %v2291_v4 = vmax.f32 %v2090_v59, 0.0 }
 0x5ec   :  { %v2316_v1 = vmax.f32 %v2315_v16, %v2288_v33  ;;  %v2342_v44 = vmax.f32 %v2341_v60, %v2290_v3  ;;  %v1911_v56 = vrot.slane %v9060_v48, 4  ;;  %v9119_v32 = vmax.f32 %v9084_v11, %v1902_v14 }
 0x5ed   :  { %v2329_v0 = vmax.f32 %v2328_v13, %v2289_v53  ;;  %v2355_v25 = vmax.f32 %v2354_v50, %v2291_v4  ;;  %v2020_v8 = vpop.f32.mrb[60].mxu1  ;;  %v2093_v49 = vpop.f32.mrb[76].mxu0  ;;  %v9134_v33 = vmax.f32 %v9062_v61, %v1937_v43 }
 0x5ee   :  { %v2021_v5 = vadd.f32 %v2020_v8, %v8955_v46  ;;  %v2094_v10 = vadd.f32 %v2093_v49, %v8951_v29  ;;  %v2022_v47 = vpop.f32.mrb[61].mxu1  ;;  %v2095_v45 = vpop.f32.mrb[77].mxu0 }
 0x5ef   :  { %v2023_v26 = vadd.f32 %v2022_v47, %v8959_v23  ;;  %v2096_v24 = vadd.f32 %v2095_v45, %v8964_v2  ;;  %v2024_v6 = vpop.f32.mrb[62].mxu1  ;;  %v2097_v28 = vpop.f32.mrb[78].mxu0 }
 0x5f0   :  { %v2296_v18 = vmax.f32 %v2021_v5, 0.0  ;;  %v2298_v34 = vmax.f32 %v2094_v10, 0.0  ;;  %v2025_v39 = vadd.f32 %v2024_v6, %v8955_v46  ;;  %v2098_v15 = vadd.f32 %v2097_v28, %v8951_v29  ;;  %v2026_v36 = vpop.f32.mrb[63].mxu1  ;;  %v2099_v27 = vpop.f32.mrb[79].mxu0 }
 0x5f1   :  { %v2297_v11 = vmax.f32 %v2023_v26, 0.0  ;;  %v2299_v14 = vmax.f32 %v2096_v24, 0.0  ;;  %v2027_v12 = vadd.f32 %v2026_v36, %v8959_v23  ;;  %v2100_v35 = vadd.f32 %v2099_v27, %v8964_v2 }
 0x5f2   :  { %v2317_v42 = vmax.f32 %v2316_v1, %v2296_v18  ;;  %v2343_v41 = vmax.f32 %v2342_v44, %v2298_v34  ;;  %v2304_v21 = vmax.f32 %v2025_v39, 0.0  ;;  %v2306_v22 = vmax.f32 %v2098_v15, 0.0 }
 0x5f3   :  { %v2330_v9 = vmax.f32 %v2329_v0, %v2297_v11  ;;  %v2356_v38 = vmax.f32 %v2355_v25, %v2299_v14  ;;  %v2305_v63 = vmax.f32 %v2027_v12, 0.0  ;;  %v2307_v59 = vmax.f32 %v2100_v35, 0.0 }
 0x5f4   :  { %v9130_v46 = vmax.f32 %v9060_v48, %v1911_v56  ;;  %v1950_v29 = vrot.slane %v9066_v20, 4  ;;  %v2318_v16 = vmax.f32 %v2317_v42, %v2304_v21  ;;  %v2344_v60 = vmax.f32 %v2343_v41, %v2306_v22 }
 0x5f5   :  { %v9137_v23 = vmax.f32 %v9064_v19, %v1924_v40  ;;  %v2331_v2 = vmax.f32 %v2330_v9, %v2305_v63  ;;  %v2357_v3 = vmax.f32 %v2356_v38, %v2307_v59  ;;  %v2136_v13 = vpop.f32.mrb[64].mxu1  ;;  %v2209_v50 = vpop.f32.mrb[80].mxu0 }
 0x5f6   :  { %v2319_v53 = vrot.slane %v2318_v16, 4  ;;  %v2345_v4 = vrot.slane %v2344_v60, 4  ;;  %v2137_v1 = vadd.f32 %v2136_v13, %v9007_v37  ;;  %v2210_v48 = vadd.f32 %v2209_v50, %v9010_v62  ;;  %v2138_v44 = vpop.f32.mrb[65].mxu1  ;;  %v2211_v0 = vpop.f32.mrb[81].mxu0 }
 0x5f7   :  { %v2332_v25 = vrot.slane %v2331_v2, 4  ;;  %v2358_v8 = vrot.slane %v2357_v3, 4  ;;  %v2139_v61 = vadd.f32 %v2138_v44, %v9017_v7  ;;  %v2212_v49 = vadd.f32 %v2211_v0, %v9020_v55  ;;  %v2140_v19 = vpop.f32.mrb[66].mxu1  ;;  %v2213_v56 = vpop.f32.mrb[82].mxu0 }
 0x5f8   :  { %v2320_v5 = vmax.f32 %v2318_v16, %v2319_v53  ;;  %v2346_v10 = vmax.f32 %v2344_v60, %v2345_v4  ;;  %v2252_v47 = vmax.f32 %v2137_v1, 0.0  ;;  %v2254_v45 = vmax.f32 %v2210_v48, 0.0  ;;  %v2142_v43 = vpop.f32.mrb[67].mxu1  ;;  %v2215_v40 = vpop.f32.mrb[83].mxu0 }
 0x5f9   :  { %v2333_v26 = vmax.f32 %v2331_v2, %v2332_v25  ;;  %v2359_v24 = vmax.f32 %v2357_v3, %v2358_v8  ;;  %v2253_v6 = vmax.f32 %v2139_v61, 0.0  ;;  %v2255_v28 = vmax.f32 %v2212_v49, 0.0 }
 0x5fa   :  { %v2321_v18 = vrot.slane %v2320_v5, 2  ;;  %v2347_v34 = vrot.slane %v2346_v10, 2  ;;  %v2141_v39 = vadd.f32 %v2140_v19, %v9007_v37  ;;  %v2214_v15 = vadd.f32 %v2213_v56, %v9010_v62 }
 0x5fb   :  { %v2334_v36 = vrot.slane %v2333_v26, 2  ;;  %v2360_v27 = vrot.slane %v2359_v24, 2  ;;  %v2143_v11 = vadd.f32 %v2142_v43, %v9017_v7  ;;  %v2216_v14 = vadd.f32 %v2215_v40, %v9020_v55 }
 0x5fc   :  { %v2322_v12 = vmax.f32 %v2320_v5, %v2321_v18  ;;  %v2348_v35 = vmax.f32 %v2346_v10, %v2347_v34  ;;  %v2260_v42 = vmax.f32 %v2141_v39, 0.0  ;;  %v2262_v41 = vmax.f32 %v2214_v15, 0.0 }
 0x5fd   :  { %v2335_v21 = vmax.f32 %v2333_v26, %v2334_v36  ;;  %v9147_v22 = vmax.f32 %v2359_v24, %v2360_v27  ;;  %v2261_v9 = vmax.f32 %v2143_v11, 0.0  ;;  %v2263_v38 = vmax.f32 %v2216_v14, 0.0  ;;  %v2146_v63 = vpop.f32.mrb[68].mxu1  ;;  %v2219_v59 = vpop.f32.mrb[84].mxu0 }
 0x5fe   :  { %v2323_v16 = vrot.slane %v2322_v12, 1  ;;  %v2349_v60 = vrot.slane %v2348_v35, 1  ;;  %v2364_v2 = vmax.f32 %v2252_v47, %v2260_v42  ;;  %v2390_v3 = vmax.f32 %v2254_v45, %v2262_v41  ;;  %v2148_v13 = vpop.f32.mrb[69].mxu1  ;;  %v2221_v50 = vpop.f32.mrb[85].mxu0 }
 0x5ff   :  { %v2336_v53 = vrot.slane %v2335_v21, 1  ;;  %v2362_v4 = vrot.slane %v9147_v22, 1  ;;  %v2377_v1 = vmax.f32 %v2253_v6, %v2261_v9  ;;  %v2403_v48 = vmax.f32 %v2255_v28, %v2263_v38  ;;  %v2150_v44 = vpop.f32.mrb[70].mxu1  ;;  %v2223_v0 = vpop.f32.mrb[86].mxu0 }
 0x600   :  { %v2324_v25 = vmax.f32 %v2322_v12, %v2323_v16  ;;  %v9150_v8 = vmax.f32 %v2348_v35, %v2349_v60  ;;  %v2147_v61 = vadd.f32 %v2146_v63, %v9007_v37  ;;  %v2220_v49 = vadd.f32 %v2219_v59, %v9010_v62  ;;  %v2152_v19 = vpop.f32.mrb[71].mxu1  ;;  %v2225_v56 = vpop.f32.mrb[87].mxu0 }
 0x601   :  { %v2149_v5 = vadd.f32 %v2148_v13, %v9017_v7  ;;  %v2222_v10 = vadd.f32 %v2221_v50, %v9020_v55  ;;  %v2151_v47 = vadd.f32 %v2150_v44, %v9007_v37  ;;  %v2224_v45 = vadd.f32 %v2223_v0, %v9010_v62 }
 0x602   :  { %v2268_v43 = vmax.f32 %v2147_v61, 0.0  ;;  %v2270_v40 = vmax.f32 %v2220_v49, 0.0  ;;  %v2153_v26 = vadd.f32 %v2152_v19, %v9017_v7  ;;  %v2226_v24 = vadd.f32 %v2225_v56, %v9020_v55  ;;  %v7489_v56 = vld [vmem:[#allocation6 + $0x200] ss:$16 sps:$4 sm:$0xff]  }
 0x603   :  { %v2269_v6 = vmax.f32 %v2149_v5, 0.0  ;;  %v2271_v28 = vmax.f32 %v2222_v10, 0.0  ;;  %v2276_v18 = vmax.f32 %v2151_v47, 0.0  ;;  %v2278_v34 = vmax.f32 %v2224_v45, 0.0  ;;  %v7492_v5 = vld [vmem:[#allocation6 + $0x208] ss:$16 sps:$4 sm:$0xff]  }
 0x604   :  { %v2365_v39 = vmax.f32 %v2364_v2, %v2268_v43  ;;  %v2391_v15 = vmax.f32 %v2390_v3, %v2270_v40  ;;  %v2277_v36 = vmax.f32 %v2153_v26, 0.0  ;;  %v2279_v27 = vmax.f32 %v2226_v24, 0.0  ;;  %v7497_v26 = vld [vmem:[#allocation6 + $0x224] ss:$16 sps:$4 sm:$0xff]   ;;  %v7500_v24 = vld [vmem:[#allocation6 + $0x22c] ss:$16 sps:$4 sm:$0xff]  }
 0x605   :  { %v2378_v11 = vmax.f32 %v2377_v1, %v2269_v6  ;;  %v2404_v14 = vmax.f32 %v2403_v48, %v2271_v28  ;;  %v2156_v12 = vpop.f32.mrb[72].mxu1  ;;  %v2229_v35 = vpop.f32.mrb[88].mxu0  ;;  %v2337_v42 = vmax.f32 %v2335_v21, %v2336_v53  ;;  %v2417_v41 = vsel %vm2416_vm1, %v9107_v17, %v2324_v25 }
 0x606   :  { %v2366_v9 = vmax.f32 %v2365_v39, %v2276_v18  ;;  %v2392_v38 = vmax.f32 %v2391_v15, %v2278_v34  ;;  %v2157_v63 = vadd.f32 %v2156_v12, %v9007_v37  ;;  %v2230_v59 = vadd.f32 %v2229_v35, %v9010_v62  ;;  %v2158_v16 = vpop.f32.mrb[73].mxu1  ;;  %v2231_v60 = vpop.f32.mrb[89].mxu0 }
 0x607   :  { %v2379_v2 = vmax.f32 %v2378_v11, %v2277_v36  ;;  %v2405_v3 = vmax.f32 %v2404_v14, %v2279_v27  ;;  %v2159_v13 = vadd.f32 %v2158_v16, %v9017_v7  ;;  %v2232_v50 = vadd.f32 %v2231_v60, %v9020_v55  ;;  %v2160_v1 = vpop.f32.mrb[74].mxu1  ;;  %v2233_v48 = vpop.f32.mrb[90].mxu0  ;;  %v7495_v14 = vld [vmem:[#allocation6 + $0x220] ss:$16 sps:$4 sm:$0xff]   ;;  %v7506_v60 = vld [vmem:[#allocation6 + $0x24c] ss:$16 sps:$4 sm:$0xff]  }
 0x608   :  { %v2284_v21 = vmax.f32 %v2157_v63, 0.0  ;;  %v2286_v53 = vmax.f32 %v2230_v59, 0.0  ;;  %v2418_v17 = vsel %vm2416_vm1, %v9113_v51, %v2337_v42  ;;  %v2161_v44 = vadd.f32 %v2160_v1, %v9007_v37  ;;  %v2162_v0 = vpop.f32.mrb[75].mxu1  ;;  %v2235_v25 = vpop.f32.mrb[91].mxu0 }
 0x609   :  { %v2285_v61 = vmax.f32 %v2159_v13, 0.0  ;;  %v2287_v49 = vmax.f32 %v2232_v50, 0.0  ;;  %v2426_v19 = vpack.c.bf16 %v2418_v17, %v2418_v17  ;;  %v2234_v10 = vadd.f32 %v2233_v48, %v9010_v62 }
 0x60a   :  { %v2367_v47 = vmax.f32 %v2366_v9, %v2284_v21  ;;  %v2393_v45 = vmax.f32 %v2392_v38, %v2286_v53  ;;  %v2292_v43 = vmax.f32 %v2161_v44, 0.0  ;;  %v2425_v40 = vpack.c.bf16 %v2417_v41, %v2417_v41 }
 0x60b   :  { %v2380_v6 = vmax.f32 %v2379_v2, %v2285_v61  ;;  %v2406_v28 = vmax.f32 %v2405_v3, %v2287_v49  ;;  %4023 = vmatprep.mubr.bf16.mxu1 %v2426_v19  ;;  %4187 = vmatprep.mubr.bf16.mxu0 %v2426_v19  ;;  %v2294_v51 = vmax.f32 %v2234_v10, 0.0  ;;  %v2163_v18 = vadd.f32 %v2162_v0, %v9017_v7  ;;  %v7501_v49 = vld [vmem:[#allocation6 + $0x240] ss:$16 sps:$4 sm:$0xff]   ;;  %v7504_v19 = vld [vmem:[#allocation6 + $0x248] ss:$16 sps:$4 sm:$0xff]  }
 0x60c   :  { %v2368_v34 = vmax.f32 %v2367_v47, %v2292_v43  ;;  %4024 = vmatmul.mubr.bf16.vlgmr.msra.gmra.mrb[80].mxu1 %v2425_v40  ;;  %4188 = vmatmul.mubr.bf16.vlgmr.msra.gmra.mrb[96].mxu0 %v2425_v40  ;;  %v2236_v39 = vadd.f32 %v2235_v25, %v9020_v55  ;;  %v2363_v15 = vmax.f32 %v9147_v22, %v2362_v4  ;;  %v7498_v4 = vld [vmem:[#allocation6 + $0x228] ss:$16 sps:$4 sm:$0xff]   ;;  %v7509_v43 = vld [vmem:[#allocation6 + $0x264] ss:$16 sps:$4 sm:$0xff]   ;;  %v7512_v40 = vld [vmem:[#allocation6 + $0x26c] ss:$16 sps:$4 sm:$0xff]  }
 0x60d   :  { %v9178_v36 = vmax.f32 %v9066_v20, %v1950_v29  ;;  %v2394_v27 = vmax.f32 %v2393_v45, %v2294_v51  ;;  %4033 = vmatpush1.bf16.msra.mxu1 %v7489_v56  ;;  %4197 = vmatpush1.bf16.msra.mxu0 %v7492_v5  ;;  %v2293_v11 = vmax.f32 %v2163_v18, 0.0  ;;  %v2166_v12 = vpop.f32.mrb[76].mxu1  ;;  %v2239_v35 = vpop.f32.mrb[92].mxu0  ;;  %v9183_v42 = vsel %vm2416_vm1, %v9110_v58, %v9150_v8  ;;  %v7503_v8 = vld [vmem:[#allocation6 + $0x244] ss:$16 sps:$4 sm:$0xff]  }
 0x60e   :  { %v2295_v41 = vmax.f32 %v2236_v39, 0.0  ;;  %v2420_v22 = vsel %vm2416_vm1, %v9119_v32, %v2363_v15  ;;  %4034 = vmatprep.subr.bf16.mxu1 %v7497_v26  ;;  %4198 = vmatprep.subr.bf16.mxu0 %v7500_v24  ;;  %v2167_v20 = vadd.f32 %v2166_v12, %v9007_v37  ;;  %v2240_v29 = vadd.f32 %v2239_v35, %v9010_v62  ;;  %v2168_v9 = vpop.f32.mrb[77].mxu1  ;;  %v2241_v38 = vpop.f32.mrb[93].mxu0  ;;  %v7507_v39 = vld [vmem:[#allocation6 + $0x260] ss:$16 sps:$4 sm:$0xff]  }
 0x60f   :  { %v2381_v63 = vmax.f32 %v2380_v6, %v2293_v11  ;;  %v2428_v59 = vpack.c.bf16 %v2420_v22, %v2420_v22  ;;  %v2169_v16 = vadd.f32 %v2168_v9, %v9017_v7  ;;  %v2242_v58 = vadd.f32 %v2241_v38, %v9020_v55  ;;  %v2170_v2 = vpop.f32.mrb[78].mxu1  ;;  %v2243_v3 = vpop.f32.mrb[94].mxu0  ;;  %v7510_v15 = vld [vmem:[#allocation6 + $0x268] ss:$16 sps:$4 sm:$0xff]   ;;  %v7518_v12 = vld [vmem:[#allocation6 + $0x28c] ss:$16 sps:$4 sm:$0xff]  }
 0x610   :  { %v2407_v32 = vmax.f32 %v2406_v28, %v2295_v41  ;;  %v2300_v13 = vmax.f32 %v2167_v20, 0.0  ;;  %v2302_v50 = vmax.f32 %v2240_v29, 0.0  ;;  %v2171_v1 = vadd.f32 %v2170_v2, %v9007_v37  ;;  %v2172_v48 = vpop.f32.mrb[79].mxu1  ;;  %v2245_v21 = vpop.f32.mrb[95].mxu0  ;;  %v7524_v2 = vld [vmem:[#allocation6 + $0x2ac] ss:$16 sps:$4 sm:$0xff]  }
 0x611   :  { %4064 = vmatprep.mubr.bf16.mxu1 %v2428_v59  ;;  %4228 = vmatprep.mubr.bf16.mxu0 %v2428_v59  ;;  %v2301_v53 = vmax.f32 %v2169_v16, 0.0  ;;  %v2303_v17 = vmax.f32 %v2242_v58, 0.0  ;;  %v2244_v44 = vadd.f32 %v2243_v3, %v9010_v62  ;;  %v2173_v0 = vadd.f32 %v2172_v48, %v9017_v7  ;;  %v7513_v16 = vld [vmem:[#allocation6 + $0x280] ss:$16 sps:$4 sm:$0xff]   ;;  %v7516_v58 = vld [vmem:[#allocation6 + $0x288] ss:$16 sps:$4 sm:$0xff]  }
 0x612   :  { %4035 = vmatpush1.bf16.msra.mxu1 %v7495_v14  ;;  %4199 = vmatpush1.bf16.msra.mxu0 %v7498_v4  ;;  %v2369_v25 = vmax.f32 %v2368_v34, %v2300_v13  ;;  %v2395_v61 = vmax.f32 %v2394_v27, %v2302_v50  ;;  %v2308_v56 = vmax.f32 %v2171_v1, 0.0  ;;  %v2246_v5 = vadd.f32 %v2245_v21, %v9020_v55  ;;  %v7515_v14 = vld [vmem:[#allocation6 + $0x284] ss:$16 sps:$4 sm:$0xff]  }
 0x613   :  { %v2382_v37 = vmax.f32 %v2381_v63, %v2301_v53  ;;  %v2408_v10 = vmax.f32 %v2407_v32, %v2303_v17  ;;  %4036 = vmatprep.subr.bf16.mxu1 %v7503_v8  ;;  %4200 = vmatprep.subr.bf16.mxu0 %v7506_v60  ;;  %v2310_v47 = vmax.f32 %v2244_v44, 0.0  ;;  %v2309_v45 = vmax.f32 %v2173_v0, 0.0  ;;  %v7519_v53 = vld [vmem:[#allocation6 + $0x2a0] ss:$16 sps:$4 sm:$0xff]   ;;  %v7522_v17 = vld [vmem:[#allocation6 + $0x2a8] ss:$16 sps:$4 sm:$0xff]  }
 0x614   :  { %v1913_v62 = vrot.slane %v9130_v46, 2  ;;  %v2370_v7 = vmax.f32 %v2369_v25, %v2308_v56  ;;  %v2311_v26 = vmax.f32 %v2246_v5, 0.0  ;;  %v1939_v24 = vrot.slane %v9134_v33, 2  ;;  %v7527_v25 = vld [vmem:[#allocation6 + $0x2c4] ss:$16 sps:$4 sm:$0xff]  }
 0x615   :  { %v1926_v6 = vrot.slane %v9137_v23, 2  ;;  %v2396_v28 = vmax.f32 %v2395_v61, %v2310_v47  ;;  %v2383_v51 = vmax.f32 %v2382_v37, %v2309_v45  ;;  %v1952_v55 = vrot.slane %v9178_v36, 2  ;;  %v7530_v61 = vld [vmem:[#allocation6 + $0x2cc] ss:$16 sps:$4 sm:$0xff]   ;;  %v7525_v45 = vld [vmem:[#allocation6 + $0x2c0] ss:$16 sps:$4 sm:$0xff]  }
 0x616   :  { %v2371_v18 = vrot.slane %v2370_v7, 4  ;;  %4037 = vmatpush1.bf16.msra.mxu1 %v7501_v49  ;;  %4201 = vmatpush1.bf16.msra.mxu0 %v7504_v19  ;;  %v2409_v34 = vmax.f32 %v2408_v10, %v2311_v26  ;;  %v1914_v35 = vmax.f32 %v9130_v46, %v1913_v62  ;;  %v1940_v4 = vmax.f32 %v9134_v33, %v1939_v24  ;;  %v7521_v46 = vld [vmem:[#allocation6 + $0x2a4] ss:$16 sps:$4 sm:$0xff]   ;;  %v7536_v24 = vld [vmem:[#allocation6 + $0x2ec] ss:$16 sps:$4 sm:$0xff]  }
 0x617   :  { %v2397_v27 = vrot.slane %v2396_v28, 4  ;;  %v2384_v11 = vrot.slane %v2383_v51, 4  ;;  %4038 = vmatprep.subr.bf16.mxu1 %v7509_v43  ;;  %4202 = vmatprep.subr.bf16.mxu0 %v7512_v40  ;;  %v1927_v20 = vmax.f32 %v9137_v23, %v1926_v6  ;;  %v1953_v38 = vmax.f32 %v9178_v36, %v1952_v55  ;;  %v7528_v43 = vld [vmem:[#allocation6 + $0x2c8] ss:$16 sps:$4 sm:$0xff]   ;;  %v7533_v26 = vld [vmem:[#allocation6 + $0x2e4] ss:$16 sps:$4 sm:$0xff]  }
 0x618   :  { %v2372_v41 = vmax.f32 %v2370_v7, %v2371_v18  ;;  %v2410_v22 = vrot.slane %v2409_v34, 4  ;;  %v1915_v3 = vrot.slane %v1914_v35, 1  ;;  %v1941_v23 = vrot.slane %v1940_v4, 1  ;;  %v7531_v55 = vld [vmem:[#allocation6 + $0x2e0] ss:$16 sps:$4 sm:$0xff]  }
 0x619   :  { %v2398_v29 = vmax.f32 %v2396_v28, %v2397_v27  ;;  %v2385_v9 = vmax.f32 %v2383_v51, %v2384_v11  ;;  %v1928_v13 = vrot.slane %v1927_v20, 1  ;;  %v1954_v36 = vrot.slane %v1953_v38, 1  ;;  %v7534_v18 = vld [vmem:[#allocation6 + $0x2e8] ss:$16 sps:$4 sm:$0xff]   ;;  %v7545_v11 = vld [vmem:[#allocation6 + $0x324] ss:$16 sps:$4 sm:$0xff]  }
 0x61a   :  { %v2373_v63 = vrot.slane %v2372_v41, 2  ;;  %v2411_v59 = vmax.f32 %v2409_v34, %v2410_v22  ;;  %4039 = vmatpush1.bf16.msra.mxu1 %v7507_v39  ;;  %4203 = vmatpush1.bf16.msra.mxu0 %v7510_v15  ;;  %v1916_v49 = vmax.f32 %v1914_v35, %v1915_v3  ;;  %v1942_v5 = vmax.f32 %v1940_v4, %v1941_v23  ;;  %v7539_v34 = vld [vmem:[#allocation6 + $0x304] ss:$16 sps:$4 sm:$0xff]   ;;  %v7542_v39 = vld [vmem:[#allocation6 + $0x30c] ss:$16 sps:$4 sm:$0xff]  }
 0x61b   :  { %v2399_v8 = vrot.slane %v2398_v29, 2  ;;  %v2386_v60 = vrot.slane %v2385_v9, 2  ;;  %4040 = vmatprep.subr.bf16.mxu1 %v7515_v14  ;;  %4204 = vmatprep.subr.bf16.mxu0 %v7518_v12  ;;  %v1929_v10 = vmax.f32 %v1927_v20, %v1928_v13  ;;  %v1955_v62 = vmax.f32 %v1953_v38, %v1954_v36  ;;  %v7537_v15 = vld [vmem:[#allocation6 + $0x300] ss:$16 sps:$4 sm:$0xff]   ;;  %v7540_v27 = vld [vmem:[#allocation6 + $0x308] ss:$16 sps:$4 sm:$0xff]  }
 0x61c   :  { %v2374_v33 = vmax.f32 %v2372_v41, %v2373_v63  ;;  %v2412_v32 = vrot.slane %v2411_v59, 2  ;;  %v7548_v14 = vld [vmem:[#allocation6 + $0x32c] ss:$16 sps:$4 sm:$0xff]   ;;  %v7543_v12 = vld [vmem:[#allocation6 + $0x320] ss:$16 sps:$4 sm:$0xff]  }
 0x61d   :  { %v2400_v50 = vmax.f32 %v2398_v29, %v2399_v8  ;;  %v2387_v1 = vmax.f32 %v2385_v9, %v2386_v60  ;;  %v7546_v35 = vld [vmem:[#allocation6 + $0x328] ss:$16 sps:$4 sm:$0xff]   ;;  %v7551_v41 = vld [vmem:[#allocation6 + $0x344] ss:$16 sps:$4 sm:$0xff]   ;;  %v7554_v22 = vld [vmem:[#allocation6 + $0x34c] ss:$16 sps:$4 sm:$0xff]  }
 0x61e   :  { %v2375_v48 = vrot.slane %v2374_v33, 1  ;;  %v2413_v21 = vmax.f32 %v2411_v59, %v2412_v32  ;;  %4041 = vmatpush1.bf16.msra.mxu1 %v7513_v16  ;;  %4205 = vmatpush1.bf16.msra.mxu0 %v7516_v58  ;;  %v7549_v4 = vld [vmem:[#allocation6 + $0x340] ss:$16 sps:$4 sm:$0xff]   ;;  %v7552_v20 = vld [vmem:[#allocation6 + $0x348] ss:$16 sps:$4 sm:$0xff]  }
 0x61f   :  { %v2401_v44 = vrot.slane %v2400_v50, 1  ;;  %v2388_v0 = vrot.slane %v2387_v1, 1  ;;  %4042 = vmatprep.subr.bf16.mxu1 %v7521_v46  ;;  %4206 = vmatprep.subr.bf16.mxu0 %v7524_v2  ;;  %v7557_v29 = vld [vmem:[#allocation6 + $0x364] ss:$16 sps:$4 sm:$0xff]   ;;  %v7560_v9 = vld [vmem:[#allocation6 + $0x36c] ss:$16 sps:$4 sm:$0xff]  }
 0x620   :  { %v2376_v19 = vmax.f32 %v2374_v33, %v2375_v48  ;;  %v2414_v56 = vrot.slane %v2413_v21, 1  ;;  %v7555_v38 = vld [vmem:[#allocation6 + $0x360] ss:$16 sps:$4 sm:$0xff]   ;;  %v7558_v63 = vld [vmem:[#allocation6 + $0x368] ss:$16 sps:$4 sm:$0xff]  }
 0x621   :  { %v2402_v37 = vmax.f32 %v2400_v50, %v2401_v44  ;;  %v2389_v47 = vmax.f32 %v2387_v1, %v2388_v0  ;;  %v7563_v59 = vld [vmem:[#allocation6 + $0x384] ss:$16 sps:$4 sm:$0xff]   ;;  %v7566_v16 = vld [vmem:[#allocation6 + $0x38c] ss:$16 sps:$4 sm:$0xff]   ;;  %v7561_v58 = vld [vmem:[#allocation6 + $0x380] ss:$16 sps:$4 sm:$0xff]   ;;  %v2427_v44 = vpack.c.bf16 %v9183_v42, %v9183_v42 }
 0x622   :  { %4043 = vmatpush1.bf16.msra.mxu1 %v7519_v53  ;;  %4207 = vmatpush1.bf16.msra.mxu0 %v7522_v17  ;;  %v9204_v40 = vsel %vm2416_vm1, %v1916_v49, %v2376_v19  ;;  %v2415_v7 = vmax.f32 %v2413_v21, %v2414_v56  ;;  %v7564_v8 = vld [vmem:[#allocation6 + $0x388] ss:$16 sps:$4 sm:$0xff]   ;;  %v7569_v60 = vld [vmem:[#allocation6 + $0x3a4] ss:$16 sps:$4 sm:$0xff]   ;;  %v7572_v46 = vld [vmem:[#allocation6 + $0x3ac] ss:$16 sps:$4 sm:$0xff]  }
 0x623   :  { %4044 = vmatprep.subr.bf16.mxu1 %v7527_v25  ;;  %4208 = vmatprep.subr.bf16.mxu0 %v7530_v61  ;;  %v9207_v6 = vsel %vm2416_vm1, %v1929_v10, %v2389_v47  ;;  %v9210_v28 = vsel %vm2416_vm1, %v1942_v5, %v2402_v37  ;;  %v7567_v2 = vld [vmem:[#allocation6 + $0x3a0] ss:$16 sps:$4 sm:$0xff]   ;;  %v7570_v3 = vld [vmem:[#allocation6 + $0x3a8] ss:$16 sps:$4 sm:$0xff]   ;;  %v7575_v33 = vld [vmem:[#allocation6 + $0x3c4] ss:$16 sps:$4 sm:$0xff]  }
 0x624   :  { %v9213_v51 = vsel %vm2416_vm1, %v1955_v62, %v2415_v7  ;;  %v7578_v32 = vld [vmem:[#allocation6 + $0x3cc] ss:$16 sps:$4 sm:$0xff]   ;;  %v7573_v23 = vld [vmem:[#allocation6 + $0x3c0] ss:$16 sps:$4 sm:$0xff]   ;;  %v7576_v13 = vld [vmem:[#allocation6 + $0x3c8] ss:$16 sps:$4 sm:$0xff]   ;;  %v2430_v25 = vpack.c.bf16 %v9207_v6, %v9207_v6 }
 0x625   :  { %v7581_v50 = vld [vmem:[#allocation6 + $0x3e4] ss:$16 sps:$4 sm:$0xff]   ;;  %v7584_v1 = vld [vmem:[#allocation6 + $0x3ec] ss:$16 sps:$4 sm:$0xff]   ;;  %v7579_v36 = vld [vmem:[#allocation6 + $0x3e0] ss:$16 sps:$4 sm:$0xff]  }
 0x626   :  { %4045 = vmatpush1.bf16.msra.mxu1 %v7525_v45  ;;  %4209 = vmatpush1.bf16.msra.mxu0 %v7528_v43  ;;  %v7582_v48 = vld [vmem:[#allocation6 + $0x3e8] ss:$16 sps:$4 sm:$0xff]   ;;  %v7587_v21 = vld [vmem:[#allocation6 + $0x404] ss:$16 sps:$4 sm:$0xff]   ;;  %v7590_v53 = vld [vmem:[#allocation6 + $0x40c] ss:$16 sps:$4 sm:$0xff]  }
 0x627   :  { %4046 = vmatprep.subr.bf16.mxu1 %v7533_v26  ;;  %4210 = vmatprep.subr.bf16.mxu0 %v7536_v24  ;;  %v7585_v17 = vld [vmem:[#allocation6 + $0x400] ss:$16 sps:$4 sm:$0xff]   ;;  %v7588_v0 = vld [vmem:[#allocation6 + $0x408] ss:$16 sps:$4 sm:$0xff]   ;;  %v7593_v61 = vld [vmem:[#allocation6 + $0x424] ss:$16 sps:$4 sm:$0xff]  }
 0x628   :  { %v7596_v49 = vld [vmem:[#allocation6 + $0x42c] ss:$16 sps:$4 sm:$0xff]   ;;  %v7591_v19 = vld [vmem:[#allocation6 + $0x420] ss:$16 sps:$4 sm:$0xff]   ;;  %v7594_v56 = vld [vmem:[#allocation6 + $0x428] ss:$16 sps:$4 sm:$0xff]  }
 0x629   :  { %v7599_v5 = vld [vmem:[#allocation6 + $0x444] ss:$16 sps:$4 sm:$0xff]   ;;  %v7602_v42 = vld [vmem:[#allocation6 + $0x44c] ss:$16 sps:$4 sm:$0xff]   ;;  %v7597_v37 = vld [vmem:[#allocation6 + $0x440] ss:$16 sps:$4 sm:$0xff]  }
 0x62a   :  { %4047 = vmatpush1.bf16.msra.mxu1 %v7531_v55  ;;  %4211 = vmatpush1.bf16.msra.mxu0 %v7534_v18  ;;  %v7600_v10 = vld [vmem:[#allocation6 + $0x448] ss:$16 sps:$4 sm:$0xff]   ;;  %v7605_v47 = vld [vmem:[#allocation6 + $0x464] ss:$16 sps:$4 sm:$0xff]   ;;  %v7608_v45 = vld [vmem:[#allocation6 + $0x46c] ss:$16 sps:$4 sm:$0xff]  }
 0x62b   :  { %4048 = vmatprep.subr.bf16.mxu1 %v7539_v34  ;;  %4212 = vmatprep.subr.bf16.mxu0 %v7542_v39  ;;  %v7603_v43 = vld [vmem:[#allocation6 + $0x460] ss:$16 sps:$4 sm:$0xff]   ;;  %v7606_v62 = vld [vmem:[#allocation6 + $0x468] ss:$16 sps:$4 sm:$0xff]   ;;  %v7611_v7 = vld [vmem:[#allocation6 + $0x484] ss:$16 sps:$4 sm:$0xff]  }
 0x62c   :  { %v7614_v26 = vld [vmem:[#allocation6 + $0x48c] ss:$16 sps:$4 sm:$0xff]   ;;  %v7609_v24 = vld [vmem:[#allocation6 + $0x480] ss:$16 sps:$4 sm:$0xff]   ;;  %v7612_v6 = vld [vmem:[#allocation6 + $0x488] ss:$16 sps:$4 sm:$0xff]  }
 0x62d   :  { %v7617_v55 = vld [vmem:[#allocation6 + $0x4a4] ss:$16 sps:$4 sm:$0xff]   ;;  %v7620_v18 = vld [vmem:[#allocation6 + $0x4ac] ss:$16 sps:$4 sm:$0xff]   ;;  %v7615_v34 = vld [vmem:[#allocation6 + $0x4a0] ss:$16 sps:$4 sm:$0xff]  }
 0x62e   :  { %4049 = vmatpush1.bf16.msra.mxu1 %v7537_v15  ;;  %4213 = vmatpush1.bf16.msra.mxu0 %v7540_v27  ;;  %v7618_v39 = vld [vmem:[#allocation6 + $0x4a8] ss:$16 sps:$4 sm:$0xff]   ;;  %v7623_v15 = vld [vmem:[#allocation6 + $0x4c4] ss:$16 sps:$4 sm:$0xff]   ;;  %v7626_v27 = vld [vmem:[#allocation6 + $0x4cc] ss:$16 sps:$4 sm:$0xff]  }
 0x62f   :  { %4050 = vmatprep.subr.bf16.mxu1 %v7545_v11  ;;  %4214 = vmatprep.subr.bf16.mxu0 %v7548_v14  ;;  %v7621_v11 = vld [vmem:[#allocation6 + $0x4c0] ss:$16 sps:$4 sm:$0xff]   ;;  %v7624_v14 = vld [vmem:[#allocation6 + $0x4c8] ss:$16 sps:$4 sm:$0xff]  }
 0x632   :  { %4051 = vmatpush1.bf16.msra.mxu1 %v7543_v12  ;;  %4215 = vmatpush1.bf16.msra.mxu0 %v7546_v35  ;;  %v7629_v12 = vld [vmem:[#allocation6 + $0x4e4] ss:$16 sps:$4 sm:$0xff]   ;;  %v7632_v35 = vld [vmem:[#allocation6 + $0x4ec] ss:$16 sps:$4 sm:$0xff]  }
 0x633   :  { %4052 = vmatprep.subr.bf16.mxu1 %v7551_v41  ;;  %4216 = vmatprep.subr.bf16.mxu0 %v7554_v22  ;;  %v7627_v41 = vld [vmem:[#allocation6 + $0x4e0] ss:$16 sps:$4 sm:$0xff]   ;;  %v7630_v22 = vld [vmem:[#allocation6 + $0x4e8] ss:$16 sps:$4 sm:$0xff]  }
 0x636   :  { %4053 = vmatpush1.bf16.msra.mxu1 %v7549_v4  ;;  %4217 = vmatpush1.bf16.msra.mxu0 %v7552_v20  ;;  %v7635_v4 = vld [vmem:[#allocation6 + $0x504] ss:$16 sps:$4 sm:$0xff]   ;;  %v7638_v20 = vld [vmem:[#allocation6 + $0x50c] ss:$16 sps:$4 sm:$0xff]  }
 0x637   :  { %4054 = vmatprep.subr.bf16.mxu1 %v7557_v29  ;;  %4218 = vmatprep.subr.bf16.mxu0 %v7560_v9  ;;  %v7633_v29 = vld [vmem:[#allocation6 + $0x500] ss:$16 sps:$4 sm:$0xff]   ;;  %v7636_v9 = vld [vmem:[#allocation6 + $0x508] ss:$16 sps:$4 sm:$0xff]  }
 0x63a   :  { %4055 = vmatpush1.bf16.msra.mxu1 %v7555_v38  ;;  %4219 = vmatpush1.bf16.msra.mxu0 %v7558_v63  ;;  %v7641_v38 = vld [vmem:[#allocation6 + $0x524] ss:$16 sps:$4 sm:$0xff]   ;;  %v7644_v63 = vld [vmem:[#allocation6 + $0x52c] ss:$16 sps:$4 sm:$0xff]  }
 0x63b   :  { %4056 = vmatprep.subr.bf16.mxu1 %v7563_v59  ;;  %4220 = vmatprep.subr.bf16.mxu0 %v7566_v16  ;;  %v7639_v59 = vld [vmem:[#allocation6 + $0x520] ss:$16 sps:$4 sm:$0xff]   ;;  %v7642_v16 = vld [vmem:[#allocation6 + $0x528] ss:$16 sps:$4 sm:$0xff]  }
 0x63e   :  { %4057 = vmatpush1.bf16.msra.mxu1 %v7561_v58  ;;  %4221 = vmatpush1.bf16.msra.mxu0 %v7564_v8  ;;  %v7647_v58 = vld [vmem:[#allocation6 + $0x544] ss:$16 sps:$4 sm:$0xff]   ;;  %v7650_v8 = vld [vmem:[#allocation6 + $0x54c] ss:$16 sps:$4 sm:$0xff]  }
 0x63f   :  { %4058 = vmatprep.subr.bf16.mxu1 %v7569_v60  ;;  %4222 = vmatprep.subr.bf16.mxu0 %v7572_v46  ;;  %v7645_v60 = vld [vmem:[#allocation6 + $0x540] ss:$16 sps:$4 sm:$0xff]   ;;  %v7648_v46 = vld [vmem:[#allocation6 + $0x548] ss:$16 sps:$4 sm:$0xff]  }
 0x642   :  { %4059 = vmatpush1.bf16.msra.mxu1 %v7567_v2  ;;  %4223 = vmatpush1.bf16.msra.mxu0 %v7570_v3  ;;  %v7653_v2 = vld [vmem:[#allocation6 + $0x564] ss:$16 sps:$4 sm:$0xff]   ;;  %v7656_v3 = vld [vmem:[#allocation6 + $0x56c] ss:$16 sps:$4 sm:$0xff]  }
 0x643   :  { %4060 = vmatprep.subr.bf16.mxu1 %v7575_v33  ;;  %4224 = vmatprep.subr.bf16.mxu0 %v7578_v32  ;;  %v7651_v33 = vld [vmem:[#allocation6 + $0x560] ss:$16 sps:$4 sm:$0xff]   ;;  %v7654_v32 = vld [vmem:[#allocation6 + $0x568] ss:$16 sps:$4 sm:$0xff]  }
 0x646   :  { %4061 = vmatpush1.bf16.msra.mxu1 %v7573_v23  ;;  %4225 = vmatpush1.bf16.msra.mxu0 %v7576_v13  ;;  %v7659_v23 = vld [vmem:[#allocation6 + $0x584] ss:$16 sps:$4 sm:$0xff]   ;;  %v7662_v13 = vld [vmem:[#allocation6 + $0x58c] ss:$16 sps:$4 sm:$0xff]  }
 0x647   :  { %4062 = vmatprep.subr.bf16.mxu1 %v7581_v50  ;;  %4226 = vmatprep.subr.bf16.mxu0 %v7584_v1  ;;  %v7657_v50 = vld [vmem:[#allocation6 + $0x580] ss:$16 sps:$4 sm:$0xff]   ;;  %v7660_v1 = vld [vmem:[#allocation6 + $0x588] ss:$16 sps:$4 sm:$0xff]  }
 0x64a   :  { %4063 = vmatpush1.bf16.msra.mxu1 %v7579_v36  ;;  %4227 = vmatpush1.bf16.msra.mxu0 %v7582_v48  ;;  %v7665_v36 = vld [vmem:[#allocation6 + $0x5a4] ss:$16 sps:$4 sm:$0xff]   ;;  %v7668_v48 = vld [vmem:[#allocation6 + $0x5ac] ss:$16 sps:$4 sm:$0xff]  }
 0x64b   :  { %4073 = vmatprep.subr.bf16.mxu1 %v7587_v21  ;;  %4237 = vmatprep.subr.bf16.mxu0 %v7590_v53  ;;  %v7663_v21 = vld [vmem:[#allocation6 + $0x5a0] ss:$16 sps:$4 sm:$0xff]   ;;  %v7666_v53 = vld [vmem:[#allocation6 + $0x5a8] ss:$16 sps:$4 sm:$0xff]  }
 0x64d   :  { %4065 = vmatmul.mubr.bf16.vlgmr.msra.gmra.mrb[80].mxu1 %v2427_v44  ;;  %4229 = vmatmul.mubr.bf16.vlgmr.msra.gmra.mrb[96].mxu0 %v2427_v44  ;;  %v7674_v44 = vld [vmem:[#allocation6 + $0x5cc] ss:$16 sps:$4 sm:$0xff]  }
 0x64e   :  { %4074 = vmatpush1.bf16.msra.mxu1 %v7585_v17  ;;  %4105 = vmatprep.mubr.bf16.mxu1 %v2430_v25  ;;  %v7671_v17 = vld [vmem:[#allocation6 + $0x5c4] ss:$16 sps:$4 sm:$0xff]  }
 0x64f   :  { %4238 = vmatpush1.bf16.msra.mxu0 %v7588_v0  ;;  %4269 = vmatprep.mubr.bf16.mxu0 %v2430_v25  ;;  %v7669_v0 = vld [vmem:[#allocation6 + $0x5c0] ss:$16 sps:$4 sm:$0xff]   ;;  %v7672_v25 = vld [vmem:[#allocation6 + $0x5c8] ss:$16 sps:$4 sm:$0xff]  }
 0x650   :  { %4075 = vmatprep.subr.bf16.mxu1 %v7593_v61  ;;  %4239 = vmatprep.subr.bf16.mxu0 %v7596_v49  ;;  %v7677_v61 = vld [vmem:[#allocation6 + $0x5e4] ss:$16 sps:$4 sm:$0xff]   ;;  %v7680_v49 = vld [vmem:[#allocation6 + $0x5ec] ss:$16 sps:$4 sm:$0xff]  }
 0x652   :  { %4076 = vmatpush1.bf16.msra.mxu1 %v7591_v19  ;;  %v7675_v19 = vld [vmem:[#allocation6 + $0x5e0] ss:$16 sps:$4 sm:$0xff]  }
 0x653   :  { %4240 = vmatpush1.bf16.msra.mxu0 %v7594_v56  ;;  %4077 = vmatprep.subr.bf16.mxu1 %v7599_v5  ;;  %v7678_v56 = vld [vmem:[#allocation6 + $0x5e8] ss:$16 sps:$4 sm:$0xff]   ;;  %v7683_v5 = vld [vmem:[#allocation6 + $0x604] ss:$16 sps:$4 sm:$0xff]  }
 0x654   :  { %4241 = vmatprep.subr.bf16.mxu0 %v7602_v42  ;;  %v7686_v42 = vld [vmem:[#allocation6 + $0x60c] ss:$16 sps:$4 sm:$0xff]  }
 0x656   :  { %4078 = vmatpush1.bf16.msra.mxu1 %v7597_v37  ;;  %v7681_v37 = vld [vmem:[#allocation6 + $0x600] ss:$16 sps:$4 sm:$0xff]  }
 0x657   :  { %4242 = vmatpush1.bf16.msra.mxu0 %v7600_v10  ;;  %4079 = vmatprep.subr.bf16.mxu1 %v7605_v47  ;;  %v2429_v10 = vpack.c.bf16 %v9204_v40, %v9204_v40  ;;  %v7684_v47 = vld [vmem:[#allocation6 + $0x608] ss:$16 sps:$4 sm:$0xff]   ;;  %v7693_v40 = vld [vmem:[#allocation6 + $0x640] ss:$16 sps:$4 sm:$0xff]  }
 0x658   :  { %4243 = vmatprep.subr.bf16.mxu0 %v7608_v45  ;;  %v7689_v45 = vld [vmem:[#allocation6 + $0x624] ss:$16 sps:$4 sm:$0xff]  }
 0x65a   :  { %4080 = vmatpush1.bf16.msra.mxu1 %v7603_v43  ;;  %v2432_v43 = vpack.c.bf16 %v9213_v51, %v9213_v51  ;;  %v7704_v51 = vld [vmem:[#allocation6 + $0x66c] ss:$16 sps:$4 sm:$0xff]  }
 0x65b   :  { %4244 = vmatpush1.bf16.msra.mxu0 %v7606_v62  ;;  %4081 = vmatprep.subr.bf16.mxu1 %v7611_v7  ;;  %v7692_v62 = vld [vmem:[#allocation6 + $0x62c] ss:$16 sps:$4 sm:$0xff]   ;;  %v7687_v7 = vld [vmem:[#allocation6 + $0x620] ss:$16 sps:$4 sm:$0xff]  }
 0x65c   :  { %4245 = vmatprep.subr.bf16.mxu0 %v7614_v26  ;;  %v7690_v26 = vld [vmem:[#allocation6 + $0x628] ss:$16 sps:$4 sm:$0xff]  }
 0x65e   :  { %4082 = vmatpush1.bf16.msra.mxu1 %v7609_v24  ;;  %v7695_v24 = vld [vmem:[#allocation6 + $0x644] ss:$16 sps:$4 sm:$0xff]  }
 0x65f   :  { %4246 = vmatpush1.bf16.msra.mxu0 %v7612_v6  ;;  %4083 = vmatprep.subr.bf16.mxu1 %v7617_v55  ;;  %v7698_v6 = vld [vmem:[#allocation6 + $0x64c] ss:$16 sps:$4 sm:$0xff]   ;;  %v7696_v55 = vld [vmem:[#allocation6 + $0x648] ss:$16 sps:$4 sm:$0xff]  }
 0x660   :  { %4247 = vmatprep.subr.bf16.mxu0 %v7620_v18  ;;  %v7701_v18 = vld [vmem:[#allocation6 + $0x664] ss:$16 sps:$4 sm:$0xff]  }
 0x662   :  { %4084 = vmatpush1.bf16.msra.mxu1 %v7615_v34  ;;  %v7699_v34 = vld [vmem:[#allocation6 + $0x660] ss:$16 sps:$4 sm:$0xff]  }
 0x663   :  { %4248 = vmatpush1.bf16.msra.mxu0 %v7618_v39  ;;  %4085 = vmatprep.subr.bf16.mxu1 %v7623_v15  ;;  %v7702_v39 = vld [vmem:[#allocation6 + $0x668] ss:$16 sps:$4 sm:$0xff]   ;;  %v7707_v15 = vld [vmem:[#allocation6 + $0x684] ss:$16 sps:$4 sm:$0xff]  }
 0x664   :  { %4249 = vmatprep.subr.bf16.mxu0 %v7626_v27  ;;  %v7710_v27 = vld [vmem:[#allocation6 + $0x68c] ss:$16 sps:$4 sm:$0xff]  }
 0x666   :  { %4086 = vmatpush1.bf16.msra.mxu1 %v7621_v11  ;;  %v7705_v11 = vld [vmem:[#allocation6 + $0x680] ss:$16 sps:$4 sm:$0xff]  }
 0x667   :  { %4250 = vmatpush1.bf16.msra.mxu0 %v7624_v14  ;;  %4087 = vmatprep.subr.bf16.mxu1 %v7629_v12  ;;  %v7708_v14 = vld [vmem:[#allocation6 + $0x688] ss:$16 sps:$4 sm:$0xff]   ;;  %v7713_v12 = vld [vmem:[#allocation6 + $0x6a4] ss:$16 sps:$4 sm:$0xff]  }
 0x668   :  { %4251 = vmatprep.subr.bf16.mxu0 %v7632_v35  ;;  %v7716_v35 = vld [vmem:[#allocation6 + $0x6ac] ss:$16 sps:$4 sm:$0xff]  }
 0x66a   :  { %4088 = vmatpush1.bf16.msra.mxu1 %v7627_v41  ;;  %v7711_v41 = vld [vmem:[#allocation6 + $0x6a0] ss:$16 sps:$4 sm:$0xff]  }
 0x66b   :  { %4252 = vmatpush1.bf16.msra.mxu0 %v7630_v22  ;;  %4089 = vmatprep.subr.bf16.mxu1 %v7635_v4  ;;  %v7714_v22 = vld [vmem:[#allocation6 + $0x6a8] ss:$16 sps:$4 sm:$0xff]   ;;  %v7719_v4 = vld [vmem:[#allocation6 + $0x6c4] ss:$16 sps:$4 sm:$0xff]  }
 0x66c   :  { %4253 = vmatprep.subr.bf16.mxu0 %v7638_v20  ;;  %v7722_v20 = vld [vmem:[#allocation6 + $0x6cc] ss:$16 sps:$4 sm:$0xff]  }
 0x66e   :  { %4090 = vmatpush1.bf16.msra.mxu1 %v7633_v29  ;;  %v7717_v29 = vld [vmem:[#allocation6 + $0x6c0] ss:$16 sps:$4 sm:$0xff]  }
 0x66f   :  { %4254 = vmatpush1.bf16.msra.mxu0 %v7636_v9  ;;  %4091 = vmatprep.subr.bf16.mxu1 %v7641_v38  ;;  %v7720_v9 = vld [vmem:[#allocation6 + $0x6c8] ss:$16 sps:$4 sm:$0xff]   ;;  %v7725_v38 = vld [vmem:[#allocation6 + $0x6e4] ss:$16 sps:$4 sm:$0xff]  }
 0x670   :  { %4255 = vmatprep.subr.bf16.mxu0 %v7644_v63  ;;  %v7728_v63 = vld [vmem:[#allocation6 + $0x6ec] ss:$16 sps:$4 sm:$0xff]  }
 0x672   :  { %4092 = vmatpush1.bf16.msra.mxu1 %v7639_v59  ;;  %v7723_v59 = vld [vmem:[#allocation6 + $0x6e0] ss:$16 sps:$4 sm:$0xff]  }
 0x673   :  { %4256 = vmatpush1.bf16.msra.mxu0 %v7642_v16  ;;  %4093 = vmatprep.subr.bf16.mxu1 %v7647_v58  ;;  %v7726_v16 = vld [vmem:[#allocation6 + $0x6e8] ss:$16 sps:$4 sm:$0xff]   ;;  %v7731_v58 = vld [vmem:[#allocation6 + $0x704] ss:$16 sps:$4 sm:$0xff]  }
 0x674   :  { %4257 = vmatprep.subr.bf16.mxu0 %v7650_v8  ;;  %v7734_v8 = vld [vmem:[#allocation6 + $0x70c] ss:$16 sps:$4 sm:$0xff]  }
 0x676   :  { %4094 = vmatpush1.bf16.msra.mxu1 %v7645_v60  ;;  %v7729_v60 = vld [vmem:[#allocation6 + $0x700] ss:$16 sps:$4 sm:$0xff]  }
 0x677   :  { %4258 = vmatpush1.bf16.msra.mxu0 %v7648_v46  ;;  %4095 = vmatprep.subr.bf16.mxu1 %v7653_v2  ;;  %v7732_v46 = vld [vmem:[#allocation6 + $0x708] ss:$16 sps:$4 sm:$0xff]   ;;  %v7737_v2 = vld [vmem:[#allocation6 + $0x724] ss:$16 sps:$4 sm:$0xff]  }
 0x678   :  { %4259 = vmatprep.subr.bf16.mxu0 %v7656_v3  ;;  %v7740_v3 = vld [vmem:[#allocation6 + $0x72c] ss:$16 sps:$4 sm:$0xff]  }
 0x67a   :  { %4096 = vmatpush1.bf16.msra.mxu1 %v7651_v33  ;;  %v7735_v33 = vld [vmem:[#allocation6 + $0x720] ss:$16 sps:$4 sm:$0xff]  }
 0x67b   :  { %4260 = vmatpush1.bf16.msra.mxu0 %v7654_v32  ;;  %4097 = vmatprep.subr.bf16.mxu1 %v7659_v23  ;;  %v7738_v32 = vld [vmem:[#allocation6 + $0x728] ss:$16 sps:$4 sm:$0xff]   ;;  %v7743_v23 = vld [vmem:[#allocation6 + $0x744] ss:$16 sps:$4 sm:$0xff]  }
 0x67c   :  { %4261 = vmatprep.subr.bf16.mxu0 %v7662_v13  ;;  %v7746_v13 = vld [vmem:[#allocation6 + $0x74c] ss:$16 sps:$4 sm:$0xff]  }
 0x67e   :  { %4098 = vmatpush1.bf16.msra.mxu1 %v7657_v50  ;;  %v7741_v50 = vld [vmem:[#allocation6 + $0x740] ss:$16 sps:$4 sm:$0xff]  }
 0x67f   :  { %4262 = vmatpush1.bf16.msra.mxu0 %v7660_v1  ;;  %4099 = vmatprep.subr.bf16.mxu1 %v7665_v36  ;;  %v7744_v1 = vld [vmem:[#allocation6 + $0x748] ss:$16 sps:$4 sm:$0xff]   ;;  %v7749_v36 = vld [vmem:[#allocation6 + $0x764] ss:$16 sps:$4 sm:$0xff]  }
 0x680   :  { %4263 = vmatprep.subr.bf16.mxu0 %v7668_v48  ;;  %v7752_v48 = vld [vmem:[#allocation6 + $0x76c] ss:$16 sps:$4 sm:$0xff]  }
 0x682   :  { %4100 = vmatpush1.bf16.msra.mxu1 %v7663_v21  ;;  %v7747_v21 = vld [vmem:[#allocation6 + $0x760] ss:$16 sps:$4 sm:$0xff]  }
 0x683   :  { %4264 = vmatpush1.bf16.msra.mxu0 %v7666_v53  ;;  %4101 = vmatprep.subr.bf16.mxu1 %v7671_v17  ;;  %v7750_v53 = vld [vmem:[#allocation6 + $0x768] ss:$16 sps:$4 sm:$0xff]   ;;  %v7755_v17 = vld [vmem:[#allocation6 + $0x784] ss:$16 sps:$4 sm:$0xff]  }
 0x684   :  { %4265 = vmatprep.subr.bf16.mxu0 %v7674_v44  ;;  %v7758_v44 = vld [vmem:[#allocation6 + $0x78c] ss:$16 sps:$4 sm:$0xff]  }
 0x686   :  { %4102 = vmatpush1.bf16.msra.mxu1 %v7669_v0  ;;  %v7753_v0 = vld [vmem:[#allocation6 + $0x780] ss:$16 sps:$4 sm:$0xff]  }
 0x687   :  { %4266 = vmatpush1.bf16.msra.mxu0 %v7672_v25  ;;  %4103 = vmatprep.subr.bf16.mxu1 %v7677_v61  ;;  %v7756_v25 = vld [vmem:[#allocation6 + $0x788] ss:$16 sps:$4 sm:$0xff]   ;;  %v7761_v61 = vld [vmem:[#allocation6 + $0x7a4] ss:$16 sps:$4 sm:$0xff]  }
 0x688   :  { %4267 = vmatprep.subr.bf16.mxu0 %v7680_v49  ;;  %v7764_v49 = vld [vmem:[#allocation6 + $0x7ac] ss:$16 sps:$4 sm:$0xff]  }
 0x68a   :  { %4104 = vmatpush1.bf16.msra.mxu1 %v7675_v19  ;;  %v7759_v19 = vld [vmem:[#allocation6 + $0x7a0] ss:$16 sps:$4 sm:$0xff]  }
 0x68b   :  { %4268 = vmatpush1.bf16.msra.mxu0 %v7678_v56  ;;  %4114 = vmatprep.subr.bf16.mxu1 %v7683_v5  ;;  %v7762_v56 = vld [vmem:[#allocation6 + $0x7a8] ss:$16 sps:$4 sm:$0xff]   ;;  %v7767_v5 = vld [vmem:[#allocation6 + $0x7c4] ss:$16 sps:$4 sm:$0xff]  }
 0x68c   :  { %4278 = vmatprep.subr.bf16.mxu0 %v7686_v42  ;;  %v7770_v42 = vld [vmem:[#allocation6 + $0x7cc] ss:$16 sps:$4 sm:$0xff]  }
 0x68d   :  { %4106 = vmatmul.mubr.bf16.vlgmr.msra.gmra.mrb[80].mxu1 %v2429_v10 }
 0x68e   :  { %4270 = vmatmul.mubr.bf16.vlgmr.msra.gmra.mrb[96].mxu0 %v2429_v10  ;;  %4115 = vmatpush1.bf16.msra.mxu1 %v7681_v37  ;;  %v7765_v37 = vld [vmem:[#allocation6 + $0x7c0] ss:$16 sps:$4 sm:$0xff]   ;;  %v7768_v10 = vld [vmem:[#allocation6 + $0x7c8] ss:$16 sps:$4 sm:$0xff]  }
 0x68f   :  { %4146 = vmatprep.mubr.bf16.mxu1 %v2432_v43  ;;  %4279 = vmatpush1.bf16.msra.mxu0 %v7684_v47  ;;  %v7773_v47 = vld [vmem:[#allocation6 + $0x7e4] ss:$16 sps:$4 sm:$0xff]  }
 0x690   :  { %4310 = vmatprep.mubr.bf16.mxu0 %v2432_v43  ;;  %4116 = vmatprep.subr.bf16.mxu1 %v7689_v45  ;;  %v7776_v45 = vld [vmem:[#allocation6 + $0x7ec] ss:$16 sps:$4 sm:$0xff]   ;;  %v7771_v43 = vld [vmem:[#allocation6 + $0x7e0] ss:$16 sps:$4 sm:$0xff]  }
 0x691   :  { %4280 = vmatprep.subr.bf16.mxu0 %v7692_v62  ;;  %v7774_v62 = vld [vmem:[#allocation6 + $0x7e8] ss:$16 sps:$4 sm:$0xff]  }
 0x692   :  { %4117 = vmatpush1.bf16.msra.mxu1 %v7687_v7  ;;  %v7777_v7 = vld [vmem:[#allocation8 + $0x40] sm:$0xff]  }
 0x693   :  { %4281 = vmatpush1.bf16.msra.mxu0 %v7690_v26  ;;  %4118 = vmatprep.subr.bf16.mxu1 %v7695_v24  ;;  %v7778_v26 = vld [vmem:[#allocation8 + $0xc0] sm:$0xff]  }
 0x694   :  { %4282 = vmatprep.subr.bf16.mxu0 %v7698_v6  ;;  %v7779_v24 = vld [vmem:[#allocation8] sm:$0xff]   ;;  %v2431_v6 = vpack.c.bf16 %v9210_v28, %v9210_v28  ;;  %v7788_v28 = vld [vmem:[#allocation8 + $0x90] sm:$0xff]  }
 0x696   :  { %4119 = vmatpush1.bf16.msra.mxu1 %v7693_v40  ;;  %v7780_v40 = vld [vmem:[#allocation8 + $0x80] sm:$0xff]  }
 0x697   :  { %4283 = vmatpush1.bf16.msra.mxu0 %v7696_v55  ;;  %4120 = vmatprep.subr.bf16.mxu1 %v7701_v18  ;;  %v7781_v55 = vld [vmem:[#allocation8 + $0x48] sm:$0xff]  }
 0x698   :  { %4284 = vmatprep.subr.bf16.mxu0 %v7704_v51  ;;  %v7782_v18 = vld [vmem:[#allocation8 + $0xc8] sm:$0xff]  }
 0x699   :  { %v7783_v51 = vld [vmem:[#allocation8 + $0x8] sm:$0xff]  }
 0x69a   :  { %4121 = vmatpush1.bf16.msra.mxu1 %v7699_v34  ;;  %v7784_v34 = vld [vmem:[#allocation8 + $0x88] sm:$0xff]  }
 0x69b   :  { %4285 = vmatpush1.bf16.msra.mxu0 %v7702_v39  ;;  %4122 = vmatprep.subr.bf16.mxu1 %v7707_v15  ;;  %v7785_v39 = vld [vmem:[#allocation8 + $0x50] sm:$0xff]  }
 0x69c   :  { %4286 = vmatprep.subr.bf16.mxu0 %v7710_v27  ;;  %v7786_v15 = vld [vmem:[#allocation8 + $0xd0] sm:$0xff]  }
 0x69d   :  { %v7787_v27 = vld [vmem:[#allocation8 + $0x10] sm:$0xff]  }
 0x69e   :  { %4123 = vmatpush1.bf16.msra.mxu1 %v7705_v11  ;;  %v7789_v11 = vld [vmem:[#allocation8 + $0x58] sm:$0xff]  }
 0x69f   :  { %4287 = vmatpush1.bf16.msra.mxu0 %v7708_v14  ;;  %4124 = vmatprep.subr.bf16.mxu1 %v7713_v12  ;;  %v7790_v14 = vld [vmem:[#allocation8 + $0xd8] sm:$0xff]  }
 0x6a0   :  { %4288 = vmatprep.subr.bf16.mxu0 %v7716_v35  ;;  %v7791_v12 = vld [vmem:[#allocation8 + $0x18] sm:$0xff]  }
 0x6a1   :  { %v7792_v35 = vld [vmem:[#allocation8 + $0x98] sm:$0xff]  }
 0x6a2   :  { %4125 = vmatpush1.bf16.msra.mxu1 %v7711_v41  ;;  %v7793_v41 = vld [vmem:[#allocation8 + $0x60] sm:$0xff]  }
 0x6a3   :  { %4289 = vmatpush1.bf16.msra.mxu0 %v7714_v22  ;;  %4126 = vmatprep.subr.bf16.mxu1 %v7719_v4  ;;  %v7794_v22 = vld [vmem:[#allocation8 + $0xe0] sm:$0xff]  }
 0x6a4   :  { %4290 = vmatprep.subr.bf16.mxu0 %v7722_v20  ;;  %v7795_v4 = vld [vmem:[#allocation8 + $0x20] sm:$0xff]  }
 0x6a5   :  { %v7796_v20 = vld [vmem:[#allocation8 + $0xa0] sm:$0xff]  }
 0x6a6   :  { %4127 = vmatpush1.bf16.msra.mxu1 %v7717_v29  ;;  %v7797_v29 = vld [vmem:[#allocation8 + $0x68] sm:$0xff]  }
 0x6a7   :  { %4291 = vmatpush1.bf16.msra.mxu0 %v7720_v9  ;;  %4128 = vmatprep.subr.bf16.mxu1 %v7725_v38  ;;  %v7798_v9 = vld [vmem:[#allocation8 + $0xe8] sm:$0xff]  }
 0x6a8   :  { %4292 = vmatprep.subr.bf16.mxu0 %v7728_v63  ;;  %v7799_v38 = vld [vmem:[#allocation8 + $0x28] sm:$0xff]  }
 0x6a9   :  { %v7800_v63 = vld [vmem:[#allocation8 + $0xa8] sm:$0xff]  }
 0x6aa   :  { %4129 = vmatpush1.bf16.msra.mxu1 %v7723_v59  ;;  %v7801_v59 = vld [vmem:[#allocation8 + $0x70] sm:$0xff]  }
 0x6ab   :  { %4293 = vmatpush1.bf16.msra.mxu0 %v7726_v16  ;;  %4130 = vmatprep.subr.bf16.mxu1 %v7731_v58  ;;  %v7802_v16 = vld [vmem:[#allocation8 + $0xf0] sm:$0xff]  }
 0x6ac   :  { %4294 = vmatprep.subr.bf16.mxu0 %v7734_v8  ;;  %v7803_v58 = vld [vmem:[#allocation8 + $0x30] sm:$0xff]  }
 0x6ad   :  { %v7804_v8 = vld [vmem:[#allocation8 + $0xb0] sm:$0xff]  }
 0x6ae   :  { %4131 = vmatpush1.bf16.msra.mxu1 %v7729_v60  ;;  %v7805_v60 = vld [vmem:[#allocation8 + $0x78] sm:$0xff]  }
 0x6af   :  { %4295 = vmatpush1.bf16.msra.mxu0 %v7732_v46  ;;  %4132 = vmatprep.subr.bf16.mxu1 %v7737_v2  ;;  %v7806_v46 = vld [vmem:[#allocation8 + $0xf8] sm:$0xff]  }
 0x6b0   :  { %4296 = vmatprep.subr.bf16.mxu0 %v7740_v3  ;;  %v7807_v2 = vld [vmem:[#allocation8 + $0x38] sm:$0xff]  }
 0x6b1   :  { %v7808_v3 = vld [vmem:[#allocation8 + $0xb8] sm:$0xff]  }
 0x6b2   :  { %4133 = vmatpush1.bf16.msra.mxu1 %v7735_v33  ;;  %v8075_v33 = vmov 0.0  }
 0x6b3   :  { %4297 = vmatpush1.bf16.msra.mxu0 %v7738_v32  ;;  %4134 = vmatprep.subr.bf16.mxu1 %v7743_v23  ;;  %v2689_v32 = vld [vmem:[%s9412_s13] sm:$0xf] }
 0x6b4   :  { %4298 = vmatprep.subr.bf16.mxu0 %v7746_v13  ;;  %v2694_v23 = vrot.slane %v2689_v32, %v9534_v30  ;;  %v2702_v13 = vrot.slane %v2689_v32, %v9533_v57 }
 0x6b6   :  { %4135 = vmatpush1.bf16.msra.mxu1 %v7741_v50  ;;  %v2698_v50 = vrot.slane %v2689_v32, %v9535_v31 }
 0x6b7   :  { %4299 = vmatpush1.bf16.msra.mxu0 %v7744_v1  ;;  %4136 = vmatprep.subr.bf16.mxu1 %v7749_v36  ;;  %v2706_v1 = vrot.slane %v2689_v32, %v1150_v54  ;;  %v7809_v54 = vld [vmem:[%s9416_s17] sm:$0xff]  }
 0x6b8   :  { %4300 = vmatprep.subr.bf16.mxu0 %v7752_v48 }
 0x6ba   :  { %4137 = vmatpush1.bf16.msra.mxu1 %v7747_v21 }
 0x6bb   :  { %4301 = vmatpush1.bf16.msra.mxu0 %v7750_v53  ;;  %4138 = vmatprep.subr.bf16.mxu1 %v7755_v17 }
 0x6bc   :  { %4302 = vmatprep.subr.bf16.mxu0 %v7758_v44 }
 0x6be   :  { %4139 = vmatpush1.bf16.msra.mxu1 %v7753_v0 }
 0x6bf   :  { %4303 = vmatpush1.bf16.msra.mxu0 %v7756_v25  ;;  %4140 = vmatprep.subr.bf16.mxu1 %v7761_v61 }
 0x6c0   :  { %4304 = vmatprep.subr.bf16.mxu0 %v7764_v49 }
 0x6c2   :  { %4141 = vmatpush1.bf16.msra.mxu1 %v7759_v19 }
 0x6c3   :  { %4305 = vmatpush1.bf16.msra.mxu0 %v7762_v56  ;;  %4142 = vmatprep.subr.bf16.mxu1 %v7767_v5 }
 0x6c4   :  { %4306 = vmatprep.subr.bf16.mxu0 %v7770_v42 }
 0x6c6   :  { %4143 = vmatpush1.bf16.msra.mxu1 %v7765_v37 }
 0x6c7   :  { %4307 = vmatpush1.bf16.msra.mxu0 %v7768_v10  ;;  %4144 = vmatprep.subr.bf16.mxu1 %v7773_v47 }
 0x6c8   :  { %4308 = vmatprep.subr.bf16.mxu0 %v7776_v45 }
 0x6ca   :  { %4145 = vmatpush1.bf16.msra.mxu1 %v7771_v43  ;;  %v7810_v43 = vld [vmem:[%s9416_s17 + $0x8] sm:$0xff]  }
 0x6cb   :  { %4309 = vmatpush1.bf16.msra.mxu0 %v7774_v62  ;;  %6866 = vmatprep.subr.bf16.mxu1 %v7777_v7  ;;  %v7811_v62 = vld [vmem:[%s9416_s17 + $0x10] sm:$0xff]   ;;  %v7812_v7 = vld [vmem:[%s9416_s17 + $0x18] sm:$0xff]  }
 0x6cc   :  { %6888 = vmatprep.subr.bf16.mxu0 %v7778_v26  ;;  %v7813_v26 = vld [vmem:[%s9416_s17 + $0x20] sm:$0xff]  }
 0x6cd   :  { %4147 = vmatmul.mubr.bf16.vlgmr.msra.gmra.mrb[80].mxu1 %v2431_v6 }
 0x6ce   :  { %4311 = vmatmul.mubr.bf16.vlgmr.msra.gmra.mrb[96].mxu0 %v2431_v6  ;;  %6867 = vmatpush3.bf16.msra.mxu1 %v7779_v24  ;;  %v7814_v24 = vld [vmem:[%s9416_s17 + $0x28] sm:$0xff]   ;;  %v7815_v6 = vld [vmem:[%s9416_s17 + $0x30] sm:$0xff]  }
 0x6cf   :  { %6889 = vmatpush3.bf16.msra.mxu0 %v7780_v40  ;;  %6868 = vmatprep.subr.bf16.mxu1 %v7781_v55  ;;  %v7816_v40 = vld [vmem:[%s9416_s17 + $0x38] sm:$0xff]   ;;  %v7817_v55 = vld [vmem:[#allocation9] sm:$0xff]  }
 0x6d0   :  { %6890 = vmatprep.subr.bf16.mxu0 %v7782_v18  ;;  %v7818_v18 = vld [vmem:[#allocation9 + $0x8] sm:$0xff]  }
 0x6d2   :  { %6869 = vmatpush3.bf16.msra.mxu1 %v7783_v51  ;;  %v7819_v51 = vld [vmem:[#allocation9 + $0x10] sm:$0xff]  }
 0x6d3   :  { %6891 = vmatpush3.bf16.msra.mxu0 %v7784_v34  ;;  %6870 = vmatprep.subr.bf16.mxu1 %v7785_v39  ;;  %v7820_v34 = vld [vmem:[#allocation9 + $0x18] sm:$0xff]  }
 0x6d4   :  { %6892 = vmatprep.subr.bf16.mxu0 %v7786_v15 }
 0x6d6   :  { %6871 = vmatpush3.bf16.msra.mxu1 %v7787_v27  ;;  %v6685_v27 = vld [vmem:[%s9414_s15] ss:$0 sm:$0xff] }
 0x6d7   :  { %6893 = vmatpush3.bf16.msra.mxu0 %v7788_v28  ;;  %6872 = vmatprep.subr.bf16.mxu1 %v7789_v11 }
 0x6d8   :  { %6894 = vmatprep.subr.bf16.mxu0 %v7790_v14 }
 0x6da   :  { %6873 = vmatpush3.bf16.msra.mxu1 %v7791_v12 }
 0x6db   :  { %6895 = vmatpush3.bf16.msra.mxu0 %v7792_v35  ;;  %6874 = vmatprep.subr.bf16.mxu1 %v7793_v41 }
 0x6dc   :  { %6896 = vmatprep.subr.bf16.mxu0 %v7794_v22 }
 0x6de   :  { %6875 = vmatpush3.bf16.msra.mxu1 %v7795_v4 }
 0x6df   :  { %6897 = vmatpush3.bf16.msra.mxu0 %v7796_v20  ;;  %6876 = vmatprep.subr.bf16.mxu1 %v7797_v29 }
 0x6e0   :  { %6898 = vmatprep.subr.bf16.mxu0 %v7798_v9 }
 0x6e2   :  { %6877 = vmatpush3.bf16.msra.mxu1 %v7799_v38  ;;  %v7821_v38 = vld [vmem:[#allocation9 + $0x20] sm:$0xff]  }
 0x6e3   :  { %6899 = vmatpush3.bf16.msra.mxu0 %v7800_v63  ;;  %6878 = vmatprep.subr.bf16.mxu1 %v7801_v59  ;;  %v7822_v63 = vld [vmem:[#allocation9 + $0x28] sm:$0xff]   ;;  %v7823_v59 = vld [vmem:[#allocation9 + $0x30] sm:$0xff]  }
 0x6e4   :  { %6900 = vmatprep.subr.bf16.mxu0 %v7802_v16  ;;  %v7824_v16 = vld [vmem:[#allocation9 + $0x38] sm:$0xff]  }
 0x6e6   :  { %6879 = vmatpush3.bf16.msra.mxu1 %v7803_v58  ;;  %v7825_v58 = vld [vmem:[#allocation11] sm:$0xff]  }
 0x6e7   :  { %6901 = vmatpush3.bf16.msra.mxu0 %v7804_v8  ;;  %6880 = vmatprep.subr.bf16.mxu1 %v7805_v60  ;;  %v7826_v8 = vld [vmem:[#allocation11 + $0x8] sm:$0xff]   ;;  %v7827_v60 = vld [vmem:[#allocation11 + $0x10] sm:$0xff]  }
 0x6e8   :  { %6902 = vmatprep.subr.bf16.mxu0 %v7806_v46  ;;  %v7828_v46 = vld [vmem:[#allocation11 + $0x18] sm:$0xff]  }
 0x6ea   :  { %6881 = vmatpush3.bf16.msra.mxu1 %v7807_v2  ;;  %v7829_v2 = vld [vmem:[#allocation11 + $0x20] sm:$0xff]  }
 0x6eb   :  { %6903 = vmatpush3.bf16.msra.mxu0 %v7808_v3  ;;  %7091 = vmatprep.subr.bf16.mxu1 %v8075_v33  ;;  %v7830_v3 = vld [vmem:[#allocation11 + $0x28] sm:$0xff]  }
 0x6ec   :  { %7111 = vmatprep.subr.bf16.mxu0 %v7817_v55 }
 0x7a0   :  { %v4148_v36 = vpop.f32.mrb[80].mxu1 }
 0x7a1   :  { %v7311_v48 = vadd.f32 %v4148_v36, %v2694_v23  ;;  %v4312_v21 = vpop.f32.mrb[96].mxu0  ;;  %v4150_v53 = vpop.f32.mrb[81].mxu1 }
 0x7a2   :  { %v7313_v17 = vadd.f32 %v4312_v21, %v2702_v13  ;;  %v7312_v44 = vadd.f32 %v4150_v53, %v2698_v50  ;;  %v4314_v0 = vpop.f32.mrb[97].mxu0  ;;  %v4152_v25 = vpop.f32.mrb[82].mxu1 }
 0x7a3   :  { %v4319_v61 = vmax.f32 %v7311_v48, 0.0  ;;  %v7314_v49 = vadd.f32 %v4314_v0, %v2706_v1  ;;  %v4316_v19 = vpop.f32.mrb[98].mxu0  ;;  %v4153_v56 = vpop.f32.mrb[83].mxu1 }
 0x7a4   :  { %v4321_v5 = vmax.f32 %v7313_v17, 0.0  ;;  %v4320_v42 = vmax.f32 %v7312_v44, 0.0  ;;  %v4317_v57 = vpop.f32.mrb[99].mxu0  ;;  %v8077_v17 = vmov 1966171168  }
 0x7a5   :  { %v4322_v37 = vmax.f32 %v7314_v49, 0.0  ;;  %v4323_v10 = vpack.c.bf16 %v4319_v61, %v4319_v61  ;;  %v4876_v44 = vunpack.c.l.s4 %v8077_v17  ;;  %v6719_v61 = vld [vmem:[%s9415_s16 + $0x1] ss:$0 sm:$0xff]  ;;  %v6721_v49 = vld [vmem:[%s9417_s18] ss:$0 sm:$0xff] }
 0x7a6   :  { %v4324_v31 = vpack.c.bf16 %v4320_v42, %v4320_v42  ;;  %v4325_v45 = vpack.c.bf16 %v4321_v5, %v4321_v5  ;;  %v6718_v19 = vld [vmem:[%s9415_s16] ss:$0 sm:$0xff]  ;;  %v6720_v42 = vld [vmem:[%s9415_s16 + $0x2] ss:$0 sm:$0xff] }
 0x7a7   :  { %v4326_v47 = vpack.c.bf16 %v4322_v37, %v4322_v37  ;;  %v4877_v0 = vunpack.c.0.s8 %v4876_v44 }
 0x7a8   :  { %4622 = vmatprep.mubr.bf16.mxu1 %v4324_v31 }
 0x7a9   :  { %4662 = vmatprep.mubr.bf16.mxu0 %v4326_v47  ;;  %4623 = vmatmul.mubr.bf16.vlgmr.msra.gmra.mrb[84].mxu1 %v4323_v10  ;;  %v4880_v56 = vsub.s32 %v4877_v0, %v9532_v52 }
 0x7aa   :  { %4663 = vmatmul.mubr.bf16.vlgmr.msra.gmra.mrb[100].mxu0 %v4325_v45  ;;  %7092 = vmatpush3.bf16.msra.mxu1 %v7809_v54 }
 0x7ab   :  { %7093 = vmatprep.subr.bf16.mxu1 %v8075_v33  ;;  %7107 = vmatprep.mubr.msk.bf16.mxu1 %vm8076_vm2, %v8075_v33 }
 0x7ac   :  { %7112 = vmatpush3.bf16.msra.mxu0 %v7817_v55 }
 0x7ad   :  { %7113 = vmatprep.subr.bf16.mxu0 %v7818_v18 }
 0x7ae   :  { %7094 = vmatpush3.bf16.msra.mxu1 %v7810_v43 }
 0x7af   :  { %7095 = vmatprep.subr.bf16.mxu1 %v8075_v33 }
 0x7b0   :  { %7114 = vmatpush3.bf16.msra.mxu0 %v7818_v18 }
 0x7b1   :  { %7115 = vmatprep.subr.bf16.mxu0 %v7819_v51 }
 0x7b2   :  { %7096 = vmatpush3.bf16.msra.mxu1 %v7811_v62 }
 0x7b3   :  { %7097 = vmatprep.subr.bf16.mxu1 %v8075_v33 }
 0x7b4   :  { %7116 = vmatpush3.bf16.msra.mxu0 %v7819_v51 }
 0x7b5   :  { %7117 = vmatprep.subr.bf16.mxu0 %v7820_v34 }
 0x7b6   :  { %7098 = vmatpush3.bf16.msra.mxu1 %v7812_v7 }
 0x7b7   :  { %7099 = vmatprep.subr.bf16.mxu1 %v8075_v33 }
 0x7b8   :  { %7118 = vmatpush3.bf16.msra.mxu0 %v7820_v34 }
 0x7b9   :  { %7119 = vmatprep.subr.bf16.mxu0 %v7821_v38 }
 0x7ba   :  { %7100 = vmatpush3.bf16.msra.mxu1 %v7813_v26 }
 0x7bb   :  { %7101 = vmatprep.subr.bf16.mxu1 %v8075_v33 }
 0x7bc   :  { %7120 = vmatpush3.bf16.msra.mxu0 %v7821_v38 }
 0x7bd   :  { %7121 = vmatprep.subr.bf16.mxu0 %v7822_v63 }
 0x7be   :  { %7102 = vmatpush3.bf16.msra.mxu1 %v7814_v24 }
 0x7bf   :  { %7103 = vmatprep.subr.bf16.mxu1 %v8075_v33 }
 0x7c0   :  { %7122 = vmatpush3.bf16.msra.mxu0 %v7822_v63 }
 0x7c1   :  { %7123 = vmatprep.subr.bf16.mxu0 %v7823_v59 }
 0x7c2   :  { %7104 = vmatpush3.bf16.msra.mxu1 %v7815_v6 }
 0x7c3   :  { %7105 = vmatprep.subr.bf16.mxu1 %v8075_v33  ;;  %v4679_v33 = vpop.permute.xlu0 %4678 }
 0x7c4   :  { %7124 = vmatpush3.bf16.msra.mxu0 %v7823_v59  ;;  %v4700_v10 = vmul.f32 %v6718_v19, %v4679_v33  ;;  %v7833_v33 = vld [vmem:[#allocation9 + $0x40] sm:$0xff]  }
 0x7c5   :  { %7125 = vmatprep.subr.bf16.mxu0 %v7824_v16 }
 0x7c6   :  { %7106 = vmatpush3.bf16.msra.mxu1 %v7816_v40 }
 0x7c7   :  { %7131 = vmatprep.subr.bf16.mxu1 %v7825_v58  ;;  %v4684_v32 = vpop.permute.xlu0 %4683 }
 0x7c8   :  { %7126 = vmatpush3.bf16.msra.mxu0 %v7824_v16  ;;  %v4701_v7 = vmul.f32 %v6718_v19, %v4684_v32  ;;  %v7834_v32 = vld [vmem:[#allocation9 + $0x48] sm:$0xff]  }
 0x7c9   :  { %7151 = vmatprep.subr.bf16.mxu0 %v7833_v33 }
 0x7cb   :  { %v4689_v23 = vpop.permute.xlu0 %4688 }
 0x7cc   :  { %v4702_v55 = vmul.f32 %v6718_v19, %v4689_v23  ;;  %v7835_v23 = vld [vmem:[#allocation9 + $0x50] sm:$0xff]  }
 0x7cf   :  { %v4694_v13 = vpop.permute.xlu0 %4693 }
 0x7d0   :  { %v4703_v18 = vmul.f32 %v6718_v19, %v4694_v13  ;;  %v7836_v13 = vld [vmem:[#allocation9 + $0x58] sm:$0xff]  }
 0x7d3   :  { %v4707_v50 = vpop.permute.xlu0 %4706 }
 0x7d4   :  { %v4725_v5 = vmul.f32 %v6719_v61, %v4707_v50  ;;  %v7837_v50 = vld [vmem:[#allocation9 + $0x60] sm:$0xff]  }
 0x7d6   :  { %v4729_v51 = vadd.f32 %v4725_v5, %v4700_v10  ;;  %v7842_v10 = vld [vmem:[#allocation11 + $0x48] sm:$0xff]  }
 0x7d7   :  { %v4711_v1 = vpop.permute.xlu0 %4710 }
 0x7d8   :  { %v4726_v37 = vmul.f32 %v6719_v61, %v4711_v1  ;;  %v6730_v1 = vld [vmem:[%s9419_s20] ss:$0 sm:$0xff] }
 0x7db   :  { %v4715_v36 = vpop.permute.xlu0 %4714 }
 0x7dc   :  { %v4727_v47 = vmul.f32 %v6719_v61, %v4715_v36 }
 0x7df   :  { %v4719_v48 = vpop.permute.xlu0 %4718 }
 0x7e0   :  { %v4728_v45 = vmul.f32 %v6719_v61, %v4719_v48 }
 0x7e3   :  { %v4736_v21 = vpop.permute.xlu0 %4735 }
 0x7e4   :  { %v4754_v26 = vmul.f32 %v6720_v42, %v4736_v21 }
 0x7e7   :  { %v4740_v53 = vpop.permute.xlu0 %4739 }
 0x7e8   :  { %v4755_v24 = vmul.f32 %v6720_v42, %v4740_v53 }
 0x7eb   :  { %v4744_v25 = vpop.permute.xlu0 %4743 }
 0x7ec   :  { %v4756_v34 = vmul.f32 %v6720_v42, %v4744_v25 }
 0x7ef   :  { %v4748_v43 = vpop.permute.xlu0 %4747 }
 0x87c   :  { %v6882_v39 = vpop.f32.mrb[84].mxu1 }
 0x87d   :  { %v6904_v15 = vpop.f32.mrb[100].mxu0  ;;  %v6883_v28 = vpop.f32.mrb[85].mxu1 }
 0x87e   :  { %v6884_v11 = vadd.f32 %v6883_v28, %v6882_v39  ;;  %v6905_v14 = vpop.f32.mrb[101].mxu0  ;;  %v6885_v12 = vpop.f32.mrb[86].mxu1  ;;  %v4730_v39 = vadd.f32 %v4726_v37, %v4701_v7  ;;  %v7839_v37 = vld [vmem:[#allocation9 + $0x70] sm:$0xff]  }
 0x87f   :  { %v6906_v35 = vadd.f32 %v6905_v14, %v6904_v15  ;;  %v6907_v41 = vpop.f32.mrb[102].mxu0  ;;  %v6886_v22 = vpop.f32.mrb[87].mxu1  ;;  %v4757_v15 = vmul.f32 %v6720_v42, %v4748_v43  ;;  %v4732_v14 = vadd.f32 %v4728_v45, %v4703_v18  ;;  %v4758_v12 = vadd.f32 %v4754_v26, %v4729_v51  ;;  %v7844_v45 = vld [vmem:[#allocation11 + $0x58] sm:$0xff]   ;;  %v7845_v43 = vld [vmem:[#allocation11 + $0x60] sm:$0xff]  }
 0x880   :  { %v4625_v4 = vadd.f32 %v6884_v11, %v6685_v27  ;;  %v6908_v20 = vpop.f32.mrb[103].mxu0  ;;  %v4731_v11 = vadd.f32 %v4727_v47, %v4702_v55  ;;  %v7843_v47 = vld [vmem:[#allocation11 + $0x50] sm:$0xff]  }
 0x881   :  { %v4761_v20 = vadd.f32 %v4757_v15, %v4732_v14 }
 0x882   :  { %v4665_v29 = vadd.f32 %v6906_v35, %v4625_v4  ;;  %v4759_v35 = vadd.f32 %v4755_v24, %v4730_v39  ;;  %v4760_v4 = vadd.f32 %v4756_v34, %v4731_v11  ;;  %v6747_v24 = vld [vmem:[%s9421_s22] ss:$0 sm:$0xff] }
 0x884   :  { %v4762_v9 = vpack.c.bf16 %v4665_v29, %v4665_v29  ;;  %4670 = vst [vmem:[#allocation12] sm:$0x3] %v4665_v29 }
 0x886   :  { %7108 = vmatmul.mubr.bf16.vlgmr.msra.gmra.mrb[88].mxu1 %v4762_v9 }
 0x887   :  { %7132 = vmatpush3.bf16.msra.mxu1 %v7825_v58 }
 0x888   :  { %7133 = vmatprep.subr.bf16.mxu1 %v7826_v8 }
 0x88b   :  { %7134 = vmatpush3.bf16.msra.mxu1 %v7826_v8 }
 0x88c   :  { %7135 = vmatprep.subr.bf16.mxu1 %v7827_v60 }
 0x88f   :  { %7136 = vmatpush3.bf16.msra.mxu1 %v7827_v60 }
 0x890   :  { %7137 = vmatprep.subr.bf16.mxu1 %v7828_v46 }
 0x893   :  { %7138 = vmatpush3.bf16.msra.mxu1 %v7828_v46 }
 0x894   :  { %7139 = vmatprep.subr.bf16.mxu1 %v7829_v2 }
 0x897   :  { %7140 = vmatpush3.bf16.msra.mxu1 %v7829_v2 }
 0x898   :  { %7141 = vmatprep.subr.bf16.mxu1 %v7830_v3 }
 0x89b   :  { %7142 = vmatpush3.bf16.msra.mxu1 %v7830_v3  ;;  %v7832_v3 = vld [vmem:[#allocation11 + $0x38] sm:$0xff]  }
 0x959   :  { %v4868_v57 = vpop.f32.mrb[88].mxu1 }
 0x95a   :  { %v4869_v31 = vadd.f32 %v6721_v49, %v4868_v57  ;;  %v7109_v54 = vpop.f32.mrb[89].mxu1  ;;  %v7838_v57 = vld [vmem:[#allocation9 + $0x68] sm:$0xff]  }
 0x95b   :  { %v4871_v62 = vpop.f32.mrb[90].mxu1  ;;  %v7841_v54 = vld [vmem:[#allocation11 + $0x40] sm:$0xff]  }
 0x95c   :  { %v4881_v6 = vrot.slane %v4869_v31, %v4880_v56  ;;  %v7110_v40 = vpop.f32.mrb[91].mxu1  ;;  %v7840_v31 = vld [vmem:[#allocation9 + $0x78] sm:$0xff]   ;;  %v7846_v62 = vld [vmem:[#allocation11 + $0x68] sm:$0xff]  }
 0x95e   :  { %v4882_v27 = vcombine.high %v4881_v6, %v4881_v6  ;;  %v4889_v28 = vrot.slane %v4881_v6, %v4880_v56 }
 0x960   :  { %v4896_v41 = vrot.slane %v4882_v27, %v4880_v56  ;;  %v4900_v22 = vrot.slane %v4889_v28, %v9534_v30 }
 0x962   :  { %v4904_v29 = vrot.slane %v4896_v41, %v9534_v30  ;;  %v9275_v9 = vadd.f32 %v4900_v22, %v4758_v12  ;;  %v9277_v38 = vadd.f32 %v4900_v22, %v4759_v35  ;;  %v7831_v30 = vld [vmem:[#allocation11 + $0x30] sm:$0xff]  }
 0x963   :  { %7143 = vmatprep.subr.bf16.mxu1 %v7831_v30 }
 0x964   :  { %v9279_v63 = vadd.f32 %v4904_v29, %v4760_v4  ;;  %v9281_v59 = vadd.f32 %v4904_v29, %v4761_v20  ;;  %v4911_v16 = vmax.f32 %v9275_v9, 0.0  ;;  %v4912_v58 = vmax.f32 %v9277_v38, 0.0  ;;  %7144 = vmatpush3.bf16.msra.mxu1 %v7831_v30  ;;  %v7847_v4 = vld [vmem:[#allocation11 + $0x70] sm:$0xff]   ;;  %v7848_v20 = vld [vmem:[#allocation11 + $0x78] sm:$0xff]   ;;  %v7849_v29 = vld [vmem:[#allocation9 + $0x80] sm:$0xff]  }
 0x965   :  { %7145 = vmatprep.subr.bf16.mxu1 %v7832_v3 }
 0x966   :  { %v4915_v8 = vpack.c.bf16 %v4912_v58, %v4911_v16  ;;  %v4913_v60 = vmax.f32 %v9279_v63, 0.0  ;;  %v4914_v46 = vmax.f32 %v9281_v59, 0.0  ;;  %v6749_v16 = vld [vmem:[%s9419_s20 + $0x1] ss:$0 sm:$0xff] }
 0x968   :  { %7127 = vmatprep.mubr.bf16.mxu0 %v4915_v8  ;;  %v4916_v2 = vpack.c.bf16 %v4914_v46, %v4913_v60  ;;  %7146 = vmatpush3.bf16.msra.mxu1 %v7832_v3 }
 0x969   :  { %7171 = vmatprep.subr.bf16.mxu1 %v7841_v54 }
 0x96a   :  { %7128 = vmatmul.mubr.bf16.vlgmr.msra.gmra.mrb[104].mxu0 %v4916_v2 }
 0x96b   :  { %7152 = vmatpush3.bf16.msra.mxu0 %v7833_v33 }
 0x96c   :  { %7153 = vmatprep.subr.bf16.mxu0 %v7834_v32 }
 0x96f   :  { %7154 = vmatpush3.bf16.msra.mxu0 %v7834_v32 }
 0x970   :  { %7155 = vmatprep.subr.bf16.mxu0 %v7835_v23 }
 0x973   :  { %7156 = vmatpush3.bf16.msra.mxu0 %v7835_v23 }
 0x974   :  { %7157 = vmatprep.subr.bf16.mxu0 %v7836_v13 }
 0x977   :  { %7158 = vmatpush3.bf16.msra.mxu0 %v7836_v13 }
 0x978   :  { %7159 = vmatprep.subr.bf16.mxu0 %v7837_v50 }
 0x97b   :  { %7160 = vmatpush3.bf16.msra.mxu0 %v7837_v50 }
 0x97c   :  { %7161 = vmatprep.subr.bf16.mxu0 %v7838_v57 }
 0x97f   :  { %7162 = vmatpush3.bf16.msra.mxu0 %v7838_v57 }
 0x980   :  { %7163 = vmatprep.subr.bf16.mxu0 %v7839_v37 }
 0x983   :  { %7164 = vmatpush3.bf16.msra.mxu0 %v7839_v37 }
 0x984   :  { %7165 = vmatprep.subr.bf16.mxu0 %v7840_v31 }
 0x987   :  { %7166 = vmatpush3.bf16.msra.mxu0 %v7840_v31 }
 0x988   :  { %7191 = vmatprep.subr.bf16.mxu0 %v7849_v29 }
 0xa3d   :  { %v7129_v36 = vpop.f32.mrb[104].mxu0 }
 0xa3e   :  { %v5031_v48 = vadd.f32 %v7129_v36, %v6730_v1  ;;  %v5022_v21 = vpop.f32.mrb[105].mxu0 }
 0xa3f   :  { %v5023_v53 = vadd.f32 %v6730_v1, %v5022_v21  ;;  %v7130_v17 = vpop.f32.mrb[106].mxu0  ;;  %v7855_v21 = vld [vmem:[#allocation9 + $0xb0] sm:$0xff]  }
 0xa40   :  { %v5034_v44 = vadd.f32 %v7130_v17, %v6730_v1  ;;  %v5025_v0 = vpop.f32.mrb[107].mxu0  ;;  %v5039_v61 = vmax.f32 %v5031_v48, 0.0  ;;  %v7854_v48 = vld [vmem:[#allocation9 + $0xa8] sm:$0xff]   ;;  %v7857_v17 = vld [vmem:[#allocation11 + $0x80] sm:$0xff]  }
 0xa41   :  { %v5026_v25 = vadd.f32 %v6730_v1, %v5025_v0  ;;  %v5037_v19 = vmax.f32 %v5023_v53, 0.0  ;;  %v7856_v53 = vld [vmem:[#allocation9 + $0xb8] sm:$0xff]   ;;  %v7859_v0 = vld [vmem:[#allocation11 + $0x90] sm:$0xff]  }
 0xa42   :  { %v5040_v49 = vmax.f32 %v5034_v44, 0.0  ;;  %v7858_v44 = vld [vmem:[#allocation11 + $0x88] sm:$0xff]  }
 0xa43   :  { %v5038_v56 = vmax.f32 %v5026_v25, 0.0  ;;  %v7860_v25 = vld [vmem:[#allocation11 + $0x98] sm:$0xff]  }
 0xa44   :  { %v5042_v5 = vpack.c.bf16 %v5040_v49, %v5039_v61  ;;  %v7861_v61 = vld [vmem:[#allocation11 + $0xa0] sm:$0xff]   ;;  %v7862_v49 = vld [vmem:[#allocation11 + $0xa8] sm:$0xff]  }
 0xa45   :  { %v5041_v42 = vpack.c.bf16 %v5038_v56, %v5037_v19 }
 0xa47   :  { %7147 = vmatprep.mubr.bf16.mxu1 %v5041_v42 }
 0xa48   :  { %7148 = vmatmul.mubr.bf16.vlgmr.msra.gmra.mrb[92].mxu1 %v5042_v5  ;;  %v6767_v5 = vld [vmem:[%s9421_s22 + $0x1] ss:$0 sm:$0xff] }
 0xa49   :  { %7172 = vmatpush3.bf16.msra.mxu1 %v7841_v54 }
 0xa4a   :  { %7173 = vmatprep.subr.bf16.mxu1 %v7842_v10 }
 0xa4d   :  { %7174 = vmatpush3.bf16.msra.mxu1 %v7842_v10 }
 0xa4e   :  { %7175 = vmatprep.subr.bf16.mxu1 %v7843_v47 }
 0xa51   :  { %7176 = vmatpush3.bf16.msra.mxu1 %v7843_v47 }
 0xa52   :  { %7177 = vmatprep.subr.bf16.mxu1 %v7844_v45 }
 0xa55   :  { %7178 = vmatpush3.bf16.msra.mxu1 %v7844_v45 }
 0xa56   :  { %7179 = vmatprep.subr.bf16.mxu1 %v7845_v43 }
 0xa59   :  { %7180 = vmatpush3.bf16.msra.mxu1 %v7845_v43 }
 0xa5a   :  { %7181 = vmatprep.subr.bf16.mxu1 %v7846_v62 }
 0xa5d   :  { %7182 = vmatpush3.bf16.msra.mxu1 %v7846_v62 }
 0xa5e   :  { %7183 = vmatprep.subr.bf16.mxu1 %v7847_v4 }
 0xa61   :  { %7184 = vmatpush3.bf16.msra.mxu1 %v7847_v4 }
 0xa62   :  { %7185 = vmatprep.subr.bf16.mxu1 %v7848_v20 }
 0xa65   :  { %7186 = vmatpush3.bf16.msra.mxu1 %v7848_v20 }
 0xa66   :  { %7211 = vmatprep.subr.bf16.mxu1 %v7857_v17 }
 0xb1b   :  { %v7149_v7 = vpop.f32.mrb[92].mxu1 }
 0xb1c   :  { %v5158_v26 = vadd.f32 %v7149_v7, %v9279_v63  ;;  %v5141_v6 = vpop.f32.mrb[93].mxu1  ;;  %v7852_v63 = vld [vmem:[#allocation9 + $0x98] sm:$0xff]  }
 0xb1d   :  { %v5156_v40 = vadd.f32 %v5141_v6, %v9275_v9  ;;  %v7150_v55 = vpop.f32.mrb[94].mxu1  ;;  %v7850_v9 = vld [vmem:[#allocation9 + $0x88] sm:$0xff]  }
 0xb1e   :  { %v5159_v18 = vadd.f32 %v7150_v55, %v9281_v59  ;;  %v5144_v51 = vpop.f32.mrb[95].mxu1  ;;  %v9299_v15 = vadd.f32 %v6747_v24, %v5158_v26  ;;  %v7853_v59 = vld [vmem:[#allocation9 + $0xa0] sm:$0xff]  }
 0xb1f   :  { %v9296_v34 = vadd.f32 %v6747_v24, %v5156_v40  ;;  %v5157_v39 = vadd.f32 %v5144_v51, %v9277_v38  ;;  %v7851_v38 = vld [vmem:[#allocation9 + $0x90] sm:$0xff]   ;;  %v7864_v51 = vld [vmem:[#allocation11 + $0xb8] sm:$0xff]  }
 0xb20   :  { %v9301_v27 = vadd.f32 %v6747_v24, %v5159_v18  ;;  %v5173_v35 = vmax.f32 %v9299_v15, 0.0  ;;  %v7863_v18 = vld [vmem:[#allocation11 + $0xb0] sm:$0xff]  }
 0xb21   :  { %v9303_v28 = vadd.f32 %v6747_v24, %v5157_v39  ;;  %v5171_v14 = vmax.f32 %v9296_v34, 0.0  ;;  %v7866_v39 = vld [vmem:[#allocation9 + $0xc8] sm:$0xff]  }
 0xb22   :  { %v5174_v11 = vmax.f32 %v9301_v27, 0.0 }
 0xb23   :  { %v5172_v12 = vmax.f32 %v9303_v28, 0.0 }
 0xb24   :  { %v5176_v22 = vpack.c.bf16 %v5174_v11, %v5173_v35  ;;  %v6769_v11 = vld [vmem:[%s9419_s20 + $0x2] ss:$0 sm:$0xff] }
 0xb25   :  { %v5175_v41 = vpack.c.bf16 %v5172_v12, %v5171_v14 }
 0xb27   :  { %7167 = vmatprep.mubr.bf16.mxu0 %v5175_v41 }
 0xb28   :  { %7168 = vmatmul.mubr.bf16.vlgmr.msra.gmra.mrb[108].mxu0 %v5176_v22 }
 0xb29   :  { %7192 = vmatpush3.bf16.msra.mxu0 %v7849_v29 }
 0xb2a   :  { %7193 = vmatprep.subr.bf16.mxu0 %v7850_v9 }
 0xb2d   :  { %7194 = vmatpush3.bf16.msra.mxu0 %v7850_v9 }
 0xb2e   :  { %7195 = vmatprep.subr.bf16.mxu0 %v7851_v38 }
 0xb31   :  { %7196 = vmatpush3.bf16.msra.mxu0 %v7851_v38 }
 0xb32   :  { %7197 = vmatprep.subr.bf16.mxu0 %v7852_v63 }
 0xb35   :  { %7198 = vmatpush3.bf16.msra.mxu0 %v7852_v63 }
 0xb36   :  { %7199 = vmatprep.subr.bf16.mxu0 %v7853_v59 }
 0xb39   :  { %7200 = vmatpush3.bf16.msra.mxu0 %v7853_v59 }
 0xb3a   :  { %7201 = vmatprep.subr.bf16.mxu0 %v7854_v48 }
 0xb3d   :  { %7202 = vmatpush3.bf16.msra.mxu0 %v7854_v48 }
 0xb3e   :  { %7203 = vmatprep.subr.bf16.mxu0 %v7855_v21 }
 0xb41   :  { %7204 = vmatpush3.bf16.msra.mxu0 %v7855_v21 }
 0xb42   :  { %7205 = vmatprep.subr.bf16.mxu0 %v7856_v53 }
 0xb45   :  { %7206 = vmatpush3.bf16.msra.mxu0 %v7856_v53 }
 0xbfb   :  { %v7169_v58 = vpop.f32.mrb[108].mxu0 }
 0xbfc   :  { %v5293_v8 = vadd.f32 %v7169_v58, %v6749_v16  ;;  %v5284_v60 = vpop.f32.mrb[109].mxu0 }
 0xbfd   :  { %v5285_v46 = vadd.f32 %v6749_v16, %v5284_v60  ;;  %v7170_v2 = vpop.f32.mrb[110].mxu0  ;;  %v7871_v60 = vld [vmem:[#allocation9 + $0xf0] sm:$0xff]  }
 0xbfe   :  { %v5296_v30 = vadd.f32 %v7170_v2, %v6749_v16  ;;  %v5287_v3 = vpop.f32.mrb[111].mxu0  ;;  %v5301_v32 = vmax.f32 %v5293_v8, 0.0  ;;  %v7870_v8 = vld [vmem:[#allocation9 + $0xe8] sm:$0xff]   ;;  %v7873_v2 = vld [vmem:[#allocation11 + $0xc0] sm:$0xff]  }
 0xbff   :  { %v5288_v33 = vadd.f32 %v6749_v16, %v5287_v3  ;;  %v5299_v13 = vmax.f32 %v5285_v46, 0.0  ;;  %v7872_v46 = vld [vmem:[#allocation9 + $0xf8] sm:$0xff]   ;;  %v7875_v3 = vld [vmem:[#allocation11 + $0xd0] sm:$0xff]  }
 0xc00   :  { %v5302_v23 = vmax.f32 %v5296_v30, 0.0  ;;  %v7874_v30 = vld [vmem:[#allocation11 + $0xc8] sm:$0xff]  }
 0xc01   :  { %v5300_v50 = vmax.f32 %v5288_v33, 0.0  ;;  %v7876_v33 = vld [vmem:[#allocation11 + $0xd8] sm:$0xff]  }
 0xc02   :  { %v5304_v1 = vpack.c.bf16 %v5302_v23, %v5301_v32  ;;  %v7877_v32 = vld [vmem:[#allocation11 + $0xe0] sm:$0xff]   ;;  %v7878_v23 = vld [vmem:[#allocation11 + $0xe8] sm:$0xff]  }
 0xc03   :  { %v5303_v36 = vpack.c.bf16 %v5300_v50, %v5299_v13 }
 0xc05   :  { %7187 = vmatprep.mubr.bf16.mxu1 %v5303_v36 }
 0xc06   :  { %7188 = vmatmul.mubr.bf16.vlgmr.msra.gmra.mrb[96].mxu1 %v5304_v1  ;;  %v6787_v1 = vld [vmem:[%s9421_s22 + $0x2] ss:$0 sm:$0xff] }
 0xc07   :  { %7212 = vmatpush3.bf16.msra.mxu1 %v7857_v17 }
 0xc08   :  { %7213 = vmatprep.subr.bf16.mxu1 %v7858_v44 }
 0xc0b   :  { %7214 = vmatpush3.bf16.msra.mxu1 %v7858_v44 }
 0xc0c   :  { %7215 = vmatprep.subr.bf16.mxu1 %v7859_v0 }
 0xc0f   :  { %7216 = vmatpush3.bf16.msra.mxu1 %v7859_v0 }
 0xc10   :  { %7217 = vmatprep.subr.bf16.mxu1 %v7860_v25 }
 0xc13   :  { %7218 = vmatpush3.bf16.msra.mxu1 %v7860_v25 }
 0xc14   :  { %7219 = vmatprep.subr.bf16.mxu1 %v7861_v61 }
 0xc17   :  { %7220 = vmatpush3.bf16.msra.mxu1 %v7861_v61 }
 0xc18   :  { %7221 = vmatprep.subr.bf16.mxu1 %v7862_v49 }
 0xc1b   :  { %7222 = vmatpush3.bf16.msra.mxu1 %v7862_v49 }
 0xc1c   :  { %7223 = vmatprep.subr.bf16.mxu1 %v7863_v18 }
 0xc1f   :  { %7224 = vmatpush3.bf16.msra.mxu1 %v7863_v18 }
 0xc20   :  { %7225 = vmatprep.subr.bf16.mxu1 %v7864_v51 }
 0xc23   :  { %7226 = vmatpush3.bf16.msra.mxu1 %v7864_v51 }
 0xc24   :  { %7251 = vmatprep.subr.bf16.mxu1 %v7873_v2 }
 0xcd9   :  { %v7189_v19 = vpop.f32.mrb[96].mxu1 }
 0xcda   :  { %v5421_v56 = vadd.f32 %v7189_v19, %v9299_v15  ;;  %v5404_v42 = vpop.f32.mrb[97].mxu1  ;;  %v7867_v15 = vld [vmem:[#allocation9 + $0xd0] sm:$0xff]  }
 0xcdb   :  { %v5419_v57 = vadd.f32 %v5404_v42, %v9296_v34  ;;  %v7190_v37 = vpop.f32.mrb[98].mxu1  ;;  %v7865_v34 = vld [vmem:[#allocation9 + $0xc0] sm:$0xff]  }
 0xcdc   :  { %v5422_v31 = vadd.f32 %v7190_v37, %v9301_v27  ;;  %v5407_v54 = vpop.f32.mrb[99].mxu1  ;;  %v9321_v45 = vadd.f32 %v6767_v5, %v5421_v56  ;;  %7231 = vmatprep.subr.bf16.mxu0 %v7865_v34  ;;  %v7868_v27 = vld [vmem:[#allocation9 + $0xd8] sm:$0xff]  }
 0xcdd   :  { %v9318_v10 = vadd.f32 %v6767_v5, %v5419_v57  ;;  %v5420_v47 = vadd.f32 %v5407_v54, %v9303_v28  ;;  %v7869_v28 = vld [vmem:[#allocation9 + $0xe0] sm:$0xff]   ;;  %v7880_v54 = vld [vmem:[#allocation11 + $0xf8] sm:$0xff]  }
 0xcde   :  { %v9323_v43 = vadd.f32 %v6767_v5, %v5422_v31  ;;  %v5437_v6 = vmax.f32 %v9321_v45, 0.0  ;;  %v7879_v31 = vld [vmem:[#allocation11 + $0xf0] sm:$0xff]  }
 0xcdf   :  { %v9325_v62 = vadd.f32 %v6767_v5, %v5420_v47  ;;  %v5435_v26 = vmax.f32 %v9318_v10, 0.0  ;;  %v7882_v47 = vld [vmem:[#allocation9 + $0x108] sm:$0xff]  }
 0xce0   :  { %v5438_v7 = vmax.f32 %v9323_v43, 0.0 }
 0xce1   :  { %v5436_v24 = vmax.f32 %v9325_v62, 0.0 }
 0xce2   :  { %v5440_v55 = vpack.c.bf16 %v5438_v7, %v5437_v6  ;;  %v6789_v7 = vld [vmem:[%s9419_s20 + $0x3] ss:$0 sm:$0xff] }
 0xce3   :  { %v5439_v40 = vpack.c.bf16 %v5436_v24, %v5435_v26 }
 0xce5   :  { %7207 = vmatprep.mubr.bf16.mxu0 %v5439_v40 }
 0xce6   :  { %7208 = vmatmul.mubr.bf16.vlgmr.msra.gmra.mrb[112].mxu0 %v5440_v55 }
 0xce7   :  { %7232 = vmatpush3.bf16.msra.mxu0 %v7865_v34 }
 0xce8   :  { %7233 = vmatprep.subr.bf16.mxu0 %v7866_v39 }
 0xceb   :  { %7234 = vmatpush3.bf16.msra.mxu0 %v7866_v39 }
 0xcec   :  { %7235 = vmatprep.subr.bf16.mxu0 %v7867_v15 }
 0xcef   :  { %7236 = vmatpush3.bf16.msra.mxu0 %v7867_v15 }
 0xcf0   :  { %7237 = vmatprep.subr.bf16.mxu0 %v7868_v27 }
 0xcf3   :  { %7238 = vmatpush3.bf16.msra.mxu0 %v7868_v27 }
 0xcf4   :  { %7239 = vmatprep.subr.bf16.mxu0 %v7869_v28 }
 0xcf7   :  { %7240 = vmatpush3.bf16.msra.mxu0 %v7869_v28 }
 0xcf8   :  { %7241 = vmatprep.subr.bf16.mxu0 %v7870_v8 }
 0xcfb   :  { %7242 = vmatpush3.bf16.msra.mxu0 %v7870_v8 }
 0xcfc   :  { %7243 = vmatprep.subr.bf16.mxu0 %v7871_v60 }
 0xcff   :  { %7244 = vmatpush3.bf16.msra.mxu0 %v7871_v60 }
 0xd00   :  { %7245 = vmatprep.subr.bf16.mxu0 %v7872_v46 }
 0xd03   :  { %7246 = vmatpush3.bf16.msra.mxu0 %v7872_v46 }
 0xdb9   :  { %v7209_v14 = vpop.f32.mrb[112].mxu0 }
 0xdba   :  { %v5557_v12 = vadd.f32 %v7209_v14, %v6769_v11  ;;  %v5548_v35 = vpop.f32.mrb[113].mxu0 }
 0xdbb   :  { %v5549_v41 = vadd.f32 %v6769_v11, %v5548_v35  ;;  %v7210_v22 = vpop.f32.mrb[114].mxu0  ;;  %v7887_v35 = vld [vmem:[#allocation9 + $0x130] sm:$0xff]  }
 0xdbc   :  { %v5560_v4 = vadd.f32 %v7210_v22, %v6769_v11  ;;  %v5551_v20 = vpop.f32.mrb[115].mxu0  ;;  %v5565_v9 = vmax.f32 %v5557_v12, 0.0  ;;  %v7886_v12 = vld [vmem:[#allocation9 + $0x128] sm:$0xff]   ;;  %v7889_v22 = vld [vmem:[#allocation11 + $0x100] sm:$0xff]  }
 0xdbd   :  { %v5552_v29 = vadd.f32 %v6769_v11, %v5551_v20  ;;  %v5563_v63 = vmax.f32 %v5549_v41, 0.0  ;;  %v7888_v41 = vld [vmem:[#allocation9 + $0x138] sm:$0xff]   ;;  %v7891_v20 = vld [vmem:[#allocation11 + $0x110] sm:$0xff]  }
 0xdbe   :  { %v5566_v38 = vmax.f32 %v5560_v4, 0.0  ;;  %v7890_v4 = vld [vmem:[#allocation11 + $0x108] sm:$0xff]  }
 0xdbf   :  { %v5564_v59 = vmax.f32 %v5552_v29, 0.0  ;;  %v7892_v29 = vld [vmem:[#allocation11 + $0x118] sm:$0xff]  }
 0xdc0   :  { %v5568_v16 = vpack.c.bf16 %v5566_v38, %v5565_v9  ;;  %v7893_v9 = vld [vmem:[#allocation11 + $0x120] sm:$0xff]   ;;  %v7894_v38 = vld [vmem:[#allocation11 + $0x128] sm:$0xff]  }
 0xdc1   :  { %v5567_v58 = vpack.c.bf16 %v5564_v59, %v5563_v63 }
 0xdc3   :  { %7227 = vmatprep.mubr.bf16.mxu1 %v5567_v58 }
 0xdc4   :  { %7228 = vmatmul.mubr.bf16.vlgmr.msra.gmra.mrb[100].mxu1 %v5568_v16  ;;  %v6807_v16 = vld [vmem:[%s9421_s22 + $0x3] ss:$0 sm:$0xff] }
 0xdc5   :  { %7252 = vmatpush3.bf16.msra.mxu1 %v7873_v2 }
 0xdc6   :  { %7253 = vmatprep.subr.bf16.mxu1 %v7874_v30 }
 0xdc9   :  { %7254 = vmatpush3.bf16.msra.mxu1 %v7874_v30 }
 0xdca   :  { %7255 = vmatprep.subr.bf16.mxu1 %v7875_v3 }
 0xdcd   :  { %7256 = vmatpush3.bf16.msra.mxu1 %v7875_v3 }
 0xdce   :  { %7257 = vmatprep.subr.bf16.mxu1 %v7876_v33 }
 0xdd1   :  { %7258 = vmatpush3.bf16.msra.mxu1 %v7876_v33 }
 0xdd2   :  { %7259 = vmatprep.subr.bf16.mxu1 %v7877_v32 }
 0xdd5   :  { %7260 = vmatpush3.bf16.msra.mxu1 %v7877_v32 }
 0xdd6   :  { %7261 = vmatprep.subr.bf16.mxu1 %v7878_v23 }
 0xdd9   :  { %7262 = vmatpush3.bf16.msra.mxu1 %v7878_v23 }
 0xdda   :  { %7263 = vmatprep.subr.bf16.mxu1 %v7879_v31 }
 0xddd   :  { %7264 = vmatpush3.bf16.msra.mxu1 %v7879_v31 }
 0xdde   :  { %7265 = vmatprep.subr.bf16.mxu1 %v7880_v54 }
 0xde1   :  { %7266 = vmatpush3.bf16.msra.mxu1 %v7880_v54 }
 0xde2   :  { %7291 = vmatprep.subr.bf16.mxu1 %v7889_v22 }
 0xe97   :  { %v7229_v13 = vpop.f32.mrb[100].mxu1 }
 0xe98   :  { %v5685_v50 = vadd.f32 %v7229_v13, %v9321_v45  ;;  %v5668_v36 = vpop.f32.mrb[101].mxu1  ;;  %v7883_v45 = vld [vmem:[#allocation9 + $0x110] sm:$0xff]  }
 0xe99   :  { %v5683_v48 = vadd.f32 %v5668_v36, %v9318_v10  ;;  %v7230_v21 = vpop.f32.mrb[102].mxu1  ;;  %v7881_v10 = vld [vmem:[#allocation9 + $0x100] sm:$0xff]  }
 0xe9a   :  { %v5686_v53 = vadd.f32 %v7230_v21, %v9323_v43  ;;  %v5671_v17 = vpop.f32.mrb[103].mxu1  ;;  %v9343_v25 = vadd.f32 %v6787_v1, %v5685_v50  ;;  %7271 = vmatprep.subr.bf16.mxu0 %v7881_v10  ;;  %v7884_v43 = vld [vmem:[#allocation9 + $0x118] sm:$0xff]  }
 0xe9b   :  { %v9340_v44 = vadd.f32 %v6787_v1, %v5683_v48  ;;  %v5684_v0 = vadd.f32 %v5671_v17, %v9325_v62  ;;  %v7885_v62 = vld [vmem:[#allocation9 + $0x120] sm:$0xff]   ;;  %v7896_v17 = vld [vmem:[#allocation11 + $0x138] sm:$0xff]  }
 0xe9c   :  { %v9345_v61 = vadd.f32 %v6787_v1, %v5686_v53  ;;  %v5701_v42 = vmax.f32 %v9343_v25, 0.0  ;;  %v7895_v53 = vld [vmem:[#allocation11 + $0x130] sm:$0xff]  }
 0xe9d   :  { %v9347_v49 = vadd.f32 %v6787_v1, %v5684_v0  ;;  %v5699_v56 = vmax.f32 %v9340_v44, 0.0 }
 0xe9e   :  { %v5702_v19 = vmax.f32 %v9345_v61, 0.0 }
 0xe9f   :  { %v5700_v5 = vmax.f32 %v9347_v49, 0.0 }
 0xea0   :  { %v5704_v37 = vpack.c.bf16 %v5702_v19, %v5701_v42 }
 0xea1   :  { %v5703_v57 = vpack.c.bf16 %v5700_v5, %v5699_v56 }
 0xea3   :  { %7247 = vmatprep.mubr.bf16.mxu0 %v5703_v57 }
 0xea4   :  { %7248 = vmatmul.mubr.bf16.vlgmr.msra.gmra.mrb[116].mxu0 %v5704_v37 }
 0xea5   :  { %7272 = vmatpush3.bf16.msra.mxu0 %v7881_v10 }
 0xea6   :  { %7273 = vmatprep.subr.bf16.mxu0 %v7882_v47 }
 0xea9   :  { %7274 = vmatpush3.bf16.msra.mxu0 %v7882_v47 }
 0xeaa   :  { %7275 = vmatprep.subr.bf16.mxu0 %v7883_v45 }
 0xead   :  { %7276 = vmatpush3.bf16.msra.mxu0 %v7883_v45 }
 0xeae   :  { %7277 = vmatprep.subr.bf16.mxu0 %v7884_v43 }
 0xeb1   :  { %7278 = vmatpush3.bf16.msra.mxu0 %v7884_v43 }
 0xeb2   :  { %7279 = vmatprep.subr.bf16.mxu0 %v7885_v62 }
 0xeb5   :  { %7280 = vmatpush3.bf16.msra.mxu0 %v7885_v62  ;;  %v6827_v62 = vld [vmem:[%s9421_s22 + $0x4] ss:$0 sm:$0xff]  ;;  %s8078_s22 = smov [#allocation12]  }
 0xeb6   :  { %7281 = vmatprep.subr.bf16.mxu0 %v7886_v12  ;;  %s6301_s27 = sshll.u32 %s8078_s22, 4  ;;  %s6302_s27 = int_to_ptr.vmem [resolvable:$true] %s6301_s27 }
 0xeb7   :  { %p8012_p13 = scmp.lt.s32.totalorder %s6302_s27, %s6302_s27 }
 0xeb9   :  { %7282 = vmatpush3.bf16.msra.mxu0 %v7886_v12 }
 0xeba   :  { %7283 = vmatprep.subr.bf16.mxu0 %v7887_v35 }
 0xebd   :  { %7284 = vmatpush3.bf16.msra.mxu0 %v7887_v35 }
 0xebe   :  { %7285 = vmatprep.subr.bf16.mxu0 %v7888_v41 }
 0xec1   :  { %7286 = vmatpush3.bf16.msra.mxu0 %v7888_v41 }
 0xf77   :  { %v7249_v26 = vpop.f32.mrb[116].mxu0 }
 0xf78   :  { %v5821_v24 = vadd.f32 %v7249_v26, %v6789_v7  ;;  %v5812_v6 = vpop.f32.mrb[117].mxu0 }
 0xf79   :  { %v5813_v40 = vadd.f32 %v6789_v7, %v5812_v6  ;;  %v7250_v55 = vpop.f32.mrb[118].mxu0 }
 0xf7a   :  { %v5824_v18 = vadd.f32 %v7250_v55, %v6789_v7  ;;  %v5815_v51 = vpop.f32.mrb[119].mxu0  ;;  %v5829_v39 = vmax.f32 %v5821_v24, 0.0 }
 0xf7b   :  { %v5816_v34 = vadd.f32 %v6789_v7, %v5815_v51  ;;  %v5827_v27 = vmax.f32 %v5813_v40, 0.0 }
 0xf7c   :  { %v5830_v15 = vmax.f32 %v5824_v18, 0.0 }
 0xf7d   :  { %v5828_v28 = vmax.f32 %v5816_v34, 0.0  ;;  %v6828_v34 = vld [vmem:[%s9422_s23] ss:$0 sm:$0xff]  ;;  %s8007_s23 = scalar_lea.vmem %s6302_s27, 32 }
 0xf7e   :  { %v5832_v11 = vpack.c.bf16 %v5830_v15, %v5829_v39  ;;  %p8008_p12 = scmp.ne.s32.totalorder %s6302_s27, %s8007_s23  ;;  %p8013_p0 = scmp.lt.s32.totalorder %s8007_s23, %s8007_s23 }
 0xf7f   :  { %v5831_v14 = vpack.c.bf16 %v5828_v28, %v5827_v27 }
 0xf80   :  { %p8014_p1 = por %p8013_p0, %p8012_p13 }
 0xf81   :  { %7267 = vmatprep.mubr.bf16.mxu1 %v5831_v14 }
 0xf82   :  { %7268 = vmatmul.mubr.bf16.vlgmr.msra.gmra.mrb[104].mxu1 %v5832_v11  ;;  %p8015_p2 = pnand %p8014_p1, %p8008_p12 }
 0xf83   :  { %7292 = vmatpush3.bf16.msra.mxu1 %v7889_v22 }
 0xf84   :  { %7293 = vmatprep.subr.bf16.mxu1 %v7890_v4 }
 0xf87   :  { %7294 = vmatpush3.bf16.msra.mxu1 %v7890_v4  ;;  %v6829_v4 = vld [vmem:[#allocation2] ss:$0 sm:$0xff] }
 0xf88   :  { %7295 = vmatprep.subr.bf16.mxu1 %v7891_v20 }
 0xf8b   :  { %7296 = vmatpush3.bf16.msra.mxu1 %v7891_v20 }
 0xf8c   :  { %7297 = vmatprep.subr.bf16.mxu1 %v7892_v29 }
 0xf8f   :  { %7298 = vmatpush3.bf16.msra.mxu1 %v7892_v29 }
 0xf90   :  { %7299 = vmatprep.subr.bf16.mxu1 %v7893_v9 }
 0xf93   :  { %7300 = vmatpush3.bf16.msra.mxu1 %v7893_v9 }
 0xf94   :  { %7301 = vmatprep.subr.bf16.mxu1 %v7894_v38 }
 0xf97   :  { %7302 = vmatpush3.bf16.msra.mxu1 %v7894_v38 }
 0xf98   :  { %7303 = vmatprep.subr.bf16.mxu1 %v7895_v53 }
 0xf9b   :  { %7304 = vmatpush3.bf16.msra.mxu1 %v7895_v53 }
 0xf9c   :  { %7305 = vmatprep.subr.bf16.mxu1 %v7896_v17 }
 0xf9f   :  { %7306 = vmatpush3.bf16.msra.mxu1 %v7896_v17 }
0x1055   :  { %v7269_v63 = vpop.f32.mrb[104].mxu1 }
0x1056   :  { %v5949_v59 = vadd.f32 %v7269_v63, %v9343_v25  ;;  %v5932_v58 = vpop.f32.mrb[105].mxu1 }
0x1057   :  { %v5947_v8 = vadd.f32 %v5932_v58, %v9340_v44  ;;  %v7270_v60 = vpop.f32.mrb[106].mxu1  ;;  %v6809_v44 = vld [vmem:[%s9419_s20 + $0x4] ss:$0 sm:$0xff] }
0x1058   :  { %v5950_v46 = vadd.f32 %v7270_v60, %v9345_v61  ;;  %v5935_v2 = vpop.f32.mrb[107].mxu1  ;;  %v5961_v33 = vadd.f32 %v6807_v16, %v5949_v59 }
0x1059   :  { %v5959_v30 = vadd.f32 %v6807_v16, %v5947_v8  ;;  %v5948_v3 = vadd.f32 %v5935_v2, %v9347_v49 }
0x105a   :  { %v5962_v32 = vadd.f32 %v6807_v16, %v5950_v46  ;;  %v5965_v36 = vmax.f32 %v5961_v33, 0.0 }
0x105b   :  { %v5960_v23 = vadd.f32 %v6807_v16, %v5948_v3  ;;  %v5963_v50 = vmax.f32 %v5959_v30, 0.0 }
0x105c   :  { %v5966_v13 = vmax.f32 %v5962_v32, 0.0 }
0x105d   :  { %v5964_v1 = vmax.f32 %v5960_v23, 0.0 }
0x105e   :  { %v5968_v21 = vpack.c.bf16 %v5966_v13, %v5965_v36 }
0x105f   :  { %v5967_v48 = vpack.c.bf16 %v5964_v1, %v5963_v50 }
0x1061   :  { %7287 = vmatprep.mubr.bf16.mxu0 %v5967_v48 }
0x1062   :  { %7288 = vmatmul.mubr.bf16.vlgmr.msra.gmra.mrb[120].mxu0 %v5968_v21 }
0x1135   :  { %v7289_v0 = vpop.f32.mrb[120].mxu0 }
0x1136   :  { %v6085_v25 = vadd.f32 %v7289_v0, %v6809_v44  ;;  %v6076_v61 = vpop.f32.mrb[121].mxu0 }
0x1137   :  { %v6077_v49 = vadd.f32 %v6809_v44, %v6076_v61  ;;  %v7290_v19 = vpop.f32.mrb[122].mxu0 }
0x1138   :  { %v6088_v56 = vadd.f32 %v7290_v19, %v6809_v44  ;;  %v6079_v5 = vpop.f32.mrb[123].mxu0  ;;  %v6093_v57 = vmax.f32 %v6085_v25, 0.0 }
0x1139   :  { %v6080_v42 = vadd.f32 %v6809_v44, %v6079_v5  ;;  %v6091_v31 = vmax.f32 %v6077_v49, 0.0 }
0x113a   :  { %v6094_v37 = vmax.f32 %v6088_v56, 0.0 }
0x113b   :  { %v6092_v54 = vmax.f32 %v6080_v42, 0.0 }
0x113c   :  { %v6096_v10 = vpack.c.bf16 %v6094_v37, %v6093_v57 }
0x113d   :  { %v6095_v47 = vpack.c.bf16 %v6092_v54, %v6091_v31 }
0x113f   :  { %7307 = vmatprep.mubr.bf16.mxu1 %v6095_v47 }
0x1140   :  { %7308 = vmatmul.mubr.bf16.vlgmr.msra.gmra.mrb[108].mxu1 %v6096_v10 }
0x1213   :  { %v7309_v45 = vpop.f32.mrb[108].mxu1 }
0x1214   :  { %v6213_v43 = vadd.f32 %v7309_v45, %v5961_v33  ;;  %v6196_v7 = vpop.f32.mrb[109].mxu1 }
0x1215   :  { %v6211_v26 = vadd.f32 %v6196_v7, %v5959_v30  ;;  %v7310_v24 = vpop.f32.mrb[110].mxu1 }
0x1216   :  { %v6199_v6 = vpop.f32.mrb[111].mxu1  ;;  %v6225_v40 = vadd.f32 %v6827_v62, %v6213_v43  ;;  %v6214_v18 = vadd.f32 %v7310_v24, %v5962_v32 }
0x1217   :  { %v6223_v55 = vadd.f32 %v6827_v62, %v6211_v26  ;;  %v6212_v51 = vadd.f32 %v6199_v6, %v5960_v23 }
0x1218   :  { %v6229_v27 = vmax.f32 %v6225_v40, 0.0  ;;  %v6226_v28 = vadd.f32 %v6827_v62, %v6214_v18 }
0x1219   :  { %v6227_v39 = vmax.f32 %v6223_v55, 0.0  ;;  %v6224_v15 = vadd.f32 %v6827_v62, %v6212_v51 }
0x121a   :  { %v6230_v35 = vmax.f32 %v6226_v28, 0.0  ;;  %v6240_v41 = vmul.f32 %v6828_v34, %v6229_v27 }
0x121b   :  { %v6228_v11 = vmax.f32 %v6224_v15, 0.0  ;;  %v6238_v14 = vmul.f32 %v6828_v34, %v6227_v39 }
0x121c   :  { %v6241_v22 = vmul.f32 %v6828_v34, %v6230_v35 }
0x121d   :  { %6242 = vadd.xlane.f32.xlu0 %v6238_v14  ;;  %v6239_v12 = vmul.f32 %v6828_v34, %v6228_v11 }
0x121f   :  { %6244 = vadd.xlane.f32.xlu1 %v6239_v12 }
0x1221   :  { %6246 = vadd.xlane.f32.xlu0 %v6240_v41 }
0x1225   :  { %6248 = vadd.xlane.f32.xlu0 %v6241_v22 }
0x123b   :  { %6257 = vperm.xlu0 %7380, %v6829_v4  }
0x123c   :  { %8018 = shalt.err (!%p8015_p2)
}
0x123d   :  { %s8019_s13 = scalar_lea.hbm %s9424_s25, 32 }
0x123e   :  { %p8020_p3 = scmp.ne.s32.totalorder %s9424_s25, %s8019_s13  ;;  %p8023_p4 = scmp.lt.u32.totalorder %s8019_s13, %s9424_s25 }
0x1240   :  { %p8025_p5 = pnand %p8023_p4, %p8020_p3 }
0x1242   :  { %8028 = shalt.err (!%p8025_p5)
}
0x1243   :  { %6304 = dma.vmem_to_hbm [thread:$0]  %s6302_s27, 32, %s9424_s25, [#allocation5]   ;;  %v9536_v9 = vlaneseq  ;;  %vm6279_vm3 = vcmask 130112   ;;  %vm6290_vm4 = vcmask 1041409   ;;  %vm6293_vm5 = vcmask 123904  }
0x1244   :  { %s8079_s10 = smov [#allocation13]  }
0x1245   :  { %v6269_v38 = vand.u32 127, %v9536_v9  ;;  %s6311_s25 = sshll.u32 %s8079_s10, 4  ;;  %s6312_s25 = int_to_ptr.vmem [resolvable:$true] %s6311_s25 }
0x1246   :  { %s8029_s1 = scalar_lea.vmem %s6312_s25, 32  ;;  %p8034_p7 = scmp.lt.s32.totalorder %s6312_s25, %s6312_s25 }
0x1247   :  { %v6274_v63 = vadd.s32 4294967288, %v6269_v38  ;;  %v6272_v16 = vsub.s32 %v6269_v38, %v9532_v52  ;;  %p8030_p6 = scmp.ne.s32.totalorder %s6312_s25, %s8029_s1  ;;  %p8035_p8 = scmp.lt.s32.totalorder %s8029_s1, %s8029_s1 }
0x1249   :  { %v6277_v58 = vsub.s32 %v6274_v63, %v9532_v52  ;;  %p8036_p9 = por %p8035_p8, %p8034_p7 }
0x124b   :  { %p8037_p10 = pnand %p8036_p9, %p8030_p6 }
0x12aa   :  { %v6243_v20 = vpop.xlane.xlu0 %6242 }
0x12ac   :  { %v6245_v8 = vpop.xlane.xlu1 %6244 }
0x12ae   :  { %v6247_v29 = vpop.xlane.xlu0 %6246 }
0x12b2   :  { %v6249_v59 = vpop.xlane.xlu0 %6248 }
0x12ba   :  { %v6258_v60 = vpop.permute.xlu0 %6257 }
0x12bb   :  { %v6260_v46 = vadd.f32 %v6258_v60, %v6243_v20  ;;  %v6261_v2 = vadd.f32 %v6258_v60, %v6245_v8  ;;  %v6262_v30 = vadd.f32 %v6258_v60, %v6247_v29  ;;  %v6263_v3 = vadd.f32 %v6258_v60, %v6249_v59 }
0x12bd   :  { %v6273_v33 = vrot.slane %v6260_v46, %v6272_v16  ;;  %v6278_v32 = vrot.slane %v6261_v2, %v6277_v58  ;;  %v6284_v23 = vrot.slane %v6262_v30, %v6272_v16  ;;  %v6288_v13 = vrot.slane %v6263_v3, %v6277_v58 }
0x12bf   :  { %v6280_v50 = vsel %vm6279_vm3, %v6278_v32, %v6273_v33  ;;  %v6289_v1 = vsel %vm6279_vm3, %v6288_v13, %v6284_v23 }
0x12c0   :  { %v6291_v36 = vsel %vm6290_vm4, %v6289_v1, %v6280_v50 }
0x12c1   :  { %6294 = vst.msk [vmem:[#allocation13] sm:$0x3] %vm6293_vm5, %v6291_v36 }
0x12c2   :  { %8040 = shalt.err (!%p8037_p10)
}
0x12c3   :  { %s8041_s0 = scalar_lea.hbm %s9425_s26, 32 }
0x12c4   :  { %p8042_p11 = scmp.ne.s32.totalorder %s9425_s26, %s8041_s0  ;;  %p8045_p12 = scmp.lt.u32.totalorder %s8041_s0, %s9425_s26 }
0x12c6   :  { %p8047_p13 = pnand %p8045_p12, %p8042_p11 }
0x12c8   :  { %8050 = shalt.err (!%p8047_p13)
}
0x12c9   :  { %6314 = dma.vmem_to_hbm [thread:$0]  %s6312_s25, 32, %s9425_s26, [#allocation14]  }
0x12ca   :  { %8057 = dma.done.wait [#allocation5], 32  }
0x12cb   :  { %8058 = vsyncadd [#allocation5], 4294967264 }
0x12cc   :  { %8059 = dma.done.wait [#allocation14], 32  }
0x12cd   :  { %8060 = vsyncadd [#allocation14], 4294967264 }
0x12ce   :  { %6321 = vsyncpa [#allocation4], 1 }
0x12cf   :  { %6322 = vsyncpa [#allocation7], 1 }
0x12d0   :  { %6323 = vsyncpa [#allocation10], 1 }
0x12d1   :  { %6324 = vsyncpa [#allocation5], 1 }
0x12d2   :  { %6325 = vsyncpa [#allocation14], 1 }

</bundles_post_ra>
